<compile_context>
chip_gen: v7x
topology: tpu7x:2x2x1
jax: 0.10.0
libtpu: 0.0.40
codegen_flags: <defaults>
</compile_context>

<pallas_src>
import jax
import jax.numpy as jnp
from jax.experimental import pallas as pl
from jax.experimental.pallas import tpu as pltpu

# Model hyper-parameters (from the PyTorch spec).
WIDTH = 64        # hidden width
KER_WIDTH = 256   # fc_out1 width
DEPTH = 4         # outer loop depth
IN_WIDTH = 3      # cat([pos(2), x(1)]) for darcy2d
OUT_PAD = 128     # lane-dense padding of the scalar output column

# Static row offsets inside the packed bf16 weight buffer (all multiples of 16
# so bf16 sublane packing stays aligned).  Column count = 256 (max layer width).
W_COLS = KER_WIDTH
W_IN_OFF = 0                      # rows [0:3)     : fc_in   (3, 64)
WC_OFF = 64                       # rows [64:320)  : conv1..4 (4 x (64, 64))
WO1_OFF = WC_OFF + 4 * WIDTH      # rows [320:384) : fc_out1 (64, 256)
WO2_OFF = WO1_OFF + WIDTH         # rows [384:640) : fc_out2 (256, 1) in col 0..127 (padded)
W_ROWS = WO2_OFF + KER_WIDTH      # 640

# Row layout of the packed f32 bias buffer, shape (8, 256).
B_IN_ROW = 0       # fc_in bias   (cols 0:64)
BC_ROW = 1         # conv1..4     (rows 1..4, cols 0:64)
BO1_ROW = 5        # fc_out1 bias (cols 0:256)
BO2_ROW = 6        # fc_out2 bias (col 0, padded to 128)
B_ROWS = 8


def gcn_net_kernel(adj_ref, x_ref, w_ref, b_ref, out_ref):
    # adj_ref : (N, N)      bf16  normalized adjacency (shared across batch)
    # x_ref   : (1, N, 3)   f32   one sample of cat([pos, x])
    # w_ref   : (640, 256)  bf16  all weights, packed (static offsets above)
    # b_ref   : (8, 256)    f32   all biases, packed (one row each)
    # out_ref : (1, N, 128) f32   lane-dense padded output (column 0 meaningful)
    x = x_ref[0]                                                   # (N, 3) f32

    # fc_in : (N,3) @ (3,W); bf16 MXU operands, f32 accumulation / bias.
    h = jnp.dot(x.astype(jnp.bfloat16),
                w_ref[W_IN_OFF:W_IN_OFF + IN_WIDTH, 0:WIDTH],
                preferred_element_type=jnp.float32)
    h = h + b_ref[B_IN_ROW:B_IN_ROW + 1, 0:WIDTH]

    # for t in range(depth):  x = relu(x + GCNConv_k(x))  for k = 1..4
    # GCNConv(x) = A_hat @ (x @ W_k) + b_k   (statically unrolled 4*4 = 16 blocks).
    # adj / W_k / b_k are read from VMEM at each use: the vld slots are idle
    # while the MXU drains, and short live ranges avoid vreg spills.
    for _ in range(DEPTH):
        for k in range(4):
            wk = w_ref[WC_OFF + k * WIDTH:WC_OFF + (k + 1) * WIDTH, 0:WIDTH]
            xw = jnp.dot(h.astype(jnp.bfloat16), wk,
                         preferred_element_type=jnp.float32)        # (N, W) f32
            conv = jnp.dot(adj_ref[...], xw.astype(jnp.bfloat16),
                           preferred_element_type=jnp.float32)
            conv = conv + b_ref[BC_ROW + k:BC_ROW + k + 1, 0:WIDTH]
            h = jnp.maximum(h + conv, 0.0)                          # residual + ReLU (f32)
    # TODO(synk): if a bundle dump shows vreg spill vst/vld pairs, wrap the
    # DEPTH loop in lax.fori_loop (inner 4 convs unrolled) to bound live ranges.
    # TODO(synk): if MXU weight-load passes dominate, keep adj stationary with
    # pltpu.matmul_push_rhs / matmul_acc_lhs and transpose back on the XLU.

    # fc_out1 + leaky_relu (default negative_slope = 0.01)
    h = jnp.dot(h.astype(jnp.bfloat16),
                w_ref[WO1_OFF:WO1_OFF + WIDTH, 0:KER_WIDTH],
                preferred_element_type=jnp.float32)
    h = h + b_ref[BO1_ROW:BO1_ROW + 1, 0:KER_WIDTH]
    h = jnp.where(h > 0, h, 0.01 * h)

    # fc_out2, lane-dense: 128 output lanes (zero-padded weights), col 0 is real.
    out = jnp.dot(h.astype(jnp.bfloat16),
                  w_ref[WO2_OFF:WO2_OFF + KER_WIDTH, 0:OUT_PAD],
                  preferred_element_type=jnp.float32)
    out_ref[0] = out + b_ref[BO2_ROW:BO2_ROW + 1, 0:OUT_PAD]


# ----------------------------------------------------------------------------
# One-time (per model / per static graph) preprocessing — OUTSIDE the hot path.
# ----------------------------------------------------------------------------

def build_norm_adj(edge_index, num_nodes):
    """Dense GCN normalization A_hat = D^-1/2 (A + I) D^-1/2 (PyG gcn_norm).

    The scatter-add is slow on TPU; build once per static graph, never per step.
    """
    row, col = edge_index[0], edge_index[1]
    loop = jnp.arange(num_nodes, dtype=edge_index.dtype)
    row = jnp.concatenate([row, loop])
    col = jnp.concatenate([col, loop])
    ew = jnp.ones(row.shape[0], jnp.float32)
    deg = jnp.zeros((num_nodes,), jnp.float32).at[col].add(ew)
    dinv = jnp.where(deg > 0, 1.0 / jnp.sqrt(deg), 0.0)
    norm = dinv[row] * dinv[col]
    # message flows source(row) -> target(col): out[col] += norm * x[row]
    adj = jnp.zeros((num_nodes, num_nodes), jnp.float32).at[col, row].add(norm)
    return adj


def pack_params(params):
    """Pack every Linear/GCNConv weight/bias into 2 kernel inputs (done once)."""
    (w_in, b_in) = params[0]
    convs = params[1:5]
    (wo1, bo1) = params[5]
    (wo2, bo2) = params[6]

    w = jnp.zeros((W_ROWS, W_COLS), jnp.float32)
    w = w.at[W_IN_OFF:W_IN_OFF + IN_WIDTH, 0:WIDTH].set(w_in)
    for k, (wk, _) in enumerate(convs):
        w = w.at[WC_OFF + k * WIDTH:WC_OFF + (k + 1) * WIDTH, 0:WIDTH].set(wk)
    w = w.at[WO1_OFF:WO1_OFF + WIDTH, 0:KER_WIDTH].set(wo1)
    w = w.at[WO2_OFF:WO2_OFF + KER_WIDTH, 0:1].set(wo2)   # scalar output -> col 0

    b = jnp.zeros((B_ROWS, W_COLS), jnp.float32)
    b = b.at[B_IN_ROW, 0:WIDTH].set(b_in[0])
    for k, (_, bk) in enumerate(convs):
        b = b.at[BC_ROW + k, 0:WIDTH].set(bk[0])
    b = b.at[BO1_ROW, 0:KER_WIDTH].set(bo1[0])
    b = b.at[BO2_ROW, 0:1].set(bo2[0])

    return w.astype(jnp.bfloat16), b


# ----------------------------------------------------------------------------
# VMEM budgeting (per-generation aware: v5e/v6e 128 MiB phys, v7x 64 MiB phys).
# ----------------------------------------------------------------------------

def _vmem_capacity_bytes():
    try:
        cap = getattr(pltpu.get_tpu_info(), "vmem_capacity_bytes", None)
        if cap:
            return int(cap)
    except Exception:
        pass
    return 64 << 20  # conservative floor: v7x physical VMEM per TensorCore


def _resident_vmem_bytes(n):
    """Upper bound on the per-grid-step VMEM working set (incl. double-buffering)."""
    adj_b = 2 * n * n * 2                        # bf16 adjacency
    w_b = 2 * W_ROWS * W_COLS * 2                # packed bf16 weights
    b_b = 2 * B_ROWS * W_COLS * 4                # packed f32 biases
    x_b = 2 * n * IN_WIDTH * 4                   # one input-sample block
    out_b = 2 * n * OUT_PAD * 4                  # one output block
    act_b = n * (4 * WIDTH + 2 * KER_WIDTH) * 4  # h / xw / conv / fc_out1 temporaries
    return adj_b + w_b + b_b + x_b + out_b + act_b


# ----------------------------------------------------------------------------
# Forward (the only per-step work): batched pallas_call + trailing lane slice.
# ----------------------------------------------------------------------------

def gcn_net_forward(adj_bf16, x_cat, w_packed, b_packed):
    """adj (N,N) bf16 shared; x_cat (B,N,3) f32 -> (B,N,1) f32."""
    batch, n, _ = x_cat.shape

    capacity = _vmem_capacity_bytes()
    resident = _resident_vmem_bytes(n)
    # TODO(synk): for large N, tile adj with a 2-D grid (output rows "parallel",
    # contraction axis "arbitrary") instead of holding the dense matrix whole.
    assert resident <= 0.75 * capacity, (
        f"dense-adjacency working set ({resident} B) exceeds VMEM budget ({capacity} B)")
    vmem_limit = int(min(0.9 * capacity, max(32 << 20, 2 * resident)))

    flops_per_sample = (2 * n * IN_WIDTH * WIDTH
                        + DEPTH * 4 * (2 * n * WIDTH * WIDTH + 2 * n * n * WIDTH)
                        + 2 * n * WIDTH * KER_WIDTH
                        + 2 * n * KER_WIDTH * OUT_PAD)
    bytes_accessed = (adj_bf16.size * 2 + w_packed.size * 2 + b_packed.size * 4
                      + x_cat.size * 4 + batch * n * OUT_PAD * 4)
    cost = pl.CostEstimate(flops=int(batch * flops_per_sample), transcendentals=0,
                           bytes_accessed=int(bytes_accessed))

    out_pad = pl.pallas_call(
        gcn_net_kernel,
        out_shape=jax.ShapeDtypeStruct((batch, n, OUT_PAD), jnp.float32),
        grid=(batch,),
        in_specs=[
            pl.BlockSpec((n, n), lambda b: (0, 0)),               # adj (shared block)
            pl.BlockSpec((1, n, IN_WIDTH), lambda b: (b, 0, 0)),  # per-sample features
            pl.BlockSpec((W_ROWS, W_COLS), lambda b: (0, 0)),     # packed weights (shared)
            pl.BlockSpec((B_ROWS, W_COLS), lambda b: (0, 0)),     # packed biases (shared)
        ],
        out_specs=pl.BlockSpec((1, n, OUT_PAD), lambda b: (b, 0, 0)),
        compiler_params=pltpu.CompilerParams(
            dimension_semantics=("parallel",),   # shard the batch across v7x's 2 TCs
            vmem_limit_bytes=vmem_limit),
        cost_estimate=cost,
    )(adj_bf16, x_cat, w_packed, b_packed)

    return out_pad[..., :1]   # (B, N, 1): drop lane padding (column 0 is real)


# ----------------------------------------------------------------------------
# Reference + demo
# ----------------------------------------------------------------------------

def init_linear(key, in_dim, out_dim):
    """PyTorch-style uniform(-1/sqrt(in), 1/sqrt(in)); weight stored as (in, out)."""
    kw, kb = jax.random.split(key)
    bound = 1.0 / jnp.sqrt(jnp.float32(in_dim))
    w = jax.random.uniform(kw, (in_dim, out_dim), jnp.float32, -bound, bound)
    b = jax.random.uniform(kb, (1, out_dim), jnp.float32, -bound, bound)
    return w, b


def gcn_net_reference(adj, x_cat, params):
    """Pure-JAX f32 reference of the PyTorch forward (for a loose tolerance check)."""
    (w_in, b_in) = params[0]
    convs = params[1:5]
    (wo1, bo1) = params[5]
    (wo2, bo2) = params[6]

    def single(xc):
        h = xc @ w_in + b_in
        for _ in range(DEPTH):
            for (wk, bk) in convs:
                h = jnp.maximum(h + (adj @ (h @ wk) + bk), 0.0)
        h = h @ wo1 + bo1
        h = jnp.where(h > 0, h, 0.01 * h)
        return h @ wo2 + bo2

    return jax.vmap(single)(x_cat)


if __name__ == "__main__":
    key = jax.random.PRNGKey(0)

    # --- synthetic darcy2d-style graph: 8x8 regular grid, 4-neighbour edges ---
    S = 8
    N = S * S  # 64 nodes
    ii, jj = jnp.meshgrid(jnp.arange(S), jnp.arange(S), indexing="ij")
    pos = jnp.stack([ii.reshape(-1) / (S - 1), jj.reshape(-1) / (S - 1)],
                    axis=1).astype(jnp.float32)

    src, dst = [], []
    for i in range(S):
        for j in range(S):
            u = i * S + j
            for di, dj in ((1, 0), (-1, 0), (0, 1), (0, -1)):
                ni, nj = i + di, j + dj
                if 0 <= ni < S and 0 <= nj < S:
                    src.append(u)
                    dst.append(ni * S + nj)
    edge_index = jnp.array([src, dst], dtype=jnp.int32)  # (2, 224)

    # One-time preprocessing (per graph / per model) — outside the hot path.
    adj_f32 = build_norm_adj(edge_index, N)
    adj_bf16 = adj_f32.astype(jnp.bfloat16)

    keys = jax.random.split(key, 8)
    params = [
        init_linear(keys[0], IN_WIDTH, WIDTH),      # fc_in
        init_linear(keys[1], WIDTH, WIDTH),         # conv1 (GCNConv lin + bias)
        init_linear(keys[2], WIDTH, WIDTH),         # conv2
        init_linear(keys[3], WIDTH, WIDTH),         # conv3
        init_linear(keys[4], WIDTH, WIDTH),         # conv4
        init_linear(keys[5], WIDTH, KER_WIDTH),     # fc_out1
        init_linear(keys[6], KER_WIDTH, 1),         # fc_out2
    ]
    w_packed, b_packed = pack_params(params)        # 2 packed kernel inputs

    # Per-step data: a small batch of darcy2d samples sharing the mesh.
    BATCH = 4
    x_feat = jax.random.normal(keys[7], (BATCH, N, 1), jnp.float32)          # data.x
    x_cat = jnp.concatenate([jnp.broadcast_to(pos, (BATCH, N, 2)), x_feat],
                            axis=-1)                                          # (B, N, 3)

    forward = jax.jit(gcn_net_forward)
    out = forward(adj_bf16, x_cat, w_packed, b_packed)
    jax.block_until_ready(out)

    assert out.shape == (BATCH, N, 1)
    assert bool(jnp.all(jnp.isfinite(out)))

    # Loose end-to-end check vs. the f32 reference (bf16 MXU operands drift ~1%).
    ref = gcn_net_reference(adj_f32, x_cat, params)
    scale = float(jnp.max(jnp.abs(ref))) + 1e-6
    max_err = float(jnp.max(jnp.abs(out - ref)))
    assert max_err <= 0.1 * scale, (max_err, scale)

    print("KERNEL_OK")
</pallas_src>

<mosaic_0001>
module attributes {stable_mosaic.version = 11 : i64} {
  func.func @gcn_net_kernel(%arg0: i32, %arg1: memref<64x64xbf16, #tpu.memory_space<vmem>>, %arg2: memref<1x64x3xf32, #tpu.memory_space<vmem>>, %arg3: memref<640x256xbf16, #tpu.memory_space<vmem>>, %arg4: memref<8x256xf32, #tpu.memory_space<vmem>>, %arg5: memref<1x64x128xf32, #tpu.memory_space<vmem>>) attributes {dimension_semantics = [#tpu.dimension_semantics<parallel>], iteration_bounds = array<i64: 4>, scalar_prefetch = 0 : i64, scratch_operands = 0 : i64, tpu.core_type = #tpu.core_type<tc>, window_params = [{pipeline_mode = #tpu.pipeline_mode<synchronous>, transform_indices = @transform_0, window_bounds = array<i64: 64, 64>}, {transform_indices = @transform_1, window_bounds = array<i64: 1, 64, 3>}, {pipeline_mode = #tpu.pipeline_mode<synchronous>, transform_indices = @transform_2, window_bounds = array<i64: 640, 256>}, {pipeline_mode = #tpu.pipeline_mode<synchronous>, transform_indices = @transform_3, window_bounds = array<i64: 8, 256>}, {transform_indices = @transform_4, window_bounds = array<i64: 1, 64, 128>}]} {
    %c0 = arith.constant 0 : index
    %c0_0 = arith.constant 0 : index
    %c0_1 = arith.constant 0 : index
    %0 = vector.load %arg2[%c0, %c0_0, %c0_1] : memref<1x64x3xf32, #tpu.memory_space<vmem>>, vector<1x64x3xf32>
    %1 = vector.shape_cast %0 : vector<1x64x3xf32> to vector<64x3xf32>
    %2 = arith.truncf %1 : vector<64x3xf32> to vector<64x3xbf16>
    %c0_2 = arith.constant 0 : index
    %c0_3 = arith.constant 0 : index
    %3 = vector.load %arg3[%c0_2, %c0_3] : memref<640x256xbf16, #tpu.memory_space<vmem>>, vector<3x64xbf16>
    %cst = arith.constant dense<0.000000e+00> : vector<64x64xf32>
    %4 = tpu.matmul %2, %3, %cst {dimension_numbers = #tpu.dot_dimension_numbers<[1], [0], [0], [1], [0, 0, 1, 1], [], []>} : vector<64x3xbf16>, vector<3x64xbf16>, vector<64x64xf32> -> vector<64x64xf32>
    %c0_4 = arith.constant 0 : index
    %c0_5 = arith.constant 0 : index
    %5 = vector.load %arg4[%c0_4, %c0_5] : memref<8x256xf32, #tpu.memory_space<vmem>>, vector<1x64xf32>
    %6 = vector.broadcast %5 : vector<1x64xf32> to vector<64x64xf32>
    %7 = arith.addf %4, %6 : vector<64x64xf32>
    %c64 = arith.constant 64 : index
    %c0_6 = arith.constant 0 : index
    %8 = vector.load %arg3[%c64, %c0_6] : memref<640x256xbf16, #tpu.memory_space<vmem>>, vector<64x64xbf16>
    %9 = arith.truncf %7 : vector<64x64xf32> to vector<64x64xbf16>
    %cst_7 = arith.constant dense<0.000000e+00> : vector<64x64xf32>
    %10 = tpu.matmul %9, %8, %cst_7 {dimension_numbers = #tpu.dot_dimension_numbers<[1], [0], [0], [1], [0, 0, 1, 1], [], []>} : vector<64x64xbf16>, vector<64x64xbf16>, vector<64x64xf32> -> vector<64x64xf32>
    %c0_8 = arith.constant 0 : index
    %c0_9 = arith.constant 0 : index
    %11 = vector.load %arg1[%c0_8, %c0_9] : memref<64x64xbf16, #tpu.memory_space<vmem>>, vector<64x64xbf16>
    %12 = arith.truncf %10 : vector<64x64xf32> to vector<64x64xbf16>
    %cst_10 = arith.constant dense<0.000000e+00> : vector<64x64xf32>
    %13 = tpu.matmul %11, %12, %cst_10 {dimension_numbers = #tpu.dot_dimension_numbers<[1], [0], [0], [1], [0, 0, 1, 1], [], []>} : vector<64x64xbf16>, vector<64x64xbf16>, vector<64x64xf32> -> vector<64x64xf32>
    %c1 = arith.constant 1 : index
    %c0_11 = arith.constant 0 : index
    %14 = vector.load %arg4[%c1, %c0_11] : memref<8x256xf32, #tpu.memory_space<vmem>>, vector<1x64xf32>
    %15 = vector.broadcast %14 : vector<1x64xf32> to vector<64x64xf32>
    %16 = arith.addf %13, %15 : vector<64x64xf32>
    %17 = arith.addf %7, %16 : vector<64x64xf32>
    %cst_12 = arith.constant 0.000000e+00 : f32
    %18 = vector.broadcast %cst_12 : f32 to vector<64x64xf32>
    %19 = arith.maximumf %17, %18 : vector<64x64xf32>
    %c128 = arith.constant 128 : index
    %c0_13 = arith.constant 0 : index
    %20 = vector.load %arg3[%c128, %c0_13] : memref<640x256xbf16, #tpu.memory_space<vmem>>, vector<64x64xbf16>
    %21 = arith.truncf %19 : vector<64x64xf32> to vector<64x64xbf16>
    %cst_14 = arith.constant dense<0.000000e+00> : vector<64x64xf32>
    %22 = tpu.matmul %21, %20, %cst_14 {dimension_numbers = #tpu.dot_dimension_numbers<[1], [0], [0], [1], [0, 0, 1, 1], [], []>} : vector<64x64xbf16>, vector<64x64xbf16>, vector<64x64xf32> -> vector<64x64xf32>
    %c0_15 = arith.constant 0 : index
    %c0_16 = arith.constant 0 : index
    %23 = vector.load %arg1[%c0_15, %c0_16] : memref<64x64xbf16, #tpu.memory_space<vmem>>, vector<64x64xbf16>
    %24 = arith.truncf %22 : vector<64x64xf32> to vector<64x64xbf16>
    %cst_17 = arith.constant dense<0.000000e+00> : vector<64x64xf32>
    %25 = tpu.matmul %23, %24, %cst_17 {dimension_numbers = #tpu.dot_dimension_numbers<[1], [0], [0], [1], [0, 0, 1, 1], [], []>} : vector<64x64xbf16>, vector<64x64xbf16>, vector<64x64xf32> -> vector<64x64xf32>
    %c2 = arith.constant 2 : index
    %c0_18 = arith.constant 0 : index
    %26 = vector.load %arg4[%c2, %c0_18] : memref<8x256xf32, #tpu.memory_space<vmem>>, vector<1x64xf32>
    %27 = vector.broadcast %26 : vector<1x64xf32> to vector<64x64xf32>
    %28 = arith.addf %25, %27 : vector<64x64xf32>
    %29 = arith.addf %19, %28 : vector<64x64xf32>
    %cst_19 = arith.constant 0.000000e+00 : f32
    %30 = vector.broadcast %cst_19 : f32 to vector<64x64xf32>
    %31 = arith.maximumf %29, %30 : vector<64x64xf32>
    %c192 = arith.constant 192 : index
    %c0_20 = arith.constant 0 : index
    %32 = vector.load %arg3[%c192, %c0_20] : memref<640x256xbf16, #tpu.memory_space<vmem>>, vector<64x64xbf16>
    %33 = arith.truncf %31 : vector<64x64xf32> to vector<64x64xbf16>
    %cst_21 = arith.constant dense<0.000000e+00> : vector<64x64xf32>
    %34 = tpu.matmul %33, %32, %cst_21 {dimension_numbers = #tpu.dot_dimension_numbers<[1], [0], [0], [1], [0, 0, 1, 1], [], []>} : vector<64x64xbf16>, vector<64x64xbf16>, vector<64x64xf32> -> vector<64x64xf32>
    %c0_22 = arith.constant 0 : index
    %c0_23 = arith.constant 0 : index
    %35 = vector.load %arg1[%c0_22, %c0_23] : memref<64x64xbf16, #tpu.memory_space<vmem>>, vector<64x64xbf16>
    %36 = arith.truncf %34 : vector<64x64xf32> to vector<64x64xbf16>
    %cst_24 = arith.constant dense<0.000000e+00> : vector<64x64xf32>
    %37 = tpu.matmul %35, %36, %cst_24 {dimension_numbers = #tpu.dot_dimension_numbers<[1], [0], [0], [1], [0, 0, 1, 1], [], []>} : vector<64x64xbf16>, vector<64x64xbf16>, vector<64x64xf32> -> vector<64x64xf32>
    %c3 = arith.constant 3 : index
    %c0_25 = arith.constant 0 : index
    %38 = vector.load %arg4[%c3, %c0_25] : memref<8x256xf32, #tpu.memory_space<vmem>>, vector<1x64xf32>
    %39 = vector.broadcast %38 : vector<1x64xf32> to vector<64x64xf32>
    %40 = arith.addf %37, %39 : vector<64x64xf32>
    %41 = arith.addf %31, %40 : vector<64x64xf32>
    %cst_26 = arith.constant 0.000000e+00 : f32
    %42 = vector.broadcast %cst_26 : f32 to vector<64x64xf32>
    %43 = arith.maximumf %41, %42 : vector<64x64xf32>
    %c256 = arith.constant 256 : index
    %c0_27 = arith.constant 0 : index
    %44 = vector.load %arg3[%c256, %c0_27] : memref<640x256xbf16, #tpu.memory_space<vmem>>, vector<64x64xbf16>
    %45 = arith.truncf %43 : vector<64x64xf32> to vector<64x64xbf16>
    %cst_28 = arith.constant dense<0.000000e+00> : vector<64x64xf32>
    %46 = tpu.matmul %45, %44, %cst_28 {dimension_numbers = #tpu.dot_dimension_numbers<[1], [0], [0], [1], [0, 0, 1, 1], [], []>} : vector<64x64xbf16>, vector<64x64xbf16>, vector<64x64xf32> -> vector<64x64xf32>
    %c0_29 = arith.constant 0 : index
    %c0_30 = arith.constant 0 : index
    %47 = vector.load %arg1[%c0_29, %c0_30] : memref<64x64xbf16, #tpu.memory_space<vmem>>, vector<64x64xbf16>
    %48 = arith.truncf %46 : vector<64x64xf32> to vector<64x64xbf16>
    %cst_31 = arith.constant dense<0.000000e+00> : vector<64x64xf32>
    %49 = tpu.matmul %47, %48, %cst_31 {dimension_numbers = #tpu.dot_dimension_numbers<[1], [0], [0], [1], [0, 0, 1, 1], [], []>} : vector<64x64xbf16>, vector<64x64xbf16>, vector<64x64xf32> -> vector<64x64xf32>
    %c4 = arith.constant 4 : index
    %c0_32 = arith.constant 0 : index
    %50 = vector.load %arg4[%c4, %c0_32] : memref<8x256xf32, #tpu.memory_space<vmem>>, vector<1x64xf32>
    %51 = vector.broadcast %50 : vector<1x64xf32> to vector<64x64xf32>
    %52 = arith.addf %49, %51 : vector<64x64xf32>
    %53 = arith.addf %43, %52 : vector<64x64xf32>
    %cst_33 = arith.constant 0.000000e+00 : f32
    %54 = vector.broadcast %cst_33 : f32 to vector<64x64xf32>
    %55 = arith.maximumf %53, %54 : vector<64x64xf32>
    %c64_34 = arith.constant 64 : index
    %c0_35 = arith.constant 0 : index
    %56 = vector.load %arg3[%c64_34, %c0_35] : memref<640x256xbf16, #tpu.memory_space<vmem>>, vector<64x64xbf16>
    %57 = arith.truncf %55 : vector<64x64xf32> to vector<64x64xbf16>
    %cst_36 = arith.constant dense<0.000000e+00> : vector<64x64xf32>
    %58 = tpu.matmul %57, %56, %cst_36 {dimension_numbers = #tpu.dot_dimension_numbers<[1], [0], [0], [1], [0, 0, 1, 1], [], []>} : vector<64x64xbf16>, vector<64x64xbf16>, vector<64x64xf32> -> vector<64x64xf32>
    %c0_37 = arith.constant 0 : index
    %c0_38 = arith.constant 0 : index
    %59 = vector.load %arg1[%c0_37, %c0_38] : memref<64x64xbf16, #tpu.memory_space<vmem>>, vector<64x64xbf16>
    %60 = arith.truncf %58 : vector<64x64xf32> to vector<64x64xbf16>
    %cst_39 = arith.constant dense<0.000000e+00> : vector<64x64xf32>
    %61 = tpu.matmul %59, %60, %cst_39 {dimension_numbers = #tpu.dot_dimension_numbers<[1], [0], [0], [1], [0, 0, 1, 1], [], []>} : vector<64x64xbf16>, vector<64x64xbf16>, vector<64x64xf32> -> vector<64x64xf32>
    %c1_40 = arith.constant 1 : index
    %c0_41 = arith.constant 0 : index
    %62 = vector.load %arg4[%c1_40, %c0_41] : memref<8x256xf32, #tpu.memory_space<vmem>>, vector<1x64xf32>
    %63 = vector.broadcast %62 : vector<1x64xf32> to vector<64x64xf32>
    %64 = arith.addf %61, %63 : vector<64x64xf32>
    %65 = arith.addf %55, %64 : vector<64x64xf32>
    %cst_42 = arith.constant 0.000000e+00 : f32
    %66 = vector.broadcast %cst_42 : f32 to vector<64x64xf32>
    %67 = arith.maximumf %65, %66 : vector<64x64xf32>
    %c128_43 = arith.constant 128 : index
    %c0_44 = arith.constant 0 : index
    %68 = vector.load %arg3[%c128_43, %c0_44] : memref<640x256xbf16, #tpu.memory_space<vmem>>, vector<64x64xbf16>
    %69 = arith.truncf %67 : vector<64x64xf32> to vector<64x64xbf16>
    %cst_45 = arith.constant dense<0.000000e+00> : vector<64x64xf32>
    %70 = tpu.matmul %69, %68, %cst_45 {dimension_numbers = #tpu.dot_dimension_numbers<[1], [0], [0], [1], [0, 0, 1, 1], [], []>} : vector<64x64xbf16>, vector<64x64xbf16>, vector<64x64xf32> -> vector<64x64xf32>
    %c0_46 = arith.constant 0 : index
    %c0_47 = arith.constant 0 : index
    %71 = vector.load %arg1[%c0_46, %c0_47] : memref<64x64xbf16, #tpu.memory_space<vmem>>, vector<64x64xbf16>
    %72 = arith.truncf %70 : vector<64x64xf32> to vector<64x64xbf16>
    %cst_48 = arith.constant dense<0.000000e+00> : vector<64x64xf32>
    %73 = tpu.matmul %71, %72, %cst_48 {dimension_numbers = #tpu.dot_dimension_numbers<[1], [0], [0], [1], [0, 0, 1, 1], [], []>} : vector<64x64xbf16>, vector<64x64xbf16>, vector<64x64xf32> -> vector<64x64xf32>
    %c2_49 = arith.constant 2 : index
    %c0_50 = arith.constant 0 : index
    %74 = vector.load %arg4[%c2_49, %c0_50] : memref<8x256xf32, #tpu.memory_space<vmem>>, vector<1x64xf32>
    %75 = vector.broadcast %74 : vector<1x64xf32> to vector<64x64xf32>
    %76 = arith.addf %73, %75 : vector<64x64xf32>
    %77 = arith.addf %67, %76 : vector<64x64xf32>
    %cst_51 = arith.constant 0.000000e+00 : f32
    %78 = vector.broadcast %cst_51 : f32 to vector<64x64xf32>
    %79 = arith.maximumf %77, %78 : vector<64x64xf32>
    %c192_52 = arith.constant 192 : index
    %c0_53 = arith.constant 0 : index
    %80 = vector.load %arg3[%c192_52, %c0_53] : memref<640x256xbf16, #tpu.memory_space<vmem>>, vector<64x64xbf16>
    %81 = arith.truncf %79 : vector<64x64xf32> to vector<64x64xbf16>
    %cst_54 = arith.constant dense<0.000000e+00> : vector<64x64xf32>
    %82 = tpu.matmul %81, %80, %cst_54 {dimension_numbers = #tpu.dot_dimension_numbers<[1], [0], [0], [1], [0, 0, 1, 1], [], []>} : vector<64x64xbf16>, vector<64x64xbf16>, vector<64x64xf32> -> vector<64x64xf32>
    %c0_55 = arith.constant 0 : index
    %c0_56 = arith.constant 0 : index
    %83 = vector.load %arg1[%c0_55, %c0_56] : memref<64x64xbf16, #tpu.memory_space<vmem>>, vector<64x64xbf16>
    %84 = arith.truncf %82 : vector<64x64xf32> to vector<64x64xbf16>
    %cst_57 = arith.constant dense<0.000000e+00> : vector<64x64xf32>
    %85 = tpu.matmul %83, %84, %cst_57 {dimension_numbers = #tpu.dot_dimension_numbers<[1], [0], [0], [1], [0, 0, 1, 1], [], []>} : vector<64x64xbf16>, vector<64x64xbf16>, vector<64x64xf32> -> vector<64x64xf32>
    %c3_58 = arith.constant 3 : index
    %c0_59 = arith.constant 0 : index
    %86 = vector.load %arg4[%c3_58, %c0_59] : memref<8x256xf32, #tpu.memory_space<vmem>>, vector<1x64xf32>
    %87 = vector.broadcast %86 : vector<1x64xf32> to vector<64x64xf32>
    %88 = arith.addf %85, %87 : vector<64x64xf32>
    %89 = arith.addf %79, %88 : vector<64x64xf32>
    %cst_60 = arith.constant 0.000000e+00 : f32
    %90 = vector.broadcast %cst_60 : f32 to vector<64x64xf32>
    %91 = arith.maximumf %89, %90 : vector<64x64xf32>
    %c256_61 = arith.constant 256 : index
    %c0_62 = arith.constant 0 : index
    %92 = vector.load %arg3[%c256_61, %c0_62] : memref<640x256xbf16, #tpu.memory_space<vmem>>, vector<64x64xbf16>
    %93 = arith.truncf %91 : vector<64x64xf32> to vector<64x64xbf16>
    %cst_63 = arith.constant dense<0.000000e+00> : vector<64x64xf32>
    %94 = tpu.matmul %93, %92, %cst_63 {dimension_numbers = #tpu.dot_dimension_numbers<[1], [0], [0], [1], [0, 0, 1, 1], [], []>} : vector<64x64xbf16>, vector<64x64xbf16>, vector<64x64xf32> -> vector<64x64xf32>
    %c0_64 = arith.constant 0 : index
    %c0_65 = arith.constant 0 : index
    %95 = vector.load %arg1[%c0_64, %c0_65] : memref<64x64xbf16, #tpu.memory_space<vmem>>, vector<64x64xbf16>
    %96 = arith.truncf %94 : vector<64x64xf32> to vector<64x64xbf16>
    %cst_66 = arith.constant dense<0.000000e+00> : vector<64x64xf32>
    %97 = tpu.matmul %95, %96, %cst_66 {dimension_numbers = #tpu.dot_dimension_numbers<[1], [0], [0], [1], [0, 0, 1, 1], [], []>} : vector<64x64xbf16>, vector<64x64xbf16>, vector<64x64xf32> -> vector<64x64xf32>
    %c4_67 = arith.constant 4 : index
    %c0_68 = arith.constant 0 : index
    %98 = vector.load %arg4[%c4_67, %c0_68] : memref<8x256xf32, #tpu.memory_space<vmem>>, vector<1x64xf32>
    %99 = vector.broadcast %98 : vector<1x64xf32> to vector<64x64xf32>
    %100 = arith.addf %97, %99 : vector<64x64xf32>
    %101 = arith.addf %91, %100 : vector<64x64xf32>
    %cst_69 = arith.constant 0.000000e+00 : f32
    %102 = vector.broadcast %cst_69 : f32 to vector<64x64xf32>
    %103 = arith.maximumf %101, %102 : vector<64x64xf32>
    %c64_70 = arith.constant 64 : index
    %c0_71 = arith.constant 0 : index
    %104 = vector.load %arg3[%c64_70, %c0_71] : memref<640x256xbf16, #tpu.memory_space<vmem>>, vector<64x64xbf16>
    %105 = arith.truncf %103 : vector<64x64xf32> to vector<64x64xbf16>
    %cst_72 = arith.constant dense<0.000000e+00> : vector<64x64xf32>
    %106 = tpu.matmul %105, %104, %cst_72 {dimension_numbers = #tpu.dot_dimension_numbers<[1], [0], [0], [1], [0, 0, 1, 1], [], []>} : vector<64x64xbf16>, vector<64x64xbf16>, vector<64x64xf32> -> vector<64x64xf32>
    %c0_73 = arith.constant 0 : index
    %c0_74 = arith.constant 0 : index
    %107 = vector.load %arg1[%c0_73, %c0_74] : memref<64x64xbf16, #tpu.memory_space<vmem>>, vector<64x64xbf16>
    %108 = arith.truncf %106 : vector<64x64xf32> to vector<64x64xbf16>
    %cst_75 = arith.constant dense<0.000000e+00> : vector<64x64xf32>
    %109 = tpu.matmul %107, %108, %cst_75 {dimension_numbers = #tpu.dot_dimension_numbers<[1], [0], [0], [1], [0, 0, 1, 1], [], []>} : vector<64x64xbf16>, vector<64x64xbf16>, vector<64x64xf32> -> vector<64x64xf32>
    %c1_76 = arith.constant 1 : index
    %c0_77 = arith.constant 0 : index
    %110 = vector.load %arg4[%c1_76, %c0_77] : memref<8x256xf32, #tpu.memory_space<vmem>>, vector<1x64xf32>
    %111 = vector.broadcast %110 : vector<1x64xf32> to vector<64x64xf32>
    %112 = arith.addf %109, %111 : vector<64x64xf32>
    %113 = arith.addf %103, %112 : vector<64x64xf32>
    %cst_78 = arith.constant 0.000000e+00 : f32
    %114 = vector.broadcast %cst_78 : f32 to vector<64x64xf32>
    %115 = arith.maximumf %113, %114 : vector<64x64xf32>
    %c128_79 = arith.constant 128 : index
    %c0_80 = arith.constant 0 : index
    %116 = vector.load %arg3[%c128_79, %c0_80] : memref<640x256xbf16, #tpu.memory_space<vmem>>, vector<64x64xbf16>
    %117 = arith.truncf %115 : vector<64x64xf32> to vector<64x64xbf16>
    %cst_81 = arith.constant dense<0.000000e+00> : vector<64x64xf32>
    %118 = tpu.matmul %117, %116, %cst_81 {dimension_numbers = #tpu.dot_dimension_numbers<[1], [0], [0], [1], [0, 0, 1, 1], [], []>} : vector<64x64xbf16>, vector<64x64xbf16>, vector<64x64xf32> -> vector<64x64xf32>
    %c0_82 = arith.constant 0 : index
    %c0_83 = arith.constant 0 : index
    %119 = vector.load %arg1[%c0_82, %c0_83] : memref<64x64xbf16, #tpu.memory_space<vmem>>, vector<64x64xbf16>
    %120 = arith.truncf %118 : vector<64x64xf32> to vector<64x64xbf16>
    %cst_84 = arith.constant dense<0.000000e+00> : vector<64x64xf32>
    %121 = tpu.matmul %119, %120, %cst_84 {dimension_numbers = #tpu.dot_dimension_numbers<[1], [0], [0], [1], [0, 0, 1, 1], [], []>} : vector<64x64xbf16>, vector<64x64xbf16>, vector<64x64xf32> -> vector<64x64xf32>
    %c2_85 = arith.constant 2 : index
    %c0_86 = arith.constant 0 : index
    %122 = vector.load %arg4[%c2_85, %c0_86] : memref<8x256xf32, #tpu.memory_space<vmem>>, vector<1x64xf32>
    %123 = vector.broadcast %122 : vector<1x64xf32> to vector<64x64xf32>
    %124 = arith.addf %121, %123 : vector<64x64xf32>
    %125 = arith.addf %115, %124 : vector<64x64xf32>
    %cst_87 = arith.constant 0.000000e+00 : f32
    %126 = vector.broadcast %cst_87 : f32 to vector<64x64xf32>
    %127 = arith.maximumf %125, %126 : vector<64x64xf32>
    %c192_88 = arith.constant 192 : index
    %c0_89 = arith.constant 0 : index
    %128 = vector.load %arg3[%c192_88, %c0_89] : memref<640x256xbf16, #tpu.memory_space<vmem>>, vector<64x64xbf16>
    %129 = arith.truncf %127 : vector<64x64xf32> to vector<64x64xbf16>
    %cst_90 = arith.constant dense<0.000000e+00> : vector<64x64xf32>
    %130 = tpu.matmul %129, %128, %cst_90 {dimension_numbers = #tpu.dot_dimension_numbers<[1], [0], [0], [1], [0, 0, 1, 1], [], []>} : vector<64x64xbf16>, vector<64x64xbf16>, vector<64x64xf32> -> vector<64x64xf32>
    %c0_91 = arith.constant 0 : index
    %c0_92 = arith.constant 0 : index
    %131 = vector.load %arg1[%c0_91, %c0_92] : memref<64x64xbf16, #tpu.memory_space<vmem>>, vector<64x64xbf16>
    %132 = arith.truncf %130 : vector<64x64xf32> to vector<64x64xbf16>
    %cst_93 = arith.constant dense<0.000000e+00> : vector<64x64xf32>
    %133 = tpu.matmul %131, %132, %cst_93 {dimension_numbers = #tpu.dot_dimension_numbers<[1], [0], [0], [1], [0, 0, 1, 1], [], []>} : vector<64x64xbf16>, vector<64x64xbf16>, vector<64x64xf32> -> vector<64x64xf32>
    %c3_94 = arith.constant 3 : index
    %c0_95 = arith.constant 0 : index
    %134 = vector.load %arg4[%c3_94, %c0_95] : memref<8x256xf32, #tpu.memory_space<vmem>>, vector<1x64xf32>
    %135 = vector.broadcast %134 : vector<1x64xf32> to vector<64x64xf32>
    %136 = arith.addf %133, %135 : vector<64x64xf32>
    %137 = arith.addf %127, %136 : vector<64x64xf32>
    %cst_96 = arith.constant 0.000000e+00 : f32
    %138 = vector.broadcast %cst_96 : f32 to vector<64x64xf32>
    %139 = arith.maximumf %137, %138 : vector<64x64xf32>
    %c256_97 = arith.constant 256 : index
    %c0_98 = arith.constant 0 : index
    %140 = vector.load %arg3[%c256_97, %c0_98] : memref<640x256xbf16, #tpu.memory_space<vmem>>, vector<64x64xbf16>
    %141 = arith.truncf %139 : vector<64x64xf32> to vector<64x64xbf16>
    %cst_99 = arith.constant dense<0.000000e+00> : vector<64x64xf32>
    %142 = tpu.matmul %141, %140, %cst_99 {dimension_numbers = #tpu.dot_dimension_numbers<[1], [0], [0], [1], [0, 0, 1, 1], [], []>} : vector<64x64xbf16>, vector<64x64xbf16>, vector<64x64xf32> -> vector<64x64xf32>
    %c0_100 = arith.constant 0 : index
    %c0_101 = arith.constant 0 : index
    %143 = vector.load %arg1[%c0_100, %c0_101] : memref<64x64xbf16, #tpu.memory_space<vmem>>, vector<64x64xbf16>
    %144 = arith.truncf %142 : vector<64x64xf32> to vector<64x64xbf16>
    %cst_102 = arith.constant dense<0.000000e+00> : vector<64x64xf32>
    %145 = tpu.matmul %143, %144, %cst_102 {dimension_numbers = #tpu.dot_dimension_numbers<[1], [0], [0], [1], [0, 0, 1, 1], [], []>} : vector<64x64xbf16>, vector<64x64xbf16>, vector<64x64xf32> -> vector<64x64xf32>
    %c4_103 = arith.constant 4 : index
    %c0_104 = arith.constant 0 : index
    %146 = vector.load %arg4[%c4_103, %c0_104] : memref<8x256xf32, #tpu.memory_space<vmem>>, vector<1x64xf32>
    %147 = vector.broadcast %146 : vector<1x64xf32> to vector<64x64xf32>
    %148 = arith.addf %145, %147 : vector<64x64xf32>
    %149 = arith.addf %139, %148 : vector<64x64xf32>
    %cst_105 = arith.constant 0.000000e+00 : f32
    %150 = vector.broadcast %cst_105 : f32 to vector<64x64xf32>
    %151 = arith.maximumf %149, %150 : vector<64x64xf32>
    %c64_106 = arith.constant 64 : index
    %c0_107 = arith.constant 0 : index
    %152 = vector.load %arg3[%c64_106, %c0_107] : memref<640x256xbf16, #tpu.memory_space<vmem>>, vector<64x64xbf16>
    %153 = arith.truncf %151 : vector<64x64xf32> to vector<64x64xbf16>
    %cst_108 = arith.constant dense<0.000000e+00> : vector<64x64xf32>
    %154 = tpu.matmul %153, %152, %cst_108 {dimension_numbers = #tpu.dot_dimension_numbers<[1], [0], [0], [1], [0, 0, 1, 1], [], []>} : vector<64x64xbf16>, vector<64x64xbf16>, vector<64x64xf32> -> vector<64x64xf32>
    %c0_109 = arith.constant 0 : index
    %c0_110 = arith.constant 0 : index
    %155 = vector.load %arg1[%c0_109, %c0_110] : memref<64x64xbf16, #tpu.memory_space<vmem>>, vector<64x64xbf16>
    %156 = arith.truncf %154 : vector<64x64xf32> to vector<64x64xbf16>
    %cst_111 = arith.constant dense<0.000000e+00> : vector<64x64xf32>
    %157 = tpu.matmul %155, %156, %cst_111 {dimension_numbers = #tpu.dot_dimension_numbers<[1], [0], [0], [1], [0, 0, 1, 1], [], []>} : vector<64x64xbf16>, vector<64x64xbf16>, vector<64x64xf32> -> vector<64x64xf32>
    %c1_112 = arith.constant 1 : index
    %c0_113 = arith.constant 0 : index
    %158 = vector.load %arg4[%c1_112, %c0_113] : memref<8x256xf32, #tpu.memory_space<vmem>>, vector<1x64xf32>
    %159 = vector.broadcast %158 : vector<1x64xf32> to vector<64x64xf32>
    %160 = arith.addf %157, %159 : vector<64x64xf32>
    %161 = arith.addf %151, %160 : vector<64x64xf32>
    %cst_114 = arith.constant 0.000000e+00 : f32
    %162 = vector.broadcast %cst_114 : f32 to vector<64x64xf32>
    %163 = arith.maximumf %161, %162 : vector<64x64xf32>
    %c128_115 = arith.constant 128 : index
    %c0_116 = arith.constant 0 : index
    %164 = vector.load %arg3[%c128_115, %c0_116] : memref<640x256xbf16, #tpu.memory_space<vmem>>, vector<64x64xbf16>
    %165 = arith.truncf %163 : vector<64x64xf32> to vector<64x64xbf16>
    %cst_117 = arith.constant dense<0.000000e+00> : vector<64x64xf32>
    %166 = tpu.matmul %165, %164, %cst_117 {dimension_numbers = #tpu.dot_dimension_numbers<[1], [0], [0], [1], [0, 0, 1, 1], [], []>} : vector<64x64xbf16>, vector<64x64xbf16>, vector<64x64xf32> -> vector<64x64xf32>
    %c0_118 = arith.constant 0 : index
    %c0_119 = arith.constant 0 : index
    %167 = vector.load %arg1[%c0_118, %c0_119] : memref<64x64xbf16, #tpu.memory_space<vmem>>, vector<64x64xbf16>
    %168 = arith.truncf %166 : vector<64x64xf32> to vector<64x64xbf16>
    %cst_120 = arith.constant dense<0.000000e+00> : vector<64x64xf32>
    %169 = tpu.matmul %167, %168, %cst_120 {dimension_numbers = #tpu.dot_dimension_numbers<[1], [0], [0], [1], [0, 0, 1, 1], [], []>} : vector<64x64xbf16>, vector<64x64xbf16>, vector<64x64xf32> -> vector<64x64xf32>
    %c2_121 = arith.constant 2 : index
    %c0_122 = arith.constant 0 : index
    %170 = vector.load %arg4[%c2_121, %c0_122] : memref<8x256xf32, #tpu.memory_space<vmem>>, vector<1x64xf32>
    %171 = vector.broadcast %170 : vector<1x64xf32> to vector<64x64xf32>
    %172 = arith.addf %169, %171 : vector<64x64xf32>
    %173 = arith.addf %163, %172 : vector<64x64xf32>
    %cst_123 = arith.constant 0.000000e+00 : f32
    %174 = vector.broadcast %cst_123 : f32 to vector<64x64xf32>
    %175 = arith.maximumf %173, %174 : vector<64x64xf32>
    %c192_124 = arith.constant 192 : index
    %c0_125 = arith.constant 0 : index
    %176 = vector.load %arg3[%c192_124, %c0_125] : memref<640x256xbf16, #tpu.memory_space<vmem>>, vector<64x64xbf16>
    %177 = arith.truncf %175 : vector<64x64xf32> to vector<64x64xbf16>
    %cst_126 = arith.constant dense<0.000000e+00> : vector<64x64xf32>
    %178 = tpu.matmul %177, %176, %cst_126 {dimension_numbers = #tpu.dot_dimension_numbers<[1], [0], [0], [1], [0, 0, 1, 1], [], []>} : vector<64x64xbf16>, vector<64x64xbf16>, vector<64x64xf32> -> vector<64x64xf32>
    %c0_127 = arith.constant 0 : index
    %c0_128 = arith.constant 0 : index
    %179 = vector.load %arg1[%c0_127, %c0_128] : memref<64x64xbf16, #tpu.memory_space<vmem>>, vector<64x64xbf16>
    %180 = arith.truncf %178 : vector<64x64xf32> to vector<64x64xbf16>
    %cst_129 = arith.constant dense<0.000000e+00> : vector<64x64xf32>
    %181 = tpu.matmul %179, %180, %cst_129 {dimension_numbers = #tpu.dot_dimension_numbers<[1], [0], [0], [1], [0, 0, 1, 1], [], []>} : vector<64x64xbf16>, vector<64x64xbf16>, vector<64x64xf32> -> vector<64x64xf32>
    %c3_130 = arith.constant 3 : index
    %c0_131 = arith.constant 0 : index
    %182 = vector.load %arg4[%c3_130, %c0_131] : memref<8x256xf32, #tpu.memory_space<vmem>>, vector<1x64xf32>
    %183 = vector.broadcast %182 : vector<1x64xf32> to vector<64x64xf32>
    %184 = arith.addf %181, %183 : vector<64x64xf32>
    %185 = arith.addf %175, %184 : vector<64x64xf32>
    %cst_132 = arith.constant 0.000000e+00 : f32
    %186 = vector.broadcast %cst_132 : f32 to vector<64x64xf32>
    %187 = arith.maximumf %185, %186 : vector<64x64xf32>
    %c256_133 = arith.constant 256 : index
    %c0_134 = arith.constant 0 : index
    %188 = vector.load %arg3[%c256_133, %c0_134] : memref<640x256xbf16, #tpu.memory_space<vmem>>, vector<64x64xbf16>
    %189 = arith.truncf %187 : vector<64x64xf32> to vector<64x64xbf16>
    %cst_135 = arith.constant dense<0.000000e+00> : vector<64x64xf32>
    %190 = tpu.matmul %189, %188, %cst_135 {dimension_numbers = #tpu.dot_dimension_numbers<[1], [0], [0], [1], [0, 0, 1, 1], [], []>} : vector<64x64xbf16>, vector<64x64xbf16>, vector<64x64xf32> -> vector<64x64xf32>
    %c0_136 = arith.constant 0 : index
    %c0_137 = arith.constant 0 : index
    %191 = vector.load %arg1[%c0_136, %c0_137] : memref<64x64xbf16, #tpu.memory_space<vmem>>, vector<64x64xbf16>
    %192 = arith.truncf %190 : vector<64x64xf32> to vector<64x64xbf16>
    %cst_138 = arith.constant dense<0.000000e+00> : vector<64x64xf32>
    %193 = tpu.matmul %191, %192, %cst_138 {dimension_numbers = #tpu.dot_dimension_numbers<[1], [0], [0], [1], [0, 0, 1, 1], [], []>} : vector<64x64xbf16>, vector<64x64xbf16>, vector<64x64xf32> -> vector<64x64xf32>
    %c4_139 = arith.constant 4 : index
    %c0_140 = arith.constant 0 : index
    %194 = vector.load %arg4[%c4_139, %c0_140] : memref<8x256xf32, #tpu.memory_space<vmem>>, vector<1x64xf32>
    %195 = vector.broadcast %194 : vector<1x64xf32> to vector<64x64xf32>
    %196 = arith.addf %193, %195 : vector<64x64xf32>
    %197 = arith.addf %187, %196 : vector<64x64xf32>
    %cst_141 = arith.constant 0.000000e+00 : f32
    %198 = vector.broadcast %cst_141 : f32 to vector<64x64xf32>
    %199 = arith.maximumf %197, %198 : vector<64x64xf32>
    %200 = arith.truncf %199 : vector<64x64xf32> to vector<64x64xbf16>
    %c320 = arith.constant 320 : index
    %c0_142 = arith.constant 0 : index
    %201 = vector.load %arg3[%c320, %c0_142] : memref<640x256xbf16, #tpu.memory_space<vmem>>, vector<64x256xbf16>
    %cst_143 = arith.constant dense<0.000000e+00> : vector<64x256xf32>
    %202 = tpu.matmul %200, %201, %cst_143 {dimension_numbers = #tpu.dot_dimension_numbers<[1], [0], [0], [1], [0, 0, 1, 1], [], []>} : vector<64x64xbf16>, vector<64x256xbf16>, vector<64x256xf32> -> vector<64x256xf32>
    %c5 = arith.constant 5 : index
    %c0_144 = arith.constant 0 : index
    %203 = vector.load %arg4[%c5, %c0_144] : memref<8x256xf32, #tpu.memory_space<vmem>>, vector<1x256xf32>
    %204 = vector.broadcast %203 : vector<1x256xf32> to vector<64x256xf32>
    %205 = arith.addf %202, %204 : vector<64x256xf32>
    %cst_145 = arith.constant 0.000000e+00 : f32
    %206 = vector.broadcast %cst_145 : f32 to vector<64x256xf32>
    %207 = arith.cmpf ogt, %205, %206 : vector<64x256xf32>
    %cst_146 = arith.constant 0.00999999977 : f32
    %208 = vector.broadcast %cst_146 : f32 to vector<64x256xf32>
    %209 = arith.mulf %208, %205 : vector<64x256xf32>
    %210 = arith.select %207, %205, %209 : vector<64x256xi1>, vector<64x256xf32>
    %211 = arith.truncf %210 : vector<64x256xf32> to vector<64x256xbf16>
    %c384 = arith.constant 384 : index
    %c0_147 = arith.constant 0 : index
    %212 = vector.load %arg3[%c384, %c0_147] : memref<640x256xbf16, #tpu.memory_space<vmem>>, vector<256x128xbf16>
    %cst_148 = arith.constant dense<0.000000e+00> : vector<64x128xf32>
    %213 = tpu.matmul %211, %212, %cst_148 {dimension_numbers = #tpu.dot_dimension_numbers<[1], [0], [0], [1], [0, 0, 1, 1], [], []>} : vector<64x256xbf16>, vector<256x128xbf16>, vector<64x128xf32> -> vector<64x128xf32>
    %c6 = arith.constant 6 : index
    %c0_149 = arith.constant 0 : index
    %214 = vector.load %arg4[%c6, %c0_149] : memref<8x256xf32, #tpu.memory_space<vmem>>, vector<1x128xf32>
    %215 = vector.broadcast %214 : vector<1x128xf32> to vector<64x128xf32>
    %216 = arith.addf %213, %215 : vector<64x128xf32>
    %c0_150 = arith.constant 0 : index
    %c0_151 = arith.constant 0 : index
    %c0_152 = arith.constant 0 : index
    %217 = vector.load %arg5[%c0_150, %c0_151, %c0_152] : memref<1x64x128xf32, #tpu.memory_space<vmem>>, vector<1x64x128xf32>
    %218 = vector.shape_cast %217 : vector<1x64x128xf32> to vector<64x128xf32>
    %219 = vector.shape_cast %216 : vector<64x128xf32> to vector<1x64x128xf32>
    tpu.vector_store %arg5[%c0_150, %c0_151, %c0_152], %219 {strides = array<i32>} : memref<1x64x128xf32, #tpu.memory_space<vmem>>, vector<1x64x128xf32>,
    return
  }
  func.func @transform_0(%arg0: i32) -> (i32, i32) {
    %c0_i32 = arith.constant 0 : i32
    %c0_i32_0 = arith.constant 0 : i32
    %c0_i32_1 = arith.constant 0 : i32
    return %c0_i32, %c0_i32_0 : i32, i32
  }
  func.func @transform_1(%arg0: i32) -> (i32, i32, i32) {
    %c0_i32 = arith.constant 0 : i32
    %c0_i32_0 = arith.constant 0 : i32
    %c0_i32_1 = arith.constant 0 : i32
    return %arg0, %c0_i32, %c0_i32_0 : i32, i32, i32
  }
  func.func @transform_2(%arg0: i32) -> (i32, i32) {
    %c0_i32 = arith.constant 0 : i32
    %c0_i32_0 = arith.constant 0 : i32
    %c0_i32_1 = arith.constant 0 : i32
    return %c0_i32, %c0_i32_0 : i32, i32
  }
  func.func @transform_3(%arg0: i32) -> (i32, i32) {
    %c0_i32 = arith.constant 0 : i32
    %c0_i32_0 = arith.constant 0 : i32
    %c0_i32_1 = arith.constant 0 : i32
    return %c0_i32, %c0_i32_0 : i32, i32
  }
  func.func @transform_4(%arg0: i32) -> (i32, i32, i32) {
    %c0_i32 = arith.constant 0 : i32
    %c0_i32_0 = arith.constant 0 : i32
    %c0_i32_1 = arith.constant 0 : i32
    return %arg0, %c0_i32, %c0_i32_0 : i32, i32, i32
  }
}

</mosaic_0001>

<bundles_post_ra>
// kernel: gcn_net_forward.1
= control target key start
LH: loop header
LB: loop body
LE: loop exit
PB: predicated region body
PF: predicated region fallthrough
CT: control target
= control target key end

     0   :  { %9 = vsyncpa [#allocation3], 0  ;;  %s4820_s15 = smov 0   ;;  %s6380_s0 = inlined_call_operand.vmem [shape: bf16[64,64], index: 0, kind: input, shape index: {}]   ;;  %s6381_s1 = inlined_call_operand.vmem [shape: f32[4,64,3], index: 1, kind: input, shape index: {}]   ;;  %s6382_s2 = inlined_call_operand.hbm [shape: bf16[640,256], index: 2, kind: input, shape index: {}]   ;;  %s6383_s3 = inlined_call_operand.vmem [shape: f32[8,256], index: 3, kind: input, shape index: {}]   ;;  %s6384_s4 = inlined_call_operand.vmem [shape: f32[4,64,128], index: 4, kind: output, shape index: {}]  }
   0x1 LB: > { %s4826_s16 = sadd.s32 4294967295, %s4788_s15   ;;  %p3619_p0 = scmp.ge.s32.totalorder %s4788_s15, 1  ;;  %s4788_s15 = sphi %s4820_s15, %s15_s15  }
   0x2   : > { %p135_p1 = scmp.lt.s32.totalorder %s4788_s15, 5  ;;  %s4790_s17 = smov [#allocation2]  }
   0x3   : > { %s150_s18 = sshll.u32 %s4790_s17, 4  ;;  %p6385_p3 = scmp.eq.s32.totalorder %s4826_s16, 0  ;;  %s151_s18 = int_to_ptr.vmem [resolvable:$true] %s150_s18 }
   0x4   : > { %p4830_p2 = pnand %p3619_p0, %p135_p1  ;;  %s4750_s23 = scalar_lea.hbm %s6382_s2, 10240 }
   0x5   : > { %p4751_p6 = scmp.ne.s32.totalorder %s6382_s2, %s4750_s23  ;;  %p4757_p10 = scmp.lt.u32.totalorder %s4750_s23, %s6382_s2 }
   0x6   : > { %s6387_s19 = scalar_select %p4830_p2, 1, 0 }
   0x7   : > { %p4656_p4 = pneg %p4830_p2 }
   0x9   : > { %p4839_p5 = pnand %p6385_p3, %p4656_p4 }
   0xb   : > { %p4752_p7 = pneg %p4839_p5 }
   0xd   : > { %p4753_p8 = pnand %p4752_p7, %p4751_p6 }
   0xf   : > { %p4754_p9 = pneg %p4753_p8 }
  0x11   : > { %p4759_p11 = pnand %p4757_p10, %p4754_p9 }
  0x13   : > { %4762 = shalt.err (!%p4759_p11)
}
  0x14   : > { %s4763_s28 = scalar_lea.vmem %s151_s18, 10240  ;;  %p4771_p1 = scmp.lt.s32.totalorder %s151_s18, %s151_s18 }
  0x15   : > { %p4764_p12 = scmp.ne.s32.totalorder %s151_s18, %s4763_s28  ;;  %p4772_p4 = scmp.lt.s32.totalorder %s4763_s28, %s4763_s28 }
  0x17   : > { %p4766_p13 = pnand %p4764_p12, %p4752_p7  ;;  %p4773_p3 = por %p4772_p4, %p4771_p1 }
  0x19   : > { %p4767_p0 = pneg %p4766_p13 }
  0x1b   : > { %p4774_p2 = pnand %p4773_p3, %p4767_p0 }
  0x1d   : > { %4777 = shalt.err (!%p4774_p2)
}
  0x1e   : > { %s4791_s29 = smov 128   ;;  %s4792_s30 = smov 8  }
  0x1f   : > { %4659 = dma.hbm_to_vmem [thread:$0]  (!%p4839_p5), %s6382_s2, 10240, %s151_s18, [#allocation3], %s4791_s29, %s4791_s29, %s4792_s30  }
  0x20   : > { %p6389_p6 = scmp.ne.s32.totalorder %s6387_s19, 0 }
  0x21   : > { %p6390_p8 = scmp.eq.s32.totalorder (!%p6389_p6), %s4826_s16, 0 }
  0x22   : > { %177 = sbr.rel (%p6389_p6) target bundleno = 8049 (0x1f71), region = 36 }
  0x29   : > { %4783 = dma.done.wait (%p6390_p8), [#allocation3], 10240   ;;  %p6391_p7 = pmov %p6390_p8 }
  0x2a   : > { %vm241_vm0 = vcmask 1040384   ;;  %p203_p2 = scmp.lt.s32.totalorder %s4826_s16, 3  ;;  %vm242_vm1 = vcmask 1041408   ;;  %v4793_v0 = vmov 65535   ;;  %v226_v3 = vld [vmem:[#allocation2] sm:$0x3] }
  0x2b   : > { %4785 = vsyncadd (%p6391_p7), [#allocation3], 4294957056  ;;  %v243_v1 = vsel %vm241_vm0, 4294967295, %v4793_v0  ;;  %vm228_vm2 = vcmask 23552   ;;  %v4876_v13 = vld [vmem:[#allocation2 + $0x40] ss:$8 sps:$4 sm:$0xff]  }
  0x2c   : > { %s6393_s16 = smov (!%p203_p2, %s4826_s16), 3  ;;  %v244_v2 = vsel %vm242_vm1, %v243_v1, 0  ;;  %v4878_v15 = vld [vmem:[#allocation2 + $0x50] ss:$8 sps:$4 sm:$0xff]   ;;  %4124 = vmatprep.subr.bf16.mxu1 %v4876_v13  ;;  %v4887_v19 = vld [vmem:[#allocation2 + $0x60] ss:$8 sps:$4 sm:$0xff]  }
  0x2d   : > { %s3811_s7 = sshll.u32 %s6393_s16, 6  ;;  %v246_v6 = vand.u32 %v244_v2, %v226_v3  ;;  %4125 = vmatpush3.bf16.msra.mxu1 %v4876_v13  ;;  %v4891_v20 = vld [vmem:[#allocation2 + $0x70] ss:$8 sps:$4 sm:$0xff]   ;;  %v227_v22 = vld [vmem:[%s6383_s3] ss:$0 sm:$0xff]  ;;  %vm349_vm3 = vcmask 523264  }
  0x2e   : > { %s207_s10 = scalar_lea.vmem %s6381_s1, %s3811_s7  ;;  %4126 = vmatprep.subr.bf16.mxu1 %v4878_v15  ;;  %v4929_v42 = vld [vmem:[%s6380_s0] sm:$0xff]   ;;  %v4940_v56 = vld [vmem:[%s6380_s0 + $0x8] sm:$0xff]   ;;  %v4945_v57 = vld [vmem:[%s6380_s0 + $0x10] sm:$0xff]   ;;  %s6367_s11 = scalar_lea.vmem %s6384_s4, %s3811_s7 }
  0x2f   : > { %v214_v4 = vld [vmem:[%s207_s10] sm:$0xff]  ;;  %v215_v5 = vld [vmem:[%s207_s10 + $0x8] sm:$0xff]  ;;  %v216_v8 = vld [vmem:[%s207_s10 + $0x10] sm:$0xff]  ;;  %4114 = vmatprep.subr.bf16.mxu0 %v246_v6 }
  0x30   : > { %v222_v7 = vpack.c.bf16 %v215_v5, %v214_v4  ;;  %v217_v9 = vld [vmem:[%s207_s10 + $0x18] sm:$0xff]  ;;  %v218_v10 = vld [vmem:[%s207_s10 + $0x20] sm:$0xff]  ;;  %v219_v11 = vld [vmem:[%s207_s10 + $0x28] sm:$0xff]  ;;  %4115 = vmatpush3.bf16.msra.mxu0 %v246_v6 }
  0x31   : > { %v223_v12 = vpack.c.bf16 %v217_v9, %v216_v8  ;;  %v224_v14 = vpack.c.bf16 %v219_v11, %v218_v10  ;;  %v220_v16 = vld [vmem:[%s207_s10 + $0x30] sm:$0xff]  ;;  %v221_v17 = vld [vmem:[%s207_s10 + $0x38] sm:$0xff]  ;;  %4127 = vmatpush3.bf16.msra.mxu1 %v4878_v15  ;;  %v4933_v43 = vld [vmem:[#allocation2 + $0x80] ss:$8 sps:$4 sm:$0xff]  }
  0x32   : > { %4116 = vmatprep.mubr.msk.bf16.mxu0 %vm228_vm2, %v222_v7  ;;  %v225_v18 = vpack.c.bf16 %v221_v17, %v220_v16  ;;  %4128 = vmatprep.subr.bf16.mxu1 %v4887_v19  ;;  %v4954_v58 = vld [vmem:[%s6380_s0 + $0x18] sm:$0xff]   ;;  %v4964_v60 = vld [vmem:[#allocation2 + $0xa0] ss:$8 sps:$4 sm:$0xff]  }
  0x33   : > { %4117 = vmatmul.mubr.msk.bf16.vlgmr.msra.gmra.mrb[0].mxu0 %vm228_vm2, %v223_v12  ;;  %v4960_v59 = vld [vmem:[#allocation2 + $0x90] ss:$8 sps:$4 sm:$0xff]   ;;  %v4975_v62 = vld [vmem:[%s6383_s3 + $0x1] ss:$0 sm:$0xff] }
  0x34   : > { %4120 = vmatprep.mubr.msk.bf16.mxu0 %vm228_vm2, %v224_v14  ;;  %v4968_v61 = vld [vmem:[#allocation2 + $0xb0] ss:$8 sps:$4 sm:$0xff]  }
  0x35   : > { %4129 = vmatpush3.bf16.msra.mxu1 %v4887_v19 }
  0x36   : > { %4130 = vmatprep.subr.bf16.mxu1 %v4891_v20 }
  0x39   : > { %4131 = vmatpush3.bf16.msra.mxu1 %v4891_v20 }
  0x3a   : > { %4156 = vmatprep.subr.bf16.mxu1 %v4933_v43 }
  0x3b   : > { %4121 = vmatmul.mubr.msk.bf16.gmra.mrb[4].mxu0 %vm228_vm2, %v225_v18 }
  0x3c   : > { %4148 = vmatprep.mubr.msk.bf16.mxu0 %vm349_vm3, %v4929_v42 }
 0x106   : > { %v4118_v21 = vpop.f32.mrb[0].mxu0 }
 0x107   : > { %v282_v23 = vpop.f32.mrb[1].mxu0  ;;  %v4904_v29 = vadd.f32 %v4118_v21, %v227_v22 }
 0x108   : > { %v4119_v24 = vpop.f32.mrb[2].mxu0  ;;  %v4900_v27 = vadd.f32 %v282_v23, %v227_v22 }
 0x109   : > { %v4898_v25 = vadd.f32 %v4119_v24, %v227_v22  ;;  %v285_v26 = vpop.f32.mrb[3].mxu0 }
 0x10a   : > { %v4902_v28 = vadd.f32 %v285_v26, %v227_v22 }
 0x10b   : > { %v322_v31 = vpack.c.bf16 %v4898_v25, %v4904_v29 }
 0x10c   : > { %v321_v30 = vpack.c.bf16 %v4902_v28, %v4900_v27 }
 0x10e   : > { %v4122_v32 = vpop.f32.mrb[4].mxu0  ;;  %4132 = vmatprep.mubr.msk.bf16.mxu1 %vm349_vm3, %v321_v30 }
 0x10f   : > { %v298_v33 = vpop.f32.mrb[5].mxu0  ;;  %4133 = vmatmul.mubr.msk.bf16.vlgmr.msra.gmra.mrb[0].mxu1 %vm349_vm3, %v322_v31  ;;  %v4918_v39 = vadd.f32 %v4122_v32, %v227_v22 }
 0x110   : > { %v4123_v34 = vpop.f32.mrb[6].mxu0  ;;  %v4914_v37 = vadd.f32 %v298_v33, %v227_v22  ;;  %4157 = vmatpush3.bf16.msra.mxu1 %v4933_v43 }
 0x111   : > { %v4912_v35 = vadd.f32 %v4123_v34, %v227_v22  ;;  %v301_v36 = vpop.f32.mrb[7].mxu0  ;;  %4158 = vmatprep.subr.bf16.mxu1 %v4960_v59 }
 0x112   : > { %v4916_v38 = vadd.f32 %v301_v36, %v227_v22 }
 0x113   : > { %v324_v41 = vpack.c.bf16 %v4912_v35, %v4918_v39 }
 0x114   : > { %v323_v40 = vpack.c.bf16 %v4916_v38, %v4914_v37  ;;  %4159 = vmatpush3.bf16.msra.mxu1 %v4960_v59 }
 0x115   : > { %4160 = vmatprep.subr.bf16.mxu1 %v4964_v60 }
 0x116   : > { %4136 = vmatprep.mubr.msk.bf16.mxu1 %vm349_vm3, %v323_v40 }
 0x117   : > { %4137 = vmatmul.mubr.msk.bf16.gmra.mrb[4].mxu1 %vm349_vm3, %v324_v41 }
 0x118   : > { %4161 = vmatpush3.bf16.msra.mxu1 %v4964_v60 }
 0x119   : > { %4162 = vmatprep.subr.bf16.mxu1 %v4968_v61 }
 0x11c   : > { %4163 = vmatpush3.bf16.msra.mxu1 %v4968_v61 }
 0x1e2   : > { %v4134_v44 = vpop.f32.mrb[0].mxu1 }
 0x1e3   : > { %v396_v45 = vpop.f32.mrb[1].mxu1 }
 0x1e4   : > { %v4135_v46 = vpop.f32.mrb[2].mxu1 }
 0x1e5   : > { %v436_v47 = vpack.c.bf16 %v4135_v46, %v4134_v44  ;;  %v399_v48 = vpop.f32.mrb[3].mxu1 }
 0x1e6   : > { %v435_v49 = vpack.c.bf16 %v399_v48, %v396_v45 }
 0x1e8   : > { %4140 = vmatprep.subr.bf16.mxu0 %v435_v49 }
 0x1e9   : > { %4141 = vmatpush3.bf16.msra.mxu0 %v435_v49 }
 0x1ea   : > { %v4138_v50 = vpop.f32.mrb[4].mxu1  ;;  %4142 = vmatprep.subr.bf16.mxu0 %v436_v47 }
 0x1eb   : > { %v412_v51 = vpop.f32.mrb[5].mxu1 }
 0x1ec   : > { %v4139_v52 = vpop.f32.mrb[6].mxu1 }
 0x1ed   : > { %v438_v53 = vpack.c.bf16 %v4139_v52, %v4138_v50  ;;  %v415_v54 = vpop.f32.mrb[7].mxu1  ;;  %4143 = vmatpush3.bf16.msra.mxu0 %v436_v47 }
 0x1ee   : > { %v437_v55 = vpack.c.bf16 %v415_v54, %v412_v51  ;;  %v5049_v54 = vld [vmem:[#allocation2 + $0xd0] ss:$8 sps:$4 sm:$0xff]  }
 0x1f0   : > { %4144 = vmatprep.subr.bf16.mxu0 %v437_v55 }
 0x1f1   : > { %4145 = vmatpush3.bf16.msra.mxu0 %v437_v55  ;;  %v5053_v55 = vld [vmem:[#allocation2 + $0xe0] ss:$8 sps:$4 sm:$0xff]  }
 0x1f2   : > { %4146 = vmatprep.subr.bf16.mxu0 %v438_v53 }
 0x1f5   : > { %4147 = vmatpush3.bf16.msra.mxu0 %v438_v53 }
 0x1f8   : > { %4149 = vmatmul.mubr.msk.bf16.vlgmr.msra.gmra.mrb[8].mxu0 %vm349_vm3, %v4940_v56 }
 0x1f9   : > { %4152 = vmatprep.mubr.msk.bf16.mxu0 %vm349_vm3, %v4945_v57 }
 0x200   : > { %4153 = vmatmul.mubr.msk.bf16.gmra.mrb[12].mxu0 %vm349_vm3, %v4954_v58 }
 0x201   : > { %4180 = vmatprep.mubr.msk.bf16.mxu0 %vm349_vm3, %v4929_v42 }
 0x2cb   : > { %v4150_v63 = vpop.f32.mrb[8].mxu0 }
 0x2cc   : > { %v515_v0 = vadd.f32 %v4150_v63, %v4975_v62  ;;  %v506_v1 = vpop.f32.mrb[9].mxu0  ;;  %v5057_v63 = vld [vmem:[#allocation2 + $0xf0] ss:$8 sps:$4 sm:$0xff]  }
 0x2cd   : > { %v507_v2 = vadd.f32 %v506_v1, %v4975_v62  ;;  %v4151_v3 = vpop.f32.mrb[10].mxu0 }
 0x2ce   : > { %v518_v4 = vadd.f32 %v4151_v3, %v4975_v62  ;;  %v509_v5 = vpop.f32.mrb[11].mxu0  ;;  %v4985_v8 = vadd.f32 %v515_v0, %v4904_v29  ;;  %v5064_v0 = vld [vmem:[%s6383_s3 + $0x2] ss:$0 sm:$0xff] }
 0x2cf   : > { %v4981_v6 = vadd.f32 %v507_v2, %v4900_v27  ;;  %v510_v7 = vadd.f32 %v509_v5, %v4975_v62 }
 0x2d0   : > { %v4988_v9 = vadd.f32 %v518_v4, %v4898_v25  ;;  %v547_v17 = vmax.f32 %v4985_v8, 0.0 }
 0x2d1   : > { %v4991_v10 = vadd.f32 %v510_v7, %v4902_v28  ;;  %v545_v12 = vmax.f32 %v4981_v6, 0.0 }
 0x2d2   : > { %v548_v11 = vmax.f32 %v4988_v9, 0.0 }
 0x2d3   : > { %v546_v14 = vmax.f32 %v4991_v10, 0.0  ;;  %v4154_v16 = vpop.f32.mrb[12].mxu0 }
 0x2d4   : > { %v531_v18 = vadd.f32 %v4154_v16, %v4975_v62  ;;  %v522_v21 = vpop.f32.mrb[13].mxu0  ;;  %v562_v25 = vpack.c.bf16 %v548_v11, %v547_v17 }
 0x2d5   : > { %v561_v22 = vpack.c.bf16 %v546_v14, %v545_v12  ;;  %v523_v23 = vadd.f32 %v522_v21, %v4975_v62  ;;  %v4155_v24 = vpop.f32.mrb[14].mxu0 }
 0x2d6   : > { %v534_v26 = vadd.f32 %v4155_v24, %v4975_v62  ;;  %v525_v27 = vpop.f32.mrb[15].mxu0  ;;  %v5014_v30 = vadd.f32 %v531_v18, %v4918_v39 }
 0x2d7   : > { %v5009_v28 = vadd.f32 %v523_v23, %v4914_v37  ;;  %v526_v29 = vadd.f32 %v525_v27, %v4975_v62  ;;  %4164 = vmatprep.mubr.msk.bf16.mxu1 %vm349_vm3, %v561_v22 }
 0x2d8   : > { %v5017_v31 = vadd.f32 %v534_v26, %v4912_v35  ;;  %4165 = vmatmul.mubr.msk.bf16.vlgmr.msra.gmra.mrb[8].mxu1 %vm349_vm3, %v562_v25  ;;  %v551_v37 = vmax.f32 %v5014_v30, 0.0 }
 0x2d9   : > { %v5021_v32 = vadd.f32 %v526_v29, %v4916_v38  ;;  %v549_v34 = vmax.f32 %v5009_v28, 0.0  ;;  %v5037_v38 = vld [vmem:[#allocation2 + $0xc0] ss:$8 sps:$4 sm:$0xff]  }
 0x2da   : > { %v552_v33 = vmax.f32 %v5017_v31, 0.0  ;;  %4188 = vmatprep.subr.bf16.mxu1 %v5037_v38 }
 0x2db   : > { %v550_v36 = vmax.f32 %v5021_v32, 0.0  ;;  %4189 = vmatpush3.bf16.msra.mxu1 %v5037_v38 }
 0x2dc   : > { %v564_v35 = vpack.c.bf16 %v552_v33, %v551_v37  ;;  %4190 = vmatprep.subr.bf16.mxu1 %v5049_v54 }
 0x2dd   : > { %v563_v39 = vpack.c.bf16 %v550_v36, %v549_v34 }
 0x2df   : > { %4168 = vmatprep.mubr.msk.bf16.mxu1 %vm349_vm3, %v563_v39  ;;  %4191 = vmatpush3.bf16.msra.mxu1 %v5049_v54 }
 0x2e0   : > { %4169 = vmatmul.mubr.msk.bf16.gmra.mrb[12].mxu1 %vm349_vm3, %v564_v35  ;;  %4192 = vmatprep.subr.bf16.mxu1 %v5053_v55 }
 0x2e3   : > { %4193 = vmatpush3.bf16.msra.mxu1 %v5053_v55 }
 0x2e4   : > { %4194 = vmatprep.subr.bf16.mxu1 %v5057_v63 }
 0x2e7   : > { %4195 = vmatpush3.bf16.msra.mxu1 %v5057_v63 }
 0x3ab   : > { %v4166_v40 = vpop.f32.mrb[8].mxu1 }
 0x3ac   : > { %v635_v41 = vpop.f32.mrb[9].mxu1 }
 0x3ad   : > { %v4167_v44 = vpop.f32.mrb[10].mxu1 }
 0x3ae   : > { %v667_v45 = vpack.c.bf16 %v4167_v44, %v4166_v40  ;;  %v638_v46 = vpop.f32.mrb[11].mxu1 }
 0x3af   : > { %v666_v47 = vpack.c.bf16 %v638_v46, %v635_v41 }
 0x3b1   : > { %4172 = vmatprep.subr.bf16.mxu0 %v666_v47 }
 0x3b2   : > { %4173 = vmatpush3.bf16.msra.mxu0 %v666_v47 }
 0x3b3   : > { %v4170_v48 = vpop.f32.mrb[12].mxu1  ;;  %4174 = vmatprep.subr.bf16.mxu0 %v667_v45 }
 0x3b4   : > { %v651_v49 = vpop.f32.mrb[13].mxu1 }
 0x3b5   : > { %v4171_v50 = vpop.f32.mrb[14].mxu1 }
 0x3b6   : > { %v669_v51 = vpack.c.bf16 %v4171_v50, %v4170_v48  ;;  %v654_v52 = vpop.f32.mrb[15].mxu1  ;;  %4175 = vmatpush3.bf16.msra.mxu0 %v667_v45 }
 0x3b7   : > { %v668_v53 = vpack.c.bf16 %v654_v52, %v651_v49 }
 0x3b9   : > { %4176 = vmatprep.subr.bf16.mxu0 %v668_v53 }
 0x3ba   : > { %4177 = vmatpush3.bf16.msra.mxu0 %v668_v53 }
 0x3bb   : > { %4178 = vmatprep.subr.bf16.mxu0 %v669_v51 }
 0x3be   : > { %4179 = vmatpush3.bf16.msra.mxu0 %v669_v51 }
 0x3c1   : > { %4181 = vmatmul.mubr.msk.bf16.vlgmr.msra.gmra.mrb[16].mxu0 %vm349_vm3, %v4940_v56 }
 0x3c2   : > { %4184 = vmatprep.mubr.msk.bf16.mxu0 %vm349_vm3, %v4945_v57 }
 0x3c9   : > { %4185 = vmatmul.mubr.msk.bf16.gmra.mrb[20].mxu0 %vm349_vm3, %v4954_v58 }
 0x3ca   : > { %4212 = vmatprep.mubr.msk.bf16.mxu0 %vm349_vm3, %v4929_v42 }
 0x494   : > { %v4182_v1 = vpop.f32.mrb[16].mxu0 }
 0x495   : > { %v714_v2 = vadd.f32 %v4182_v1, %v5064_v0  ;;  %v705_v3 = vpop.f32.mrb[17].mxu0 }
 0x496   : > { %v706_v4 = vadd.f32 %v705_v3, %v5064_v0  ;;  %v4183_v5 = vpop.f32.mrb[18].mxu0 }
 0x497   : > { %v717_v7 = vadd.f32 %v4183_v5, %v5064_v0  ;;  %v708_v16 = vpop.f32.mrb[19].mxu0  ;;  %v5076_v22 = vadd.f32 %v714_v2, %v547_v17  ;;  %v5150_v5 = vld [vmem:[#allocation2 + $0x120] ss:$8 sps:$4 sm:$0xff]  }
 0x498   : > { %v5071_v18 = vadd.f32 %v706_v4, %v545_v12  ;;  %v709_v21 = vadd.f32 %v708_v16, %v5064_v0  ;;  %v5146_v4 = vld [vmem:[#allocation2 + $0x110] ss:$8 sps:$4 sm:$0xff]   ;;  %v5162_v16 = vld [vmem:[%s6383_s3 + $0x3] ss:$0 sm:$0xff] }
 0x499   : > { %v5080_v23 = vadd.f32 %v717_v7, %v548_v11  ;;  %v746_v27 = vmax.f32 %v5076_v22, 0.0  ;;  %v5154_v7 = vld [vmem:[#allocation2 + $0x130] ss:$8 sps:$4 sm:$0xff]  }
 0x49a   : > { %v5084_v24 = vadd.f32 %v709_v21, %v546_v14  ;;  %v744_v6 = vmax.f32 %v5071_v18, 0.0 }
 0x49b   : > { %v747_v25 = vmax.f32 %v5080_v23, 0.0 }
 0x49c   : > { %v745_v12 = vmax.f32 %v5084_v24, 0.0  ;;  %v4186_v26 = vpop.f32.mrb[20].mxu0 }
 0x49d   : > { %v730_v8 = vadd.f32 %v4186_v26, %v5064_v0  ;;  %v721_v17 = vpop.f32.mrb[21].mxu0  ;;  %v761_v14 = vpack.c.bf16 %v747_v25, %v746_v27 }
 0x49e   : > { %v760_v9 = vpack.c.bf16 %v745_v12, %v744_v6  ;;  %v722_v10 = vadd.f32 %v721_v17, %v5064_v0  ;;  %v4187_v11 = vpop.f32.mrb[22].mxu0 }
 0x49f   : > { %v733_v29 = vadd.f32 %v4187_v11, %v5064_v0  ;;  %v724_v39 = vpop.f32.mrb[23].mxu0  ;;  %v5109_v41 = vadd.f32 %v730_v8, %v551_v37 }
 0x4a0   : > { %v5103_v35 = vadd.f32 %v722_v10, %v549_v34  ;;  %v725_v40 = vadd.f32 %v724_v39, %v5064_v0  ;;  %4196 = vmatprep.mubr.msk.bf16.mxu1 %vm349_vm3, %v760_v9 }
 0x4a1   : > { %v5113_v44 = vadd.f32 %v733_v29, %v552_v33  ;;  %4197 = vmatmul.mubr.msk.bf16.vlgmr.msra.gmra.mrb[16].mxu1 %vm349_vm3, %v761_v14  ;;  %v750_v30 = vmax.f32 %v5109_v41, 0.0  ;;  %v5134_v33 = vld [vmem:[#allocation2 + $0x100] ss:$8 sps:$4 sm:$0xff]  }
 0x4a2   : > { %v5118_v45 = vadd.f32 %v725_v40, %v550_v36  ;;  %v748_v34 = vmax.f32 %v5103_v35, 0.0  ;;  %4220 = vmatprep.subr.bf16.mxu1 %v5134_v33 }
 0x4a3   : > { %v751_v28 = vmax.f32 %v5113_v44, 0.0  ;;  %4221 = vmatpush3.bf16.msra.mxu1 %v5134_v33 }
 0x4a4   : > { %v749_v46 = vmax.f32 %v5118_v45, 0.0  ;;  %4222 = vmatprep.subr.bf16.mxu1 %v5146_v4 }
 0x4a5   : > { %v763_v32 = vpack.c.bf16 %v751_v28, %v750_v30 }
 0x4a6   : > { %v762_v31 = vpack.c.bf16 %v749_v46, %v748_v34 }
 0x4a7   : > { %4223 = vmatpush3.bf16.msra.mxu1 %v5146_v4 }
 0x4a8   : > { %4200 = vmatprep.mubr.msk.bf16.mxu1 %vm349_vm3, %v762_v31  ;;  %4224 = vmatprep.subr.bf16.mxu1 %v5150_v5 }
 0x4a9   : > { %4201 = vmatmul.mubr.msk.bf16.gmra.mrb[20].mxu1 %vm349_vm3, %v763_v32 }
 0x4ab   : > { %4225 = vmatpush3.bf16.msra.mxu1 %v5150_v5 }
 0x4ac   : > { %4226 = vmatprep.subr.bf16.mxu1 %v5154_v7 }
 0x4af   : > { %4227 = vmatpush3.bf16.msra.mxu1 %v5154_v7 }
 0x4b0   : > { %4252 = vmatprep.subr.bf16.mxu1 %v4876_v13 }
 0x574   : > { %v4198_v36 = vpop.f32.mrb[16].mxu1 }
 0x575   : > { %v834_v37 = vpop.f32.mrb[17].mxu1 }
 0x576   : > { %v4199_v47 = vpop.f32.mrb[18].mxu1 }
 0x577   : > { %v866_v48 = vpack.c.bf16 %v4199_v47, %v4198_v36  ;;  %v837_v49 = vpop.f32.mrb[19].mxu1 }
 0x578   : > { %v865_v50 = vpack.c.bf16 %v837_v49, %v834_v37 }
 0x57a   : > { %4204 = vmatprep.subr.bf16.mxu0 %v865_v50 }
 0x57b   : > { %4205 = vmatpush3.bf16.msra.mxu0 %v865_v50 }
 0x57c   : > { %v4202_v51 = vpop.f32.mrb[20].mxu1  ;;  %4206 = vmatprep.subr.bf16.mxu0 %v866_v48 }
 0x57d   : > { %v850_v52 = vpop.f32.mrb[21].mxu1 }
 0x57e   : > { %v4203_v53 = vpop.f32.mrb[22].mxu1 }
 0x57f   : > { %v868_v1 = vpack.c.bf16 %v4203_v53, %v4202_v51  ;;  %v853_v2 = vpop.f32.mrb[23].mxu1  ;;  %4207 = vmatpush3.bf16.msra.mxu0 %v866_v48 }
 0x580   : > { %v867_v3 = vpack.c.bf16 %v853_v2, %v850_v52 }
 0x582   : > { %4208 = vmatprep.subr.bf16.mxu0 %v867_v3 }
 0x583   : > { %4209 = vmatpush3.bf16.msra.mxu0 %v867_v3 }
 0x584   : > { %4210 = vmatprep.subr.bf16.mxu0 %v868_v1 }
 0x587   : > { %4211 = vmatpush3.bf16.msra.mxu0 %v868_v1 }
 0x58a   : > { %4213 = vmatmul.mubr.msk.bf16.vlgmr.msra.gmra.mrb[24].mxu0 %vm349_vm3, %v4940_v56 }
 0x58b   : > { %4216 = vmatprep.mubr.msk.bf16.mxu0 %vm349_vm3, %v4945_v57 }
 0x592   : > { %4217 = vmatmul.mubr.msk.bf16.gmra.mrb[28].mxu0 %vm349_vm3, %v4954_v58 }
 0x593   : > { %4244 = vmatprep.mubr.msk.bf16.mxu0 %vm349_vm3, %v4929_v42 }
 0x65d   : > { %v4214_v21 = vpop.f32.mrb[24].mxu0 }
 0x65e   : > { %v913_v26 = vadd.f32 %v4214_v21, %v5162_v16  ;;  %v904_v8 = vpop.f32.mrb[25].mxu0 }
 0x65f   : > { %v905_v17 = vadd.f32 %v904_v8, %v5162_v16  ;;  %v4215_v9 = vpop.f32.mrb[26].mxu0 }
 0x660   : > { %v916_v10 = vadd.f32 %v4215_v9, %v5162_v16  ;;  %v907_v11 = vpop.f32.mrb[27].mxu0  ;;  %v5174_v39 = vadd.f32 %v913_v26, %v746_v27 }
 0x661   : > { %v5169_v14 = vadd.f32 %v905_v17, %v744_v6  ;;  %v908_v29 = vadd.f32 %v907_v11, %v5162_v16 }
 0x662   : > { %v5178_v40 = vadd.f32 %v916_v10, %v747_v25  ;;  %v945_v37 = vmax.f32 %v5174_v39, 0.0 }
 0x663   : > { %v5182_v31 = vadd.f32 %v908_v29, %v745_v12  ;;  %v943_v18 = vmax.f32 %v5169_v14, 0.0 }
 0x664   : > { %v946_v32 = vmax.f32 %v5178_v40, 0.0 }
 0x665   : > { %v944_v6 = vmax.f32 %v5182_v31, 0.0  ;;  %v4218_v36 = vpop.f32.mrb[28].mxu0 }
 0x666   : > { %v929_v22 = vadd.f32 %v4218_v36, %v5162_v16  ;;  %v920_v27 = vpop.f32.mrb[29].mxu0  ;;  %v960_v12 = vpack.c.bf16 %v946_v32, %v945_v37 }
 0x667   : > { %v959_v23 = vpack.c.bf16 %v944_v6, %v943_v18  ;;  %v921_v24 = vadd.f32 %v920_v27, %v5162_v16  ;;  %v4219_v25 = vpop.f32.mrb[30].mxu0 }
 0x668   : > { %v932_v47 = vadd.f32 %v4219_v25, %v5162_v16  ;;  %v923_v48 = vpop.f32.mrb[31].mxu0  ;;  %v5207_v51 = vadd.f32 %v929_v22, %v750_v30 }
 0x669   : > { %v5201_v49 = vadd.f32 %v921_v24, %v748_v34  ;;  %v924_v50 = vadd.f32 %v923_v48, %v5162_v16  ;;  %4228 = vmatprep.mubr.msk.bf16.mxu1 %vm349_vm3, %v959_v23 }
 0x66a   : > { %v5211_v52 = vadd.f32 %v932_v47, %v751_v28  ;;  %4229 = vmatmul.mubr.msk.bf16.vlgmr.msra.gmra.mrb[24].mxu1 %vm349_vm3, %v960_v12  ;;  %v949_v44 = vmax.f32 %v5207_v51, 0.0 }
 0x66b   : > { %v5216_v53 = vadd.f32 %v924_v50, %v749_v46  ;;  %4253 = vmatpush3.bf16.msra.mxu1 %v4876_v13  ;;  %v947_v41 = vmax.f32 %v5201_v49, 0.0 }
 0x66c   : > { %v950_v35 = vmax.f32 %v5211_v52, 0.0  ;;  %4254 = vmatprep.subr.bf16.mxu1 %v4878_v15 }
 0x66d   : > { %v948_v34 = vmax.f32 %v5216_v53, 0.0 }
 0x66e   : > { %v962_v13 = vpack.c.bf16 %v950_v35, %v949_v44 }
 0x66f   : > { %v961_v28 = vpack.c.bf16 %v948_v34, %v947_v41  ;;  %4255 = vmatpush3.bf16.msra.mxu1 %v4878_v15 }
 0x670   : > { %4256 = vmatprep.subr.bf16.mxu1 %v4887_v19 }
 0x671   : > { %4232 = vmatprep.mubr.msk.bf16.mxu1 %vm349_vm3, %v961_v28 }
 0x672   : > { %4233 = vmatmul.mubr.msk.bf16.gmra.mrb[28].mxu1 %vm349_vm3, %v962_v13 }
 0x673   : > { %4257 = vmatpush3.bf16.msra.mxu1 %v4887_v19 }
 0x674   : > { %4258 = vmatprep.subr.bf16.mxu1 %v4891_v20 }
 0x677   : > { %4259 = vmatpush3.bf16.msra.mxu1 %v4891_v20  ;;  %v5251_v20 = vld [vmem:[%s6383_s3 + $0x4] ss:$0 sm:$0xff] }
 0x678   : > { %4284 = vmatprep.subr.bf16.mxu1 %v4933_v43 }
 0x73d   : > { %v4230_v15 = vpop.f32.mrb[24].mxu1 }
 0x73e   : > { %v1033_v45 = vpop.f32.mrb[25].mxu1 }
 0x73f   : > { %v4231_v46 = vpop.f32.mrb[26].mxu1 }
 0x740   : > { %v1065_v30 = vpack.c.bf16 %v4231_v46, %v4230_v15  ;;  %v1036_v1 = vpop.f32.mrb[27].mxu1 }
 0x741   : > { %v1064_v2 = vpack.c.bf16 %v1036_v1, %v1033_v45 }
 0x743   : > { %4236 = vmatprep.subr.bf16.mxu0 %v1064_v2 }
 0x744   : > { %4237 = vmatpush3.bf16.msra.mxu0 %v1064_v2 }
 0x745   : > { %v4234_v3 = vpop.f32.mrb[28].mxu1  ;;  %4238 = vmatprep.subr.bf16.mxu0 %v1065_v30 }
 0x746   : > { %v1049_v21 = vpop.f32.mrb[29].mxu1 }
 0x747   : > { %v4235_v26 = vpop.f32.mrb[30].mxu1 }
 0x748   : > { %v1067_v8 = vpack.c.bf16 %v4235_v26, %v4234_v3  ;;  %v1052_v19 = vpop.f32.mrb[31].mxu1  ;;  %4239 = vmatpush3.bf16.msra.mxu0 %v1065_v30 }
 0x749   : > { %v1066_v17 = vpack.c.bf16 %v1052_v19, %v1049_v21 }
 0x74b   : > { %4240 = vmatprep.subr.bf16.mxu0 %v1066_v17 }
 0x74c   : > { %4241 = vmatpush3.bf16.msra.mxu0 %v1066_v17 }
 0x74d   : > { %4242 = vmatprep.subr.bf16.mxu0 %v1067_v8 }
 0x750   : > { %4243 = vmatpush3.bf16.msra.mxu0 %v1067_v8 }
 0x753   : > { %4245 = vmatmul.mubr.msk.bf16.vlgmr.msra.gmra.mrb[32].mxu0 %vm349_vm3, %v4940_v56 }
 0x754   : > { %4248 = vmatprep.mubr.msk.bf16.mxu0 %vm349_vm3, %v4945_v57 }
 0x75b   : > { %4249 = vmatmul.mubr.msk.bf16.gmra.mrb[36].mxu0 %vm349_vm3, %v4954_v58 }
 0x75c   : > { %4276 = vmatprep.mubr.msk.bf16.mxu0 %vm349_vm3, %v4929_v42 }
 0x826   : > { %v4246_v9 = vpop.f32.mrb[32].mxu0 }
 0x827   : > { %v1112_v10 = vadd.f32 %v4246_v9, %v5251_v20  ;;  %v1103_v11 = vpop.f32.mrb[33].mxu0 }
 0x828   : > { %v1104_v29 = vadd.f32 %v1103_v11, %v5251_v20  ;;  %v4247_v36 = vpop.f32.mrb[34].mxu0 }
 0x829   : > { %v1115_v22 = vadd.f32 %v4247_v36, %v5251_v20  ;;  %v1106_v27 = vpop.f32.mrb[35].mxu0  ;;  %v5263_v25 = vadd.f32 %v1112_v10, %v945_v37 }
 0x82a   : > { %v5258_v23 = vadd.f32 %v1104_v29, %v943_v18  ;;  %v1107_v24 = vadd.f32 %v1106_v27, %v5251_v20 }
 0x82b   : > { %v5267_v12 = vadd.f32 %v1115_v22, %v946_v32  ;;  %v1144_v28 = vmax.f32 %v5263_v25, 0.0 }
 0x82c   : > { %v5271_v47 = vadd.f32 %v1107_v24, %v944_v6  ;;  %v1142_v14 = vmax.f32 %v5258_v23, 0.0 }
 0x82d   : > { %v1145_v48 = vmax.f32 %v5267_v12, 0.0 }
 0x82e   : > { %v1143_v18 = vmax.f32 %v5271_v47, 0.0  ;;  %v4250_v50 = vpop.f32.mrb[36].mxu0 }
 0x82f   : > { %v1128_v39 = vadd.f32 %v4250_v50, %v5251_v20  ;;  %v1119_v37 = vpop.f32.mrb[37].mxu0  ;;  %v1151_v6 = vpack.c.bf16 %v1145_v48, %v1144_v28 }
 0x830   : > { %v1150_v40 = vpack.c.bf16 %v1143_v18, %v1142_v14  ;;  %v1120_v31 = vadd.f32 %v1119_v37, %v5251_v20  ;;  %v4251_v32 = vpop.f32.mrb[38].mxu0 }
 0x831   : > { %v1131_v13 = vadd.f32 %v4251_v32, %v5251_v20  ;;  %v1122_v15 = vpop.f32.mrb[39].mxu0  ;;  %v5296_v30 = vadd.f32 %v1128_v39, %v949_v44 }
 0x832   : > { %v5290_v45 = vadd.f32 %v1120_v31, %v947_v41  ;;  %v1123_v46 = vadd.f32 %v1122_v15, %v5251_v20  ;;  %4260 = vmatprep.mubr.msk.bf16.mxu1 %vm349_vm3, %v1150_v40 }
 0x833   : > { %v5300_v1 = vadd.f32 %v1131_v13, %v950_v35  ;;  %4261 = vmatmul.mubr.msk.bf16.vlgmr.msra.gmra.mrb[32].mxu1 %vm349_vm3, %v1151_v6  ;;  %v1148_v52 = vmax.f32 %v5296_v30, 0.0 }
 0x834   : > { %v5305_v2 = vadd.f32 %v1123_v46, %v948_v34  ;;  %4285 = vmatpush3.bf16.msra.mxu1 %v4933_v43  ;;  %v1146_v51 = vmax.f32 %v5290_v45, 0.0 }
 0x835   : > { %v1149_v49 = vmax.f32 %v5300_v1, 0.0  ;;  %4286 = vmatprep.subr.bf16.mxu1 %v4960_v59 }
 0x836   : > { %v1147_v41 = vmax.f32 %v5305_v2, 0.0 }
 0x837   : > { %v1153_v43 = vpack.c.bf16 %v1149_v49, %v1148_v52 }
 0x838   : > { %v1152_v35 = vpack.c.bf16 %v1147_v41, %v1146_v51  ;;  %4287 = vmatpush3.bf16.msra.mxu1 %v4960_v59 }
 0x839   : > { %4288 = vmatprep.subr.bf16.mxu1 %v4964_v60 }
 0x83a   : > { %4264 = vmatprep.mubr.msk.bf16.mxu1 %vm349_vm3, %v1152_v35 }
 0x83b   : > { %4265 = vmatmul.mubr.msk.bf16.gmra.mrb[36].mxu1 %vm349_vm3, %v1153_v43 }
 0x83c   : > { %4289 = vmatpush3.bf16.msra.mxu1 %v4964_v60 }
 0x83d   : > { %4290 = vmatprep.subr.bf16.mxu1 %v4968_v61 }
 0x840   : > { %4291 = vmatpush3.bf16.msra.mxu1 %v4968_v61 }
 0x841   : > { %4316 = vmatprep.subr.bf16.mxu1 %v5037_v38 }
 0x906   : > { %v4262_v59 = vpop.f32.mrb[32].mxu1 }
 0x907   : > { %v1200_v53 = vpop.f32.mrb[33].mxu1 }
 0x908   : > { %v4263_v34 = vpop.f32.mrb[34].mxu1 }
 0x909   : > { %v1232_v44 = vpack.c.bf16 %v4263_v34, %v4262_v59  ;;  %v1203_v3 = vpop.f32.mrb[35].mxu1 }
 0x90a   : > { %v1231_v21 = vpack.c.bf16 %v1203_v3, %v1200_v53 }
 0x90c   : > { %4268 = vmatprep.subr.bf16.mxu0 %v1231_v21 }
 0x90d   : > { %4269 = vmatpush3.bf16.msra.mxu0 %v1231_v21 }
 0x90e   : > { %v4266_v26 = vpop.f32.mrb[36].mxu1  ;;  %4270 = vmatprep.subr.bf16.mxu0 %v1232_v44 }
 0x90f   : > { %v1216_v8 = vpop.f32.mrb[37].mxu1 }
 0x910   : > { %v4267_v19 = vpop.f32.mrb[38].mxu1 }
 0x911   : > { %v1234_v17 = vpack.c.bf16 %v4267_v19, %v4266_v26  ;;  %v1219_v60 = vpop.f32.mrb[39].mxu1  ;;  %4271 = vmatpush3.bf16.msra.mxu0 %v1232_v44 }
 0x912   : > { %v1233_v9 = vpack.c.bf16 %v1219_v60, %v1216_v8 }
 0x914   : > { %4272 = vmatprep.subr.bf16.mxu0 %v1233_v9 }
 0x915   : > { %4273 = vmatpush3.bf16.msra.mxu0 %v1233_v9 }
 0x916   : > { %4274 = vmatprep.subr.bf16.mxu0 %v1234_v17 }
 0x919   : > { %4275 = vmatpush3.bf16.msra.mxu0 %v1234_v17 }
 0x91c   : > { %4277 = vmatmul.mubr.msk.bf16.vlgmr.msra.gmra.mrb[40].mxu0 %vm349_vm3, %v4940_v56 }
 0x91d   : > { %4280 = vmatprep.mubr.msk.bf16.mxu0 %vm349_vm3, %v4945_v57 }
 0x924   : > { %4281 = vmatmul.mubr.msk.bf16.gmra.mrb[44].mxu0 %vm349_vm3, %v4954_v58 }
 0x925   : > { %4308 = vmatprep.mubr.msk.bf16.mxu0 %vm349_vm3, %v4929_v42 }
 0x9ef   : > { %v4278_v61 = vpop.f32.mrb[40].mxu0 }
 0x9f0   : > { %v1278_v10 = vadd.f32 %v4278_v61, %v4975_v62  ;;  %v1269_v11 = vpop.f32.mrb[41].mxu0 }
 0x9f1   : > { %v1270_v29 = vadd.f32 %v1269_v11, %v4975_v62  ;;  %v4279_v36 = vpop.f32.mrb[42].mxu0 }
 0x9f2   : > { %v1281_v22 = vadd.f32 %v4279_v36, %v4975_v62  ;;  %v1272_v27 = vpop.f32.mrb[43].mxu0  ;;  %v5345_v39 = vadd.f32 %v1278_v10, %v1144_v28 }
 0x9f3   : > { %v5340_v24 = vadd.f32 %v1270_v29, %v1142_v14  ;;  %v1273_v50 = vadd.f32 %v1272_v27, %v4975_v62 }
 0x9f4   : > { %v5349_v37 = vadd.f32 %v1281_v22, %v1145_v48  ;;  %v1310_v6 = vmax.f32 %v5345_v39, 0.0 }
 0x9f5   : > { %v5353_v40 = vadd.f32 %v1273_v50, %v1143_v18  ;;  %v1308_v23 = vmax.f32 %v5340_v24, 0.0 }
 0x9f6   : > { %v1311_v31 = vmax.f32 %v5349_v37, 0.0 }
 0x9f7   : > { %v1309_v14 = vmax.f32 %v5353_v40, 0.0  ;;  %v4282_v32 = vpop.f32.mrb[44].mxu0 }
 0x9f8   : > { %v1294_v25 = vadd.f32 %v4282_v32, %v4975_v62  ;;  %v1285_v28 = vpop.f32.mrb[45].mxu0  ;;  %v1317_v18 = vpack.c.bf16 %v1311_v31, %v1310_v6 }
 0x9f9   : > { %v1316_v12 = vpack.c.bf16 %v1309_v14, %v1308_v23  ;;  %v1286_v47 = vadd.f32 %v1285_v28, %v4975_v62  ;;  %v4283_v48 = vpop.f32.mrb[46].mxu0 }
 0x9fa   : > { %v1297_v13 = vadd.f32 %v4283_v48, %v4975_v62  ;;  %v1288_v15 = vpop.f32.mrb[47].mxu0  ;;  %v5376_v35 = vadd.f32 %v1294_v25, %v1148_v52 }
 0x9fb   : > { %v5370_v45 = vadd.f32 %v1286_v47, %v1146_v51  ;;  %v1289_v46 = vadd.f32 %v1288_v15, %v4975_v62  ;;  %4292 = vmatprep.mubr.msk.bf16.mxu1 %vm349_vm3, %v1316_v12 }
 0x9fc   : > { %v5380_v43 = vadd.f32 %v1297_v13, %v1149_v49  ;;  %4293 = vmatmul.mubr.msk.bf16.vlgmr.msra.gmra.mrb[40].mxu1 %vm349_vm3, %v1317_v18  ;;  %v1314_v1 = vmax.f32 %v5376_v35, 0.0 }
 0x9fd   : > { %v5385_v59 = vadd.f32 %v1289_v46, %v1147_v41  ;;  %4317 = vmatpush3.bf16.msra.mxu1 %v5037_v38  ;;  %v1312_v30 = vmax.f32 %v5370_v45, 0.0 }
 0x9fe   : > { %v1315_v62 = vmax.f32 %v5380_v43, 0.0  ;;  %4318 = vmatprep.subr.bf16.mxu1 %v5049_v54 }
 0x9ff   : > { %v1313_v51 = vmax.f32 %v5385_v59, 0.0  ;;  %v5488_v59 = vld [vmem:[#allocation2 + $0x40] ss:$8 sps:$4 sm:$0xff]  }
 0xa00   : > { %v1319_v38 = vpack.c.bf16 %v1315_v62, %v1314_v1 }
 0xa01   : > { %v1318_v49 = vpack.c.bf16 %v1313_v51, %v1312_v30  ;;  %4319 = vmatpush3.bf16.msra.mxu1 %v5049_v54 }
 0xa02   : > { %4320 = vmatprep.subr.bf16.mxu1 %v5053_v55 }
 0xa03   : > { %4296 = vmatprep.mubr.msk.bf16.mxu1 %vm349_vm3, %v1318_v49 }
 0xa04   : > { %4297 = vmatmul.mubr.msk.bf16.gmra.mrb[44].mxu1 %vm349_vm3, %v1319_v38 }
 0xa05   : > { %4321 = vmatpush3.bf16.msra.mxu1 %v5053_v55 }
 0xa06   : > { %4322 = vmatprep.subr.bf16.mxu1 %v5057_v63 }
 0xa09   : > { %4323 = vmatpush3.bf16.msra.mxu1 %v5057_v63 }
 0xa0a   : > { %4348 = vmatprep.subr.bf16.mxu1 %v5134_v33 }
 0xacf   : > { %v4294_v54 = vpop.f32.mrb[40].mxu1 }
 0xad0   : > { %v1366_v2 = vpop.f32.mrb[41].mxu1 }
 0xad1   : > { %v4295_v41 = vpop.f32.mrb[42].mxu1 }
 0xad2   : > { %v1398_v52 = vpack.c.bf16 %v4295_v41, %v4294_v54  ;;  %v1369_v53 = vpop.f32.mrb[43].mxu1 }
 0xad3   : > { %v1397_v34 = vpack.c.bf16 %v1369_v53, %v1366_v2 }
 0xad5   : > { %4300 = vmatprep.subr.bf16.mxu0 %v1397_v34 }
 0xad6   : > { %4301 = vmatpush3.bf16.msra.mxu0 %v1397_v34 }
 0xad7   : > { %v4298_v44 = vpop.f32.mrb[44].mxu1  ;;  %4302 = vmatprep.subr.bf16.mxu0 %v1398_v52 }
 0xad8   : > { %v1382_v3 = vpop.f32.mrb[45].mxu1 }
 0xad9   : > { %v4299_v21 = vpop.f32.mrb[46].mxu1 }
 0xada   : > { %v1400_v26 = vpack.c.bf16 %v4299_v21, %v4298_v44  ;;  %v1385_v55 = vpop.f32.mrb[47].mxu1  ;;  %4303 = vmatpush3.bf16.msra.mxu0 %v1398_v52 }
 0xadb   : > { %v1399_v8 = vpack.c.bf16 %v1385_v55, %v1382_v3 }
 0xadd   : > { %4304 = vmatprep.subr.bf16.mxu0 %v1399_v8 }
 0xade   : > { %4305 = vmatpush3.bf16.msra.mxu0 %v1399_v8 }
 0xadf   : > { %4306 = vmatprep.subr.bf16.mxu0 %v1400_v26 }
 0xae2   : > { %4307 = vmatpush3.bf16.msra.mxu0 %v1400_v26 }
 0xae5   : > { %4309 = vmatmul.mubr.msk.bf16.vlgmr.msra.gmra.mrb[48].mxu0 %vm349_vm3, %v4940_v56 }
 0xae6   : > { %4312 = vmatprep.mubr.msk.bf16.mxu0 %vm349_vm3, %v4945_v57 }
 0xaed   : > { %4313 = vmatmul.mubr.msk.bf16.gmra.mrb[52].mxu0 %vm349_vm3, %v4954_v58 }
 0xaee   : > { %4340 = vmatprep.mubr.msk.bf16.mxu0 %vm349_vm3, %v4929_v42 }
 0xbb8   : > { %v4310_v63 = vpop.f32.mrb[48].mxu0 }
 0xbb9   : > { %v1444_v19 = vadd.f32 %v4310_v63, %v5064_v0  ;;  %v1435_v17 = vpop.f32.mrb[49].mxu0 }
 0xbba   : > { %v1436_v60 = vadd.f32 %v1435_v17, %v5064_v0  ;;  %v4311_v9 = vpop.f32.mrb[50].mxu0 }
 0xbbb   : > { %v1447_v61 = vadd.f32 %v4311_v9, %v5064_v0  ;;  %v1438_v10 = vpop.f32.mrb[51].mxu0  ;;  %v5425_v36 = vadd.f32 %v1444_v19, %v1310_v6 }
 0xbbc   : > { %v5420_v11 = vadd.f32 %v1436_v60, %v1308_v23  ;;  %v1439_v29 = vadd.f32 %v1438_v10, %v5064_v0 }
 0xbbd   : > { %v5429_v22 = vadd.f32 %v1447_v61, %v1311_v31  ;;  %v1476_v25 = vmax.f32 %v5425_v36, 0.0 }
 0xbbe   : > { %v5433_v27 = vadd.f32 %v1439_v29, %v1309_v14  ;;  %v1474_v24 = vmax.f32 %v5420_v11, 0.0 }
 0xbbf   : > { %v1477_v50 = vmax.f32 %v5429_v22, 0.0 }
 0xbc0   : > { %v1475_v23 = vmax.f32 %v5433_v27, 0.0  ;;  %v4314_v32 = vpop.f32.mrb[52].mxu0 }
 0xbc1   : > { %v1460_v39 = vadd.f32 %v4314_v32, %v5064_v0  ;;  %v1451_v6 = vpop.f32.mrb[53].mxu0  ;;  %v1483_v14 = vpack.c.bf16 %v1477_v50, %v1476_v25 }
 0xbc2   : > { %v1482_v37 = vpack.c.bf16 %v1475_v23, %v1474_v24  ;;  %v1452_v40 = vadd.f32 %v1451_v6, %v5064_v0  ;;  %v4315_v31 = vpop.f32.mrb[54].mxu0 }
 0xbc3   : > { %v1463_v28 = vadd.f32 %v4315_v31, %v5064_v0  ;;  %v1454_v12 = vpop.f32.mrb[55].mxu0  ;;  %v5456_v18 = vadd.f32 %v1460_v39, %v1314_v1  ;;  %v5555_v39 = vld [vmem:[#allocation2 + $0x50] ss:$8 sps:$4 sm:$0xff]  }
 0xbc4   : > { %v5450_v47 = vadd.f32 %v1452_v40, %v1312_v30  ;;  %v1455_v48 = vadd.f32 %v1454_v12, %v5064_v0  ;;  %4324 = vmatprep.mubr.msk.bf16.mxu1 %vm349_vm3, %v1482_v37  ;;  %v5576_v12 = vld [vmem:[#allocation2 + $0x70] ss:$8 sps:$4 sm:$0xff]  }
 0xbc5   : > { %v5460_v13 = vadd.f32 %v1463_v28, %v1315_v62  ;;  %4325 = vmatmul.mubr.msk.bf16.vlgmr.msra.gmra.mrb[48].mxu1 %vm349_vm3, %v1483_v14  ;;  %v1480_v35 = vmax.f32 %v5456_v18, 0.0  ;;  %v5570_v28 = vld [vmem:[#allocation2 + $0x60] ss:$8 sps:$4 sm:$0xff]  }
 0xbc6   : > { %v5465_v15 = vadd.f32 %v1455_v48, %v1313_v51  ;;  %4349 = vmatpush3.bf16.msra.mxu1 %v5134_v33  ;;  %v1478_v45 = vmax.f32 %v5450_v47, 0.0  ;;  %v5580_v47 = vld [vmem:[#allocation2 + $0x80] ss:$8 sps:$4 sm:$0xff]  }
 0xbc7   : > { %v1481_v0 = vmax.f32 %v5460_v13, 0.0  ;;  %4350 = vmatprep.subr.bf16.mxu1 %v5146_v4 }
 0xbc8   : > { %v1479_v46 = vmax.f32 %v5465_v15, 0.0 }
 0xbc9   : > { %v1485_v33 = vpack.c.bf16 %v1481_v0, %v1480_v35 }
 0xbca   : > { %v1484_v43 = vpack.c.bf16 %v1479_v46, %v1478_v45  ;;  %4351 = vmatpush3.bf16.msra.mxu1 %v5146_v4 }
 0xbcb   : > { %4352 = vmatprep.subr.bf16.mxu1 %v5150_v5 }
 0xbcc   : > { %4328 = vmatprep.mubr.msk.bf16.mxu1 %vm349_vm3, %v1484_v43 }
 0xbcd   : > { %4329 = vmatmul.mubr.msk.bf16.gmra.mrb[52].mxu1 %vm349_vm3, %v1485_v33 }
 0xbce   : > { %4353 = vmatpush3.bf16.msra.mxu1 %v5150_v5 }
 0xbcf   : > { %4354 = vmatprep.subr.bf16.mxu1 %v5154_v7 }
 0xbd2   : > { %4355 = vmatpush3.bf16.msra.mxu1 %v5154_v7 }
 0xbd3   : > { %4380 = vmatprep.subr.bf16.mxu1 %v5488_v59 }
 0xc98   : > { %v4326_v4 = vpop.f32.mrb[48].mxu1 }
 0xc99   : > { %v1532_v62 = vpop.f32.mrb[49].mxu1 }
 0xc9a   : > { %v4327_v30 = vpop.f32.mrb[50].mxu1 }
 0xc9b   : > { %v1564_v51 = vpack.c.bf16 %v4327_v30, %v4326_v4  ;;  %v1535_v1 = vpop.f32.mrb[51].mxu1  ;;  %v5586_v30 = vld [vmem:[%s6380_s0 + $0x8] sm:$0xff]  }
 0xc9c   : > { %v1563_v49 = vpack.c.bf16 %v1535_v1, %v1532_v62  ;;  %v5600_v1 = vld [vmem:[%s6380_s0 + $0x18] sm:$0xff]  }
 0xc9e   : > { %4332 = vmatprep.subr.bf16.mxu0 %v1563_v49 }
 0xc9f   : > { %4333 = vmatpush3.bf16.msra.mxu0 %v1563_v49  ;;  %v5607_v49 = vld [vmem:[%s6380_s0] sm:$0xff]  }
 0xca0   : > { %v4330_v38 = vpop.f32.mrb[52].mxu1  ;;  %4334 = vmatprep.subr.bf16.mxu0 %v1564_v51 }
 0xca1   : > { %v1548_v54 = vpop.f32.mrb[53].mxu1 }
 0xca2   : > { %v4331_v5 = vpop.f32.mrb[54].mxu1 }
 0xca3   : > { %v1566_v2 = vpack.c.bf16 %v4331_v5, %v4330_v38  ;;  %v1551_v41 = vpop.f32.mrb[55].mxu1  ;;  %4335 = vmatpush3.bf16.msra.mxu0 %v1564_v51  ;;  %v5593_v51 = vld [vmem:[%s6380_s0 + $0x10] sm:$0xff]  }
 0xca4   : > { %v1565_v7 = vpack.c.bf16 %v1551_v41, %v1548_v54 }
 0xca6   : > { %4336 = vmatprep.subr.bf16.mxu0 %v1565_v7 }
 0xca7   : > { %4337 = vmatpush3.bf16.msra.mxu0 %v1565_v7 }
 0xca8   : > { %4338 = vmatprep.subr.bf16.mxu0 %v1566_v2 }
 0xcab   : > { %4339 = vmatpush3.bf16.msra.mxu0 %v1566_v2 }
 0xcae   : > { %4341 = vmatmul.mubr.msk.bf16.vlgmr.msra.gmra.mrb[56].mxu0 %vm349_vm3, %v4940_v56 }
 0xcaf   : > { %4344 = vmatprep.mubr.msk.bf16.mxu0 %vm349_vm3, %v4945_v57 }
 0xcb6   : > { %4345 = vmatmul.mubr.msk.bf16.gmra.mrb[60].mxu0 %vm349_vm3, %v4954_v58 }
 0xcb7   : > { %4372 = vmatprep.mubr.msk.bf16.mxu0 %vm349_vm3, %v4929_v42 }
 0xd81   : > { %v4342_v52 = vpop.f32.mrb[56].mxu0 }
 0xd82   : > { %v1610_v53 = vadd.f32 %v4342_v52, %v5162_v16  ;;  %v1601_v34 = vpop.f32.mrb[57].mxu0 }
 0xd83   : > { %v1602_v44 = vadd.f32 %v1601_v34, %v5162_v16  ;;  %v4343_v3 = vpop.f32.mrb[58].mxu0 }
 0xd84   : > { %v1613_v21 = vadd.f32 %v4343_v3, %v5162_v16  ;;  %v1604_v26 = vpop.f32.mrb[59].mxu0  ;;  %v5509_v58 = vadd.f32 %v1610_v53, %v1476_v25 }
 0xd85   : > { %v5504_v56 = vadd.f32 %v1602_v44, %v1474_v24  ;;  %v1605_v57 = vadd.f32 %v1604_v26, %v5162_v16 }
 0xd86   : > { %v5513_v42 = vadd.f32 %v1613_v21, %v1477_v50  ;;  %v1642_v60 = vmax.f32 %v5509_v58, 0.0 }
 0xd87   : > { %v5517_v55 = vadd.f32 %v1605_v57, %v1475_v23  ;;  %v1640_v63 = vmax.f32 %v5504_v56, 0.0 }
 0xd88   : > { %v1643_v8 = vmax.f32 %v5513_v42, 0.0 }
 0xd89   : > { %v1641_v19 = vmax.f32 %v5517_v55, 0.0  ;;  %v4346_v17 = vpop.f32.mrb[60].mxu0 }
 0xd8a   : > { %v1626_v9 = vadd.f32 %v4346_v17, %v5162_v16  ;;  %v1617_v61 = vpop.f32.mrb[61].mxu0  ;;  %v1649_v36 = vpack.c.bf16 %v1643_v8, %v1642_v60 }
 0xd8b   : > { %v1648_v10 = vpack.c.bf16 %v1641_v19, %v1640_v63  ;;  %v1618_v11 = vadd.f32 %v1617_v61, %v5162_v16  ;;  %v4347_v29 = vpop.f32.mrb[62].mxu0 }
 0xd8c   : > { %v1629_v22 = vadd.f32 %v4347_v29, %v5162_v16  ;;  %v1620_v27 = vpop.f32.mrb[63].mxu0  ;;  %v5542_v23 = vadd.f32 %v1626_v9, %v1480_v35 }
 0xd8d   : > { %v5536_v50 = vadd.f32 %v1618_v11, %v1478_v45  ;;  %v1621_v24 = vadd.f32 %v1620_v27, %v5162_v16  ;;  %4356 = vmatprep.mubr.msk.bf16.mxu1 %vm349_vm3, %v1648_v10  ;;  %v5667_v27 = vld [vmem:[#allocation2 + $0x90] ss:$8 sps:$4 sm:$0xff]  }
 0xd8e   : > { %v5546_v32 = vadd.f32 %v1629_v22, %v1481_v0  ;;  %4357 = vmatmul.mubr.msk.bf16.vlgmr.msra.gmra.mrb[56].mxu1 %vm349_vm3, %v1649_v36  ;;  %v1646_v40 = vmax.f32 %v5542_v23, 0.0 }
 0xd8f   : > { %v5551_v25 = vadd.f32 %v1621_v24, %v1479_v46  ;;  %4381 = vmatpush3.bf16.msra.mxu1 %v5488_v59  ;;  %v1644_v6 = vmax.f32 %v5536_v50, 0.0 }
 0xd90   : > { %v1647_v16 = vmax.f32 %v5546_v32, 0.0  ;;  %4382 = vmatprep.subr.bf16.mxu1 %v5555_v39 }
 0xd91   : > { %v1645_v37 = vmax.f32 %v5551_v25, 0.0 }
 0xd92   : > { %v1651_v14 = vpack.c.bf16 %v1647_v16, %v1646_v40 }
 0xd93   : > { %v1650_v31 = vpack.c.bf16 %v1645_v37, %v1644_v6  ;;  %4383 = vmatpush3.bf16.msra.mxu1 %v5555_v39 }
 0xd94   : > { %4384 = vmatprep.subr.bf16.mxu1 %v5570_v28 }
 0xd95   : > { %4360 = vmatprep.mubr.msk.bf16.mxu1 %vm349_vm3, %v1650_v31 }
 0xd96   : > { %4361 = vmatmul.mubr.msk.bf16.gmra.mrb[60].mxu1 %vm349_vm3, %v1651_v14 }
 0xd97   : > { %4385 = vmatpush3.bf16.msra.mxu1 %v5570_v28 }
 0xd98   : > { %4386 = vmatprep.subr.bf16.mxu1 %v5576_v12 }
 0xd9b   : > { %4387 = vmatpush3.bf16.msra.mxu1 %v5576_v12 }
 0xd9c   : > { %4412 = vmatprep.subr.bf16.mxu1 %v5580_v47 }
 0xe61   : > { %v4358_v48 = vpop.f32.mrb[56].mxu1 }
 0xe62   : > { %v1698_v18 = vpop.f32.mrb[57].mxu1 }
 0xe63   : > { %v4359_v13 = vpop.f32.mrb[58].mxu1 }
 0xe64   : > { %v1730_v15 = vpack.c.bf16 %v4359_v13, %v4358_v48  ;;  %v1701_v0 = vpop.f32.mrb[59].mxu1 }
 0xe65   : > { %v1729_v45 = vpack.c.bf16 %v1701_v0, %v1698_v18 }
 0xe67   : > { %4364 = vmatprep.subr.bf16.mxu0 %v1729_v45 }
 0xe68   : > { %4365 = vmatpush3.bf16.msra.mxu0 %v1729_v45 }
 0xe69   : > { %v4362_v46 = vpop.f32.mrb[60].mxu1  ;;  %4366 = vmatprep.subr.bf16.mxu0 %v1730_v15 }
 0xe6a   : > { %v1714_v35 = vpop.f32.mrb[61].mxu1 }
 0xe6b   : > { %v4363_v43 = vpop.f32.mrb[62].mxu1 }
 0xe6c   : > { %v1732_v33 = vpack.c.bf16 %v4363_v43, %v4362_v46  ;;  %v1717_v4 = vpop.f32.mrb[63].mxu1  ;;  %4367 = vmatpush3.bf16.msra.mxu0 %v1730_v15 }
 0xe6d   : > { %v1731_v62 = vpack.c.bf16 %v1717_v4, %v1714_v35  ;;  %v5706_v4 = vld [vmem:[%s6383_s3 + $0x1] ss:$0 sm:$0xff] }
 0xe6f   : > { %4368 = vmatprep.subr.bf16.mxu0 %v1731_v62 }
 0xe70   : > { %4369 = vmatpush3.bf16.msra.mxu0 %v1731_v62 }
 0xe71   : > { %4370 = vmatprep.subr.bf16.mxu0 %v1732_v33 }
 0xe74   : > { %4371 = vmatpush3.bf16.msra.mxu0 %v1732_v33 }
 0xe77   : > { %4373 = vmatmul.mubr.msk.bf16.vlgmr.msra.gmra.mrb[64].mxu0 %vm349_vm3, %v5586_v30 }
 0xe78   : > { %4376 = vmatprep.mubr.msk.bf16.mxu0 %vm349_vm3, %v5593_v51 }
 0xe7f   : > { %4377 = vmatmul.mubr.msk.bf16.gmra.mrb[68].mxu0 %vm349_vm3, %v5600_v1 }
 0xe80   : > { %4404 = vmatprep.mubr.msk.bf16.mxu0 %vm349_vm3, %v5607_v49 }
 0xf4a   : > { %v4374_v38 = vpop.f32.mrb[64].mxu0 }
 0xf4b   : > { %v1776_v54 = vadd.f32 %v4374_v38, %v5251_v20  ;;  %v1767_v5 = vpop.f32.mrb[65].mxu0 }
 0xf4c   : > { %v1768_v2 = vadd.f32 %v1767_v5, %v5251_v20  ;;  %v4375_v41 = vpop.f32.mrb[66].mxu0 }
 0xf4d   : > { %v1779_v7 = vadd.f32 %v4375_v41, %v5251_v20  ;;  %v1770_v52 = vpop.f32.mrb[67].mxu0  ;;  %v5621_v44 = vadd.f32 %v1776_v54, %v1642_v60 }
 0xf4e   : > { %v5616_v53 = vadd.f32 %v1768_v2, %v1640_v63  ;;  %v1771_v34 = vadd.f32 %v1770_v52, %v5251_v20 }
 0xf4f   : > { %v5625_v3 = vadd.f32 %v1779_v7, %v1643_v8  ;;  %v1808_v17 = vmax.f32 %v5621_v44, 0.0 }
 0xf50   : > { %v5629_v21 = vadd.f32 %v1771_v34, %v1641_v19  ;;  %v1806_v56 = vmax.f32 %v5616_v53, 0.0 }
 0xf51   : > { %v1809_v26 = vmax.f32 %v5625_v3, 0.0 }
 0xf52   : > { %v1807_v57 = vmax.f32 %v5629_v21, 0.0  ;;  %v4378_v63 = vpop.f32.mrb[68].mxu0 }
 0xf53   : > { %v1792_v58 = vadd.f32 %v4378_v63, %v5251_v20  ;;  %v1783_v60 = vpop.f32.mrb[69].mxu0  ;;  %v1815_v19 = vpack.c.bf16 %v1809_v26, %v1808_v17 }
 0xf54   : > { %v1814_v42 = vpack.c.bf16 %v1807_v57, %v1806_v56  ;;  %v1784_v55 = vadd.f32 %v1783_v60, %v5251_v20  ;;  %v4379_v8 = vpop.f32.mrb[70].mxu0 }
 0xf55   : > { %v1795_v9 = vadd.f32 %v4379_v8, %v5251_v20  ;;  %v1786_v61 = vpop.f32.mrb[71].mxu0  ;;  %v5654_v29 = vadd.f32 %v1792_v58, %v1646_v40 }
 0xf56   : > { %v5648_v10 = vadd.f32 %v1784_v55, %v1644_v6  ;;  %v1787_v11 = vadd.f32 %v1786_v61, %v5251_v20  ;;  %4388 = vmatprep.mubr.msk.bf16.mxu1 %vm349_vm3, %v1814_v42  ;;  %v5688_v6 = vld [vmem:[#allocation2 + $0xb0] ss:$8 sps:$4 sm:$0xff]  }
 0xf57   : > { %v5658_v36 = vadd.f32 %v1795_v9, %v1647_v16  ;;  %4389 = vmatmul.mubr.msk.bf16.vlgmr.msra.gmra.mrb[64].mxu1 %vm349_vm3, %v1815_v19  ;;  %v1812_v23 = vmax.f32 %v5654_v29, 0.0  ;;  %v5682_v16 = vld [vmem:[#allocation2 + $0xa0] ss:$8 sps:$4 sm:$0xff]  }
 0xf58   : > { %v5663_v22 = vadd.f32 %v1787_v11, %v1645_v37  ;;  %4413 = vmatpush3.bf16.msra.mxu1 %v5580_v47  ;;  %v1810_v50 = vmax.f32 %v5648_v10, 0.0  ;;  %v5692_v37 = vld [vmem:[#allocation2 + $0xc0] ss:$8 sps:$4 sm:$0xff]  }
 0xf59   : > { %v1813_v20 = vmax.f32 %v5658_v36, 0.0  ;;  %4414 = vmatprep.subr.bf16.mxu1 %v5667_v27 }
 0xf5a   : > { %v1811_v24 = vmax.f32 %v5663_v22, 0.0 }
 0xf5b   : > { %v1817_v25 = vpack.c.bf16 %v1813_v20, %v1812_v23 }
 0xf5c   : > { %v1816_v32 = vpack.c.bf16 %v1811_v24, %v1810_v50  ;;  %4415 = vmatpush3.bf16.msra.mxu1 %v5667_v27 }
 0xf5d   : > { %4416 = vmatprep.subr.bf16.mxu1 %v5682_v16 }
 0xf5e   : > { %4392 = vmatprep.mubr.msk.bf16.mxu1 %vm349_vm3, %v1816_v32 }
 0xf5f   : > { %4393 = vmatmul.mubr.msk.bf16.gmra.mrb[68].mxu1 %vm349_vm3, %v1817_v25 }
 0xf60   : > { %4417 = vmatpush3.bf16.msra.mxu1 %v5682_v16 }
 0xf61   : > { %4418 = vmatprep.subr.bf16.mxu1 %v5688_v6 }
 0xf64   : > { %4419 = vmatpush3.bf16.msra.mxu1 %v5688_v6 }
 0xf65   : > { %4444 = vmatprep.subr.bf16.mxu1 %v5692_v37 }
0x102a   : > { %v4390_v40 = vpop.f32.mrb[64].mxu1 }
0x102b   : > { %v1864_v31 = vpop.f32.mrb[65].mxu1 }
0x102c   : > { %v4391_v14 = vpop.f32.mrb[66].mxu1 }
0x102d   : > { %v1896_v48 = vpack.c.bf16 %v4391_v14, %v4390_v40  ;;  %v1867_v18 = vpop.f32.mrb[67].mxu1  ;;  %v5785_v40 = vld [vmem:[#allocation2 + $0xf0] ss:$8 sps:$4 sm:$0xff]  }
0x102e   : > { %v1895_v13 = vpack.c.bf16 %v1867_v18, %v1864_v31  ;;  %v5789_v31 = vld [vmem:[#allocation2 + $0x100] ss:$8 sps:$4 sm:$0xff]  }
0x1030   : > { %4396 = vmatprep.subr.bf16.mxu0 %v1895_v13 }
0x1031   : > { %4397 = vmatpush3.bf16.msra.mxu0 %v1895_v13 }
0x1032   : > { %v4394_v15 = vpop.f32.mrb[68].mxu1  ;;  %4398 = vmatprep.subr.bf16.mxu0 %v1896_v48 }
0x1033   : > { %v1880_v0 = vpop.f32.mrb[69].mxu1 }
0x1034   : > { %v4395_v45 = vpop.f32.mrb[70].mxu1 }
0x1035   : > { %v1898_v46 = vpack.c.bf16 %v4395_v45, %v4394_v15  ;;  %v1883_v35 = vpop.f32.mrb[71].mxu1  ;;  %4399 = vmatpush3.bf16.msra.mxu0 %v1896_v48 }
0x1036   : > { %v1897_v43 = vpack.c.bf16 %v1883_v35, %v1880_v0 }
0x1038   : > { %4400 = vmatprep.subr.bf16.mxu0 %v1897_v43 }
0x1039   : > { %4401 = vmatpush3.bf16.msra.mxu0 %v1897_v43 }
0x103a   : > { %4402 = vmatprep.subr.bf16.mxu0 %v1898_v46 }
0x103d   : > { %4403 = vmatpush3.bf16.msra.mxu0 %v1898_v46 }
0x1040   : > { %4405 = vmatmul.mubr.msk.bf16.vlgmr.msra.gmra.mrb[72].mxu0 %vm349_vm3, %v5586_v30 }
0x1041   : > { %4408 = vmatprep.mubr.msk.bf16.mxu0 %vm349_vm3, %v5593_v51 }
0x1048   : > { %4409 = vmatmul.mubr.msk.bf16.gmra.mrb[76].mxu0 %vm349_vm3, %v5600_v1 }
0x1049   : > { %4436 = vmatprep.mubr.msk.bf16.mxu0 %vm349_vm3, %v5607_v49 }
0x1113   : > { %v4406_v33 = vpop.f32.mrb[72].mxu0 }
0x1114   : > { %v1942_v62 = vadd.f32 %v5706_v4, %v4406_v33  ;;  %v1933_v38 = vpop.f32.mrb[73].mxu0 }
0x1115   : > { %v1934_v54 = vadd.f32 %v5706_v4, %v1933_v38  ;;  %v4407_v5 = vpop.f32.mrb[74].mxu0 }
0x1116   : > { %v1945_v2 = vadd.f32 %v5706_v4, %v4407_v5  ;;  %v1936_v41 = vpop.f32.mrb[75].mxu0  ;;  %v5718_v34 = vadd.f32 %v1942_v62, %v1808_v17 }
0x1117   : > { %v5713_v7 = vadd.f32 %v1934_v54, %v1806_v56  ;;  %v1937_v52 = vadd.f32 %v5706_v4, %v1936_v41  ;;  %v5803_v54 = vld [vmem:[%s6383_s3 + $0x2] ss:$0 sm:$0xff] }
0x1118   : > { %v5722_v63 = vadd.f32 %v1945_v2, %v1809_v26  ;;  %v1974_v55 = vmax.f32 %v5718_v34, 0.0 }
0x1119   : > { %v5726_v58 = vadd.f32 %v1937_v52, %v1807_v57  ;;  %v1972_v53 = vmax.f32 %v5713_v7, 0.0 }
0x111a   : > { %v1975_v60 = vmax.f32 %v5722_v63, 0.0 }
0x111b   : > { %v1973_v56 = vmax.f32 %v5726_v58, 0.0  ;;  %v4410_v42 = vpop.f32.mrb[76].mxu0 }
0x111c   : > { %v1958_v44 = vadd.f32 %v5706_v4, %v4410_v42  ;;  %v1949_v17 = vpop.f32.mrb[77].mxu0  ;;  %v1981_v57 = vpack.c.bf16 %v1975_v60, %v1974_v55 }
0x111d   : > { %v1980_v3 = vpack.c.bf16 %v1973_v56, %v1972_v53  ;;  %v1950_v21 = vadd.f32 %v5706_v4, %v1949_v17  ;;  %v4411_v26 = vpop.f32.mrb[78].mxu0 }
0x111e   : > { %v1961_v8 = vadd.f32 %v5706_v4, %v4411_v26  ;;  %v1952_v19 = vpop.f32.mrb[79].mxu0  ;;  %v5751_v11 = vadd.f32 %v1958_v44, %v1812_v23  ;;  %v5779_v23 = vld [vmem:[#allocation2 + $0xe0] ss:$8 sps:$4 sm:$0xff]  }
0x111f   : > { %v5745_v9 = vadd.f32 %v1950_v21, %v1810_v50  ;;  %v1953_v61 = vadd.f32 %v5706_v4, %v1952_v19  ;;  %4420 = vmatprep.mubr.msk.bf16.mxu1 %vm349_vm3, %v1980_v3  ;;  %v5764_v50 = vld [vmem:[#allocation2 + $0xd0] ss:$8 sps:$4 sm:$0xff]  }
0x1120   : > { %v5755_v32 = vadd.f32 %v1961_v8, %v1813_v20  ;;  %4421 = vmatmul.mubr.msk.bf16.vlgmr.msra.gmra.mrb[72].mxu1 %vm349_vm3, %v1981_v57  ;;  %v1978_v20 = vmax.f32 %v5751_v11, 0.0 }
0x1121   : > { %v5760_v25 = vadd.f32 %v1953_v61, %v1811_v24  ;;  %4445 = vmatpush3.bf16.msra.mxu1 %v5692_v37  ;;  %v1976_v29 = vmax.f32 %v5745_v9, 0.0 }
0x1122   : > { %v1979_v10 = vmax.f32 %v5755_v32, 0.0  ;;  %4446 = vmatprep.subr.bf16.mxu1 %v5764_v50 }
0x1123   : > { %v1977_v36 = vmax.f32 %v5760_v25, 0.0 }
0x1124   : > { %v1983_v24 = vpack.c.bf16 %v1979_v10, %v1978_v20 }
0x1125   : > { %v1982_v22 = vpack.c.bf16 %v1977_v36, %v1976_v29  ;;  %4447 = vmatpush3.bf16.msra.mxu1 %v5764_v50 }
0x1126   : > { %4448 = vmatprep.subr.bf16.mxu1 %v5779_v23 }
0x1127   : > { %4424 = vmatprep.mubr.msk.bf16.mxu1 %vm349_vm3, %v1982_v22 }
0x1128   : > { %4425 = vmatmul.mubr.msk.bf16.gmra.mrb[76].mxu1 %vm349_vm3, %v1983_v24 }
0x1129   : > { %4449 = vmatpush3.bf16.msra.mxu1 %v5779_v23 }
0x112a   : > { %4450 = vmatprep.subr.bf16.mxu1 %v5785_v40 }
0x112d   : > { %4451 = vmatpush3.bf16.msra.mxu1 %v5785_v40 }
0x112e   : > { %4476 = vmatprep.subr.bf16.mxu1 %v5789_v31 }
0x11f3   : > { %v4422_v14 = vpop.f32.mrb[72].mxu1 }
0x11f4   : > { %v2030_v48 = vpop.f32.mrb[73].mxu1 }
0x11f5   : > { %v4423_v18 = vpop.f32.mrb[74].mxu1 }
0x11f6   : > { %v2062_v13 = vpack.c.bf16 %v4423_v18, %v4422_v14  ;;  %v2033_v15 = vpop.f32.mrb[75].mxu1 }
0x11f7   : > { %v2061_v0 = vpack.c.bf16 %v2033_v15, %v2030_v48 }
0x11f9   : > { %4428 = vmatprep.subr.bf16.mxu0 %v2061_v0 }
0x11fa   : > { %4429 = vmatpush3.bf16.msra.mxu0 %v2061_v0  ;;  %v5882_v0 = vld [vmem:[#allocation2 + $0x130] ss:$8 sps:$4 sm:$0xff]  }
0x11fb   : > { %v4426_v45 = vpop.f32.mrb[76].mxu1  ;;  %4430 = vmatprep.subr.bf16.mxu0 %v2062_v13 }
0x11fc   : > { %v2046_v46 = vpop.f32.mrb[77].mxu1 }
0x11fd   : > { %v4427_v35 = vpop.f32.mrb[78].mxu1 }
0x11fe   : > { %v2064_v43 = vpack.c.bf16 %v4427_v35, %v4426_v45  ;;  %v2049_v33 = vpop.f32.mrb[79].mxu1  ;;  %4431 = vmatpush3.bf16.msra.mxu0 %v2062_v13 }
0x11ff   : > { %v2063_v62 = vpack.c.bf16 %v2049_v33, %v2046_v46 }
0x1201   : > { %4432 = vmatprep.subr.bf16.mxu0 %v2063_v62 }
0x1202   : > { %4433 = vmatpush3.bf16.msra.mxu0 %v2063_v62 }
0x1203   : > { %4434 = vmatprep.subr.bf16.mxu0 %v2064_v43 }
0x1206   : > { %4435 = vmatpush3.bf16.msra.mxu0 %v2064_v43 }
0x1209   : > { %4437 = vmatmul.mubr.msk.bf16.vlgmr.msra.gmra.mrb[80].mxu0 %vm349_vm3, %v5586_v30 }
0x120a   : > { %4440 = vmatprep.mubr.msk.bf16.mxu0 %vm349_vm3, %v5593_v51 }
0x1211   : > { %4441 = vmatmul.mubr.msk.bf16.gmra.mrb[84].mxu0 %vm349_vm3, %v5600_v1 }
0x1212   : > { %4468 = vmatprep.mubr.msk.bf16.mxu0 %vm349_vm3, %v5607_v49 }
0x12dc   : > { %v4438_v38 = vpop.f32.mrb[80].mxu0 }
0x12dd   : > { %v2108_v5 = vadd.f32 %v5803_v54, %v4438_v38  ;;  %v2099_v2 = vpop.f32.mrb[81].mxu0 }
0x12de   : > { %v2100_v41 = vadd.f32 %v5803_v54, %v2099_v2  ;;  %v4439_v52 = vpop.f32.mrb[82].mxu0 }
0x12df   : > { %v2111_v42 = vadd.f32 %v5803_v54, %v4439_v52  ;;  %v2102_v44 = vpop.f32.mrb[83].mxu0  ;;  %v5815_v21 = vadd.f32 %v2108_v5, %v1974_v55 }
0x12e0   : > { %v5810_v17 = vadd.f32 %v2100_v41, %v1972_v53  ;;  %v2103_v3 = vadd.f32 %v5803_v54, %v2102_v44 }
0x12e1   : > { %v5819_v26 = vadd.f32 %v2111_v42, %v1975_v60  ;;  %v2140_v61 = vmax.f32 %v5815_v21, 0.0 }
0x12e2   : > { %v5823_v57 = vadd.f32 %v2103_v3, %v1973_v56  ;;  %v2138_v7 = vmax.f32 %v5810_v17, 0.0  ;;  %v5898_v3 = vld [vmem:[%s6383_s3 + $0x3] ss:$0 sm:$0xff] }
0x12e3   : > { %v2141_v8 = vmax.f32 %v5819_v26, 0.0 }
0x12e4   : > { %v2139_v53 = vmax.f32 %v5823_v57, 0.0  ;;  %v4442_v19 = vpop.f32.mrb[84].mxu0 }
0x12e5   : > { %v2124_v34 = vadd.f32 %v5803_v54, %v4442_v19  ;;  %v2115_v55 = vpop.f32.mrb[85].mxu0  ;;  %v2147_v56 = vpack.c.bf16 %v2141_v8, %v2140_v61 }
0x12e6   : > { %v2146_v63 = vpack.c.bf16 %v2139_v53, %v2138_v7  ;;  %v2116_v58 = vadd.f32 %v5803_v54, %v2115_v55  ;;  %v4443_v60 = vpop.f32.mrb[86].mxu0 }
0x12e7   : > { %v2127_v22 = vadd.f32 %v5803_v54, %v4443_v60  ;;  %v2118_v24 = vpop.f32.mrb[87].mxu0  ;;  %v5848_v18 = vadd.f32 %v2124_v34, %v1978_v20  ;;  %v5876_v20 = vld [vmem:[#allocation2 + $0x120] ss:$8 sps:$4 sm:$0xff]  }
0x12e8   : > { %v5842_v14 = vadd.f32 %v2116_v58, %v1976_v29  ;;  %v2119_v48 = vadd.f32 %v5803_v54, %v2118_v24  ;;  %4452 = vmatprep.mubr.msk.bf16.mxu1 %vm349_vm3, %v2146_v63  ;;  %v5861_v29 = vld [vmem:[#allocation2 + $0x110] ss:$8 sps:$4 sm:$0xff]  }
0x12e9   : > { %v5852_v13 = vadd.f32 %v2127_v22, %v1979_v10  ;;  %4453 = vmatmul.mubr.msk.bf16.vlgmr.msra.gmra.mrb[80].mxu1 %vm349_vm3, %v2147_v56  ;;  %v2144_v10 = vmax.f32 %v5848_v18, 0.0 }
0x12ea   : > { %v5857_v15 = vadd.f32 %v2119_v48, %v1977_v36  ;;  %4477 = vmatpush3.bf16.msra.mxu1 %v5789_v31  ;;  %v2142_v11 = vmax.f32 %v5842_v14, 0.0 }
0x12eb   : > { %v2145_v9 = vmax.f32 %v5852_v13, 0.0  ;;  %4478 = vmatprep.subr.bf16.mxu1 %v5861_v29 }
0x12ec   : > { %v2143_v32 = vmax.f32 %v5857_v15, 0.0 }
0x12ed   : > { %v2149_v36 = vpack.c.bf16 %v2145_v9, %v2144_v10 }
0x12ee   : > { %v2148_v25 = vpack.c.bf16 %v2143_v32, %v2142_v11  ;;  %4479 = vmatpush3.bf16.msra.mxu1 %v5861_v29 }
0x12ef   : > { %4480 = vmatprep.subr.bf16.mxu1 %v5876_v20 }
0x12f0   : > { %4456 = vmatprep.mubr.msk.bf16.mxu1 %vm349_vm3, %v2148_v25 }
0x12f1   : > { %4457 = vmatmul.mubr.msk.bf16.gmra.mrb[84].mxu1 %vm349_vm3, %v2149_v36 }
0x12f2   : > { %4481 = vmatpush3.bf16.msra.mxu1 %v5876_v20 }
0x12f3   : > { %4482 = vmatprep.subr.bf16.mxu1 %v5882_v0 }
0x12f6   : > { %4483 = vmatpush3.bf16.msra.mxu1 %v5882_v0 }
0x12f7   : > { %4508 = vmatprep.subr.bf16.mxu1 %v5488_v59 }
0x13bc   : > { %v4454_v45 = vpop.f32.mrb[80].mxu1 }
0x13bd   : > { %v2196_v46 = vpop.f32.mrb[81].mxu1 }
0x13be   : > { %v4455_v35 = vpop.f32.mrb[82].mxu1 }
0x13bf   : > { %v2228_v43 = vpack.c.bf16 %v4455_v35, %v4454_v45  ;;  %v2199_v33 = vpop.f32.mrb[83].mxu1 }
0x13c0   : > { %v2227_v62 = vpack.c.bf16 %v2199_v33, %v2196_v46 }
0x13c2   : > { %4460 = vmatprep.subr.bf16.mxu0 %v2227_v62 }
0x13c3   : > { %4461 = vmatpush3.bf16.msra.mxu0 %v2227_v62 }
0x13c4   : > { %v4458_v38 = vpop.f32.mrb[84].mxu1  ;;  %4462 = vmatprep.subr.bf16.mxu0 %v2228_v43 }
0x13c5   : > { %v2212_v5 = vpop.f32.mrb[85].mxu1 }
0x13c6   : > { %v4459_v2 = vpop.f32.mrb[86].mxu1 }
0x13c7   : > { %v2230_v41 = vpack.c.bf16 %v4459_v2, %v4458_v38  ;;  %v2215_v52 = vpop.f32.mrb[87].mxu1  ;;  %4463 = vmatpush3.bf16.msra.mxu0 %v2228_v43 }
0x13c8   : > { %v2229_v42 = vpack.c.bf16 %v2215_v52, %v2212_v5 }
0x13ca   : > { %4464 = vmatprep.subr.bf16.mxu0 %v2229_v42 }
0x13cb   : > { %4465 = vmatpush3.bf16.msra.mxu0 %v2229_v42 }
0x13cc   : > { %4466 = vmatprep.subr.bf16.mxu0 %v2230_v41 }
0x13cf   : > { %4467 = vmatpush3.bf16.msra.mxu0 %v2230_v41 }
0x13d2   : > { %4469 = vmatmul.mubr.msk.bf16.vlgmr.msra.gmra.mrb[88].mxu0 %vm349_vm3, %v5586_v30 }
0x13d3   : > { %4472 = vmatprep.mubr.msk.bf16.mxu0 %vm349_vm3, %v5593_v51 }
0x13da   : > { %4473 = vmatmul.mubr.msk.bf16.gmra.mrb[92].mxu0 %vm349_vm3, %v5600_v1 }
0x13db   : > { %4500 = vmatprep.mubr.msk.bf16.mxu0 %vm349_vm3, %v5607_v49 }
0x14a5   : > { %v4470_v44 = vpop.f32.mrb[88].mxu0 }
0x14a6   : > { %v2274_v19 = vadd.f32 %v5898_v3, %v4470_v44  ;;  %v2265_v34 = vpop.f32.mrb[89].mxu0 }
0x14a7   : > { %v2266_v55 = vadd.f32 %v5898_v3, %v2265_v34  ;;  %v4471_v63 = vpop.f32.mrb[90].mxu0 }
0x14a8   : > { %v2277_v58 = vadd.f32 %v5898_v3, %v4471_v63  ;;  %v2268_v60 = vpop.f32.mrb[91].mxu0  ;;  %v5910_v24 = vadd.f32 %v2274_v19, %v2140_v61  ;;  %v5987_v63 = vld [vmem:[%s6383_s3 + $0x4] ss:$0 sm:$0xff] }
0x14a9   : > { %v5905_v56 = vadd.f32 %v2266_v55, %v2138_v7  ;;  %v2269_v22 = vadd.f32 %v5898_v3, %v2268_v60 }
0x14aa   : > { %v5914_v48 = vadd.f32 %v2277_v58, %v2141_v8  ;;  %v2306_v46 = vmax.f32 %v5910_v24, 0.0 }
0x14ab   : > { %v5918_v25 = vadd.f32 %v2269_v22, %v2139_v53  ;;  %v2304_v17 = vmax.f32 %v5905_v56, 0.0 }
0x14ac   : > { %v2307_v36 = vmax.f32 %v5914_v48, 0.0 }
0x14ad   : > { %v2305_v7 = vmax.f32 %v5918_v25, 0.0  ;;  %v4474_v45 = vpop.f32.mrb[92].mxu0 }
0x14ae   : > { %v2290_v21 = vadd.f32 %v5898_v3, %v4474_v45  ;;  %v2281_v61 = vpop.f32.mrb[93].mxu0  ;;  %v2313_v53 = vpack.c.bf16 %v2307_v36, %v2306_v46 }
0x14af   : > { %v2312_v26 = vpack.c.bf16 %v2305_v7, %v2304_v17  ;;  %v2282_v57 = vadd.f32 %v5898_v3, %v2281_v61  ;;  %v4475_v8 = vpop.f32.mrb[94].mxu0 }
0x14b0   : > { %v2293_v35 = vadd.f32 %v5898_v3, %v4475_v8  ;;  %v2284_v43 = vpop.f32.mrb[95].mxu0  ;;  %v5943_v38 = vadd.f32 %v2290_v21, %v2144_v10 }
0x14b1   : > { %v5937_v33 = vadd.f32 %v2282_v57, %v2142_v11  ;;  %v2285_v62 = vadd.f32 %v5898_v3, %v2284_v43  ;;  %4484 = vmatprep.mubr.msk.bf16.mxu1 %vm349_vm3, %v2312_v26 }
0x14b2   : > { %v5947_v5 = vadd.f32 %v2293_v35, %v2145_v9  ;;  %4485 = vmatmul.mubr.msk.bf16.vlgmr.msra.gmra.mrb[88].mxu1 %vm349_vm3, %v2313_v53  ;;  %v2310_v13 = vmax.f32 %v5943_v38, 0.0 }
0x14b3   : > { %v5952_v2 = vadd.f32 %v2285_v62, %v2143_v32  ;;  %4509 = vmatpush3.bf16.msra.mxu1 %v5488_v59  ;;  %v2308_v18 = vmax.f32 %v5937_v33, 0.0 }
0x14b4   : > { %v2311_v14 = vmax.f32 %v5947_v5, 0.0  ;;  %4510 = vmatprep.subr.bf16.mxu1 %v5555_v39 }
0x14b5   : > { %v2309_v11 = vmax.f32 %v5952_v2, 0.0 }
0x14b6   : > { %v2315_v59 = vpack.c.bf16 %v2311_v14, %v2310_v13 }
0x14b7   : > { %v2314_v9 = vpack.c.bf16 %v2309_v11, %v2308_v18  ;;  %4511 = vmatpush3.bf16.msra.mxu1 %v5555_v39 }
0x14b8   : > { %4512 = vmatprep.subr.bf16.mxu1 %v5570_v28 }
0x14b9   : > { %4488 = vmatprep.mubr.msk.bf16.mxu1 %vm349_vm3, %v2314_v9 }
0x14ba   : > { %4489 = vmatmul.mubr.msk.bf16.gmra.mrb[92].mxu1 %vm349_vm3, %v2315_v59 }
0x14bb   : > { %4513 = vmatpush3.bf16.msra.mxu1 %v5570_v28 }
0x14bc   : > { %4514 = vmatprep.subr.bf16.mxu1 %v5576_v12 }
0x14bf   : > { %4515 = vmatpush3.bf16.msra.mxu1 %v5576_v12 }
0x14c0   : > { %4540 = vmatprep.subr.bf16.mxu1 %v5580_v47 }
0x1585   : > { %v4486_v39 = vpop.f32.mrb[88].mxu1 }
0x1586   : > { %v2362_v15 = vpop.f32.mrb[89].mxu1 }
0x1587   : > { %v4487_v32 = vpop.f32.mrb[90].mxu1 }
0x1588   : > { %v2394_v10 = vpack.c.bf16 %v4487_v32, %v4486_v39  ;;  %v2365_v41 = vpop.f32.mrb[91].mxu1 }
0x1589   : > { %v2393_v52 = vpack.c.bf16 %v2365_v41, %v2362_v15 }
0x158b   : > { %4492 = vmatprep.subr.bf16.mxu0 %v2393_v52 }
0x158c   : > { %4493 = vmatpush3.bf16.msra.mxu0 %v2393_v52 }
0x158d   : > { %v4490_v42 = vpop.f32.mrb[92].mxu1  ;;  %4494 = vmatprep.subr.bf16.mxu0 %v2394_v10 }
0x158e   : > { %v2378_v44 = vpop.f32.mrb[93].mxu1 }
0x158f   : > { %v4491_v19 = vpop.f32.mrb[94].mxu1 }
0x1590   : > { %v2396_v34 = vpack.c.bf16 %v4491_v19, %v4490_v42  ;;  %v2381_v28 = vpop.f32.mrb[95].mxu1  ;;  %4495 = vmatpush3.bf16.msra.mxu0 %v2394_v10 }
0x1591   : > { %v2395_v55 = vpack.c.bf16 %v2381_v28, %v2378_v44 }
0x1593   : > { %4496 = vmatprep.subr.bf16.mxu0 %v2395_v55 }
0x1594   : > { %4497 = vmatpush3.bf16.msra.mxu0 %v2395_v55 }
0x1595   : > { %4498 = vmatprep.subr.bf16.mxu0 %v2396_v34 }
0x1598   : > { %4499 = vmatpush3.bf16.msra.mxu0 %v2396_v34 }
0x159b   : > { %4501 = vmatmul.mubr.msk.bf16.vlgmr.msra.gmra.mrb[96].mxu0 %vm349_vm3, %v5586_v30 }
0x159c   : > { %4504 = vmatprep.mubr.msk.bf16.mxu0 %vm349_vm3, %v5593_v51 }
0x15a3   : > { %4505 = vmatmul.mubr.msk.bf16.gmra.mrb[100].mxu0 %vm349_vm3, %v5600_v1 }
0x15a4   : > { %4532 = vmatprep.mubr.msk.bf16.mxu0 %vm349_vm3, %v5607_v49 }
0x166e   : > { %v4502_v12 = vpop.f32.mrb[96].mxu0 }
0x166f   : > { %v2440_v58 = vadd.f32 %v5987_v63, %v4502_v12  ;;  %v2431_v60 = vpop.f32.mrb[97].mxu0 }
0x1670   : > { %v2432_v22 = vadd.f32 %v5987_v63, %v2431_v60  ;;  %v4503_v45 = vpop.f32.mrb[98].mxu0 }
0x1671   : > { %v2443_v21 = vadd.f32 %v5987_v63, %v4503_v45  ;;  %v2434_v61 = vpop.f32.mrb[99].mxu0  ;;  %v5999_v8 = vadd.f32 %v2440_v58, %v2306_v46 }
0x1672   : > { %v5994_v26 = vadd.f32 %v2432_v22, %v2304_v17  ;;  %v2435_v57 = vadd.f32 %v5987_v63, %v2434_v61 }
0x1673   : > { %v6003_v53 = vadd.f32 %v2443_v21, %v2307_v36  ;;  %v2472_v9 = vmax.f32 %v5999_v8, 0.0 }
0x1674   : > { %v6007_v35 = vadd.f32 %v2435_v57, %v2305_v7  ;;  %v2470_v56 = vmax.f32 %v5994_v26, 0.0 }
0x1675   : > { %v2473_v43 = vmax.f32 %v6003_v53, 0.0 }
0x1676   : > { %v2471_v17 = vmax.f32 %v6007_v35, 0.0  ;;  %v4506_v62 = vpop.f32.mrb[100].mxu0 }
0x1677   : > { %v2456_v24 = vadd.f32 %v5987_v63, %v4506_v62  ;;  %v2447_v46 = vpop.f32.mrb[101].mxu0  ;;  %v2479_v7 = vpack.c.bf16 %v2473_v43, %v2472_v9 }
0x1678   : > { %v2478_v48 = vpack.c.bf16 %v2471_v17, %v2470_v56  ;;  %v2448_v25 = vadd.f32 %v5987_v63, %v2447_v46  ;;  %v4507_v36 = vpop.f32.mrb[102].mxu0 }
0x1679   : > { %v2459_v59 = vadd.f32 %v5987_v63, %v4507_v36  ;;  %v2450_v39 = vpop.f32.mrb[103].mxu0  ;;  %v6032_v10 = vadd.f32 %v2456_v24, %v2310_v13 }
0x167a   : > { %v6026_v15 = vadd.f32 %v2448_v25, %v2308_v18  ;;  %v2451_v32 = vadd.f32 %v5987_v63, %v2450_v39  ;;  %4516 = vmatprep.mubr.msk.bf16.mxu1 %vm349_vm3, %v2478_v48 }
0x167b   : > { %v6036_v41 = vadd.f32 %v2459_v59, %v2311_v14  ;;  %4517 = vmatmul.mubr.msk.bf16.vlgmr.msra.gmra.mrb[96].mxu1 %vm349_vm3, %v2479_v7  ;;  %v2476_v5 = vmax.f32 %v6032_v10, 0.0 }
0x167c   : > { %v6041_v52 = vadd.f32 %v2451_v32, %v2309_v11  ;;  %4541 = vmatpush3.bf16.msra.mxu1 %v5580_v47  ;;  %v2474_v38 = vmax.f32 %v6026_v15, 0.0 }
0x167d   : > { %v2477_v33 = vmax.f32 %v6036_v41, 0.0  ;;  %4542 = vmatprep.subr.bf16.mxu1 %v5667_v27 }
0x167e   : > { %v2475_v18 = vmax.f32 %v6041_v52, 0.0 }
0x167f   : > { %v2481_v47 = vpack.c.bf16 %v2477_v33, %v2476_v5 }
0x1680   : > { %v2480_v14 = vpack.c.bf16 %v2475_v18, %v2474_v38  ;;  %4543 = vmatpush3.bf16.msra.mxu1 %v5667_v27 }
0x1681   : > { %4544 = vmatprep.subr.bf16.mxu1 %v5682_v16 }
0x1682   : > { %4520 = vmatprep.mubr.msk.bf16.mxu1 %vm349_vm3, %v2480_v14 }
0x1683   : > { %4521 = vmatmul.mubr.msk.bf16.gmra.mrb[100].mxu1 %vm349_vm3, %v2481_v47 }
0x1684   : > { %4545 = vmatpush3.bf16.msra.mxu1 %v5682_v16 }
0x1685   : > { %4546 = vmatprep.subr.bf16.mxu1 %v5688_v6 }
0x1688   : > { %4547 = vmatpush3.bf16.msra.mxu1 %v5688_v6 }
0x1689   : > { %4572 = vmatprep.subr.bf16.mxu1 %v5692_v37 }
0x174e   : > { %v4518_v27 = vpop.f32.mrb[96].mxu1 }
0x174f   : > { %v2528_v2 = vpop.f32.mrb[97].mxu1 }
0x1750   : > { %v4519_v11 = vpop.f32.mrb[98].mxu1 }
0x1751   : > { %v2560_v13 = vpack.c.bf16 %v4519_v11, %v4518_v27  ;;  %v2531_v42 = vpop.f32.mrb[99].mxu1 }
0x1752   : > { %v2559_v44 = vpack.c.bf16 %v2531_v42, %v2528_v2 }
0x1754   : > { %4524 = vmatprep.subr.bf16.mxu0 %v2559_v44 }
0x1755   : > { %4525 = vmatpush3.bf16.msra.mxu0 %v2559_v44 }
0x1756   : > { %v4522_v19 = vpop.f32.mrb[100].mxu1  ;;  %4526 = vmatprep.subr.bf16.mxu0 %v2560_v13 }
0x1757   : > { %v2544_v34 = vpop.f32.mrb[101].mxu1 }
0x1758   : > { %v4523_v28 = vpop.f32.mrb[102].mxu1 }
0x1759   : > { %v2562_v55 = vpack.c.bf16 %v4523_v28, %v4522_v19  ;;  %v2547_v16 = vpop.f32.mrb[103].mxu1  ;;  %4527 = vmatpush3.bf16.msra.mxu0 %v2560_v13 }
0x175a   : > { %v2561_v12 = vpack.c.bf16 %v2547_v16, %v2544_v34 }
0x175c   : > { %4528 = vmatprep.subr.bf16.mxu0 %v2561_v12 }
0x175d   : > { %4529 = vmatpush3.bf16.msra.mxu0 %v2561_v12 }
0x175e   : > { %4530 = vmatprep.subr.bf16.mxu0 %v2562_v55 }
0x1761   : > { %4531 = vmatpush3.bf16.msra.mxu0 %v2562_v55 }
0x1764   : > { %4533 = vmatmul.mubr.msk.bf16.vlgmr.msra.gmra.mrb[104].mxu0 %vm349_vm3, %v5586_v30 }
0x1765   : > { %4536 = vmatprep.mubr.msk.bf16.mxu0 %vm349_vm3, %v5593_v51 }
0x176c   : > { %4537 = vmatmul.mubr.msk.bf16.gmra.mrb[108].mxu0 %vm349_vm3, %v5600_v1 }
0x176d   : > { %4564 = vmatprep.mubr.msk.bf16.mxu0 %vm349_vm3, %v5607_v49 }
0x1837   : > { %v4534_v6 = vpop.f32.mrb[104].mxu0 }
0x1838   : > { %v2606_v58 = vadd.f32 %v5706_v4, %v4534_v6  ;;  %v2597_v60 = vpop.f32.mrb[105].mxu0 }
0x1839   : > { %v2598_v22 = vadd.f32 %v5706_v4, %v2597_v60  ;;  %v4535_v45 = vpop.f32.mrb[106].mxu0 }
0x183a   : > { %v2609_v21 = vadd.f32 %v5706_v4, %v4535_v45  ;;  %v2600_v61 = vpop.f32.mrb[107].mxu0  ;;  %v6081_v24 = vadd.f32 %v2606_v58, %v2472_v9 }
0x183b   : > { %v6076_v57 = vadd.f32 %v2598_v22, %v2470_v56  ;;  %v2601_v62 = vadd.f32 %v5706_v4, %v2600_v61 }
0x183c   : > { %v6085_v46 = vadd.f32 %v2609_v21, %v2473_v43  ;;  %v2638_v7 = vmax.f32 %v6081_v24, 0.0 }
0x183d   : > { %v6089_v48 = vadd.f32 %v2601_v62, %v2471_v17  ;;  %v2636_v26 = vmax.f32 %v6076_v57, 0.0 }
0x183e   : > { %v2639_v25 = vmax.f32 %v6085_v46, 0.0 }
0x183f   : > { %v2637_v56 = vmax.f32 %v6089_v48, 0.0  ;;  %v4538_v36 = vpop.f32.mrb[108].mxu0 }
0x1840   : > { %v2622_v8 = vadd.f32 %v5706_v4, %v4538_v36  ;;  %v2613_v9 = vpop.f32.mrb[109].mxu0  ;;  %v2645_v17 = vpack.c.bf16 %v2639_v25, %v2638_v7 }
0x1841   : > { %v2644_v53 = vpack.c.bf16 %v2637_v56, %v2636_v26  ;;  %v2614_v35 = vadd.f32 %v5706_v4, %v2613_v9  ;;  %v4539_v43 = vpop.f32.mrb[110].mxu0 }
0x1842   : > { %v2625_v59 = vadd.f32 %v5706_v4, %v4539_v43  ;;  %v2616_v39 = vpop.f32.mrb[111].mxu0  ;;  %v6112_v14 = vadd.f32 %v2622_v8, %v2476_v5 }
0x1843   : > { %v6106_v15 = vadd.f32 %v2614_v35, %v2474_v38  ;;  %v2617_v32 = vadd.f32 %v5706_v4, %v2616_v39  ;;  %4548 = vmatprep.mubr.msk.bf16.mxu1 %vm349_vm3, %v2644_v53 }
0x1844   : > { %v6116_v47 = vadd.f32 %v2625_v59, %v2477_v33  ;;  %4549 = vmatmul.mubr.msk.bf16.vlgmr.msra.gmra.mrb[104].mxu1 %vm349_vm3, %v2645_v17  ;;  %v2642_v41 = vmax.f32 %v6112_v14, 0.0 }
0x1845   : > { %v6121_v27 = vadd.f32 %v2617_v32, %v2475_v18  ;;  %4573 = vmatpush3.bf16.msra.mxu1 %v5692_v37  ;;  %v2640_v10 = vmax.f32 %v6106_v15, 0.0 }
0x1846   : > { %v2643_v4 = vmax.f32 %v6116_v47, 0.0  ;;  %4574 = vmatprep.subr.bf16.mxu1 %v5764_v50 }
0x1847   : > { %v2641_v38 = vmax.f32 %v6121_v27, 0.0 }
0x1848   : > { %v2647_v37 = vpack.c.bf16 %v2643_v4, %v2642_v41 }
0x1849   : > { %v2646_v33 = vpack.c.bf16 %v2641_v38, %v2640_v10  ;;  %4575 = vmatpush3.bf16.msra.mxu1 %v5764_v50 }
0x184a   : > { %4576 = vmatprep.subr.bf16.mxu1 %v5779_v23 }
0x184b   : > { %4552 = vmatprep.mubr.msk.bf16.mxu1 %vm349_vm3, %v2646_v33 }
0x184c   : > { %4553 = vmatmul.mubr.msk.bf16.gmra.mrb[108].mxu1 %vm349_vm3, %v2647_v37 }
0x184d   : > { %4577 = vmatpush3.bf16.msra.mxu1 %v5779_v23 }
0x184e   : > { %4578 = vmatprep.subr.bf16.mxu1 %v5785_v40 }
0x1851   : > { %4579 = vmatpush3.bf16.msra.mxu1 %v5785_v40 }
0x1852   : > { %4604 = vmatprep.subr.bf16.mxu1 %v5789_v31 }
0x1917   : > { %v4550_v50 = vpop.f32.mrb[104].mxu1 }
0x1918   : > { %v2694_v52 = vpop.f32.mrb[105].mxu1 }
0x1919   : > { %v4551_v18 = vpop.f32.mrb[106].mxu1 }
0x191a   : > { %v2726_v5 = vpack.c.bf16 %v4551_v18, %v4550_v50  ;;  %v2697_v2 = vpop.f32.mrb[107].mxu1 }
0x191b   : > { %v2725_v11 = vpack.c.bf16 %v2697_v2, %v2694_v52 }
0x191d   : > { %4556 = vmatprep.subr.bf16.mxu0 %v2725_v11 }
0x191e   : > { %4557 = vmatpush3.bf16.msra.mxu0 %v2725_v11 }
0x191f   : > { %v4554_v13 = vpop.f32.mrb[108].mxu1  ;;  %4558 = vmatprep.subr.bf16.mxu0 %v2726_v5 }
0x1920   : > { %v2710_v42 = vpop.f32.mrb[109].mxu1 }
0x1921   : > { %v4555_v44 = vpop.f32.mrb[110].mxu1 }
0x1922   : > { %v2728_v19 = vpack.c.bf16 %v4555_v44, %v4554_v13  ;;  %v2713_v23 = vpop.f32.mrb[111].mxu1  ;;  %4559 = vmatpush3.bf16.msra.mxu0 %v2726_v5 }
0x1923   : > { %v2727_v34 = vpack.c.bf16 %v2713_v23, %v2710_v42 }
0x1925   : > { %4560 = vmatprep.subr.bf16.mxu0 %v2727_v34 }
0x1926   : > { %4561 = vmatpush3.bf16.msra.mxu0 %v2727_v34 }
0x1927   : > { %4562 = vmatprep.subr.bf16.mxu0 %v2728_v19 }
0x192a   : > { %4563 = vmatpush3.bf16.msra.mxu0 %v2728_v19 }
0x192d   : > { %4565 = vmatmul.mubr.msk.bf16.vlgmr.msra.gmra.mrb[112].mxu0 %vm349_vm3, %v5586_v30 }
0x192e   : > { %4568 = vmatprep.mubr.msk.bf16.mxu0 %vm349_vm3, %v5593_v51 }
0x1935   : > { %4569 = vmatmul.mubr.msk.bf16.gmra.mrb[116].mxu0 %vm349_vm3, %v5600_v1 }
0x1936   : > { %4596 = vmatprep.mubr.msk.bf16.mxu0 %vm349_vm3, %v5607_v49 }
0x1a00   : > { %v4566_v40 = vpop.f32.mrb[112].mxu0 }
0x1a01   : > { %v2772_v28 = vadd.f32 %v5803_v54, %v4566_v40  ;;  %v2763_v55 = vpop.f32.mrb[113].mxu0 }
0x1a02   : > { %v2764_v16 = vadd.f32 %v5803_v54, %v2763_v55  ;;  %v4567_v12 = vpop.f32.mrb[114].mxu0 }
0x1a03   : > { %v2775_v6 = vadd.f32 %v5803_v54, %v4567_v12  ;;  %v2766_v58 = vpop.f32.mrb[115].mxu0  ;;  %v6161_v45 = vadd.f32 %v2772_v28, %v2638_v7 }
0x1a04   : > { %v6156_v60 = vadd.f32 %v2764_v16, %v2636_v26  ;;  %v2767_v22 = vadd.f32 %v5803_v54, %v2766_v58 }
0x1a05   : > { %v6165_v21 = vadd.f32 %v2775_v6, %v2639_v25  ;;  %v2804_v8 = vmax.f32 %v6161_v45, 0.0 }
0x1a06   : > { %v6169_v61 = vadd.f32 %v2767_v22, %v2637_v56  ;;  %v2802_v57 = vmax.f32 %v6156_v60, 0.0 }
0x1a07   : > { %v2805_v62 = vmax.f32 %v6165_v21, 0.0 }
0x1a08   : > { %v2803_v26 = vmax.f32 %v6169_v61, 0.0  ;;  %v4570_v36 = vpop.f32.mrb[116].mxu0 }
0x1a09   : > { %v2788_v24 = vadd.f32 %v5803_v54, %v4570_v36  ;;  %v2779_v7 = vpop.f32.mrb[117].mxu0  ;;  %v2811_v56 = vpack.c.bf16 %v2805_v62, %v2804_v8 }
0x1a0a   : > { %v2810_v46 = vpack.c.bf16 %v2803_v26, %v2802_v57  ;;  %v2780_v48 = vadd.f32 %v5803_v54, %v2779_v7  ;;  %v4571_v25 = vpop.f32.mrb[118].mxu0 }
0x1a0b   : > { %v2791_v9 = vadd.f32 %v5803_v54, %v4571_v25  ;;  %v2782_v53 = vpop.f32.mrb[119].mxu0  ;;  %v6192_v17 = vadd.f32 %v2788_v24, %v2642_v41  ;;  %v4695_v25 = vld [vmem:[#allocation2 + $0x140] ss:$8 sps:$4 sm:$0xff]  }
0x1a0c   : > { %v6186_v35 = vadd.f32 %v2780_v48, %v2640_v10  ;;  %v2783_v43 = vadd.f32 %v5803_v54, %v2782_v53  ;;  %4580 = vmatprep.mubr.msk.bf16.mxu1 %vm349_vm3, %v2810_v46 }
0x1a0d   : > { %v6196_v59 = vadd.f32 %v2791_v9, %v2643_v4  ;;  %4581 = vmatmul.mubr.msk.bf16.vlgmr.msra.gmra.mrb[112].mxu1 %vm349_vm3, %v2811_v56  ;;  %v2808_v14 = vmax.f32 %v6192_v17, 0.0  ;;  %v4697_v56 = vld [vmem:[#allocation2 + $0x144] ss:$8 sps:$4 sm:$0xff]  }
0x1a0e   : > { %v6201_v39 = vadd.f32 %v2783_v43, %v2641_v38  ;;  %4605 = vmatpush3.bf16.msra.mxu1 %v5789_v31  ;;  %v2806_v15 = vmax.f32 %v6186_v35, 0.0 }
0x1a0f   : > { %v2809_v54 = vmax.f32 %v6196_v59, 0.0  ;;  %4606 = vmatprep.subr.bf16.mxu1 %v5861_v29 }
0x1a10   : > { %v2807_v32 = vmax.f32 %v6201_v39, 0.0 }
0x1a11   : > { %v2813_v27 = vpack.c.bf16 %v2809_v54, %v2808_v14 }
0x1a12   : > { %v2812_v47 = vpack.c.bf16 %v2807_v32, %v2806_v15  ;;  %4607 = vmatpush3.bf16.msra.mxu1 %v5861_v29 }
0x1a13   : > { %4608 = vmatprep.subr.bf16.mxu1 %v5876_v20 }
0x1a14   : > { %4584 = vmatprep.mubr.msk.bf16.mxu1 %vm349_vm3, %v2812_v47 }
0x1a15   : > { %4585 = vmatmul.mubr.msk.bf16.gmra.mrb[116].mxu1 %vm349_vm3, %v2813_v27  ;;  %v4747_v27 = vld [vmem:[%s6380_s0 + $0x8] sm:$0xff]  }
0x1a16   : > { %4609 = vmatpush3.bf16.msra.mxu1 %v5876_v20 }
0x1a17   : > { %4610 = vmatprep.subr.bf16.mxu1 %v5882_v0 }
0x1a1a   : > { %4611 = vmatpush3.bf16.msra.mxu1 %v5882_v0 }
0x1a1b   : > { %3219 = vmatprep.subr.bf16.mxu1 %v4697_v56 }
0x1ae0   : > { %v4582_v31 = vpop.f32.mrb[112].mxu1 }
0x1ae1   : > { %v2860_v4 = vpop.f32.mrb[113].mxu1 }
0x1ae2   : > { %v4583_v10 = vpop.f32.mrb[114].mxu1 }
0x1ae3   : > { %v2892_v38 = vpack.c.bf16 %v4583_v10, %v4582_v31  ;;  %v2863_v29 = vpop.f32.mrb[115].mxu1  ;;  %v4748_v31 = vld [vmem:[%s6380_s0 + $0x10] sm:$0xff]  }
0x1ae4   : > { %v2891_v41 = vpack.c.bf16 %v2863_v29, %v2860_v4  ;;  %v4749_v4 = vld [vmem:[%s6380_s0 + $0x18] sm:$0xff]   ;;  %v4703_v29 = vld [vmem:[#allocation2 + $0x164] ss:$8 sps:$4 sm:$0xff]  }
0x1ae5   : > { %v4700_v10 = vld [vmem:[#allocation2 + $0x154] ss:$8 sps:$4 sm:$0xff]  }
0x1ae6   : > { %4588 = vmatprep.subr.bf16.mxu0 %v2891_v41 }
0x1ae7   : > { %4589 = vmatpush3.bf16.msra.mxu0 %v2891_v41  ;;  %v4701_v41 = vld [vmem:[#allocation2 + $0x160] ss:$8 sps:$4 sm:$0xff]  }
0x1ae8   : > { %v4586_v33 = vpop.f32.mrb[116].mxu1  ;;  %4590 = vmatprep.subr.bf16.mxu0 %v2892_v38 }
0x1ae9   : > { %v2876_v37 = vpop.f32.mrb[117].mxu1 }
0x1aea   : > { %v4587_v50 = vpop.f32.mrb[118].mxu1 }
0x1aeb   : > { %v2894_v52 = vpack.c.bf16 %v4587_v50, %v4586_v33  ;;  %v2879_v18 = vpop.f32.mrb[119].mxu1  ;;  %4591 = vmatpush3.bf16.msra.mxu0 %v2892_v38  ;;  %v4698_v38 = vld [vmem:[#allocation2 + $0x150] ss:$8 sps:$4 sm:$0xff]   ;;  %v4706_v33 = vld [vmem:[#allocation2 + $0x174] ss:$8 sps:$4 sm:$0xff]   ;;  %v4794_v50 = vmov 0  }
0x1aec   : > { %v2893_v20 = vpack.c.bf16 %v2879_v18, %v2876_v37  ;;  %v4704_v37 = vld [vmem:[#allocation2 + $0x170] ss:$8 sps:$4 sm:$0xff]   ;;  %v4708_v18 = vld [vmem:[#allocation2 + $0x180] ss:$8 sps:$4 sm:$0xff]  }
0x1aee   : > { %4592 = vmatprep.subr.bf16.mxu0 %v2893_v20 }
0x1aef   : > { %4593 = vmatpush3.bf16.msra.mxu0 %v2893_v20  ;;  %v4709_v20 = vld [vmem:[#allocation2 + $0x210] ss:$8 sps:$4 sm:$0xff]  }
0x1af0   : > { %4594 = vmatprep.subr.bf16.mxu0 %v2894_v52 }
0x1af3   : > { %4595 = vmatpush3.bf16.msra.mxu0 %v2894_v52  ;;  %v4707_v52 = vld [vmem:[#allocation2 + $0x200] ss:$8 sps:$4 sm:$0xff]  }
0x1af6   : > { %4597 = vmatmul.mubr.msk.bf16.vlgmr.msra.gmra.mrb[120].mxu0 %vm349_vm3, %v5586_v30 }
0x1af7   : > { %4600 = vmatprep.mubr.msk.bf16.mxu0 %vm349_vm3, %v5593_v51 }
0x1afe   : > { %4601 = vmatmul.mubr.msk.bf16.gmra.mrb[124].mxu0 %vm349_vm3, %v5600_v1 }
0x1aff   : > { %4628 = vmatprep.mubr.msk.bf16.mxu0 %vm349_vm3, %v5607_v49 }
0x1bc9   : > { %v4598_v0 = vpop.f32.mrb[120].mxu0 }
0x1bca   : > { %v2938_v5 = vadd.f32 %v5898_v3, %v4598_v0  ;;  %v2929_v2 = vpop.f32.mrb[121].mxu0  ;;  %v4710_v0 = vld [vmem:[#allocation2 + $0x190] ss:$8 sps:$4 sm:$0xff]  }
0x1bcb   : > { %v2930_v11 = vadd.f32 %v5898_v3, %v2929_v2  ;;  %v4599_v13 = vpop.f32.mrb[122].mxu0  ;;  %v4712_v2 = vld [vmem:[#allocation2 + $0x1a0] ss:$8 sps:$4 sm:$0xff]  }
0x1bcc   : > { %v2941_v42 = vadd.f32 %v5898_v3, %v4599_v13  ;;  %v2932_v44 = vpop.f32.mrb[123].mxu0  ;;  %v6238_v1 = vadd.f32 %v2938_v5, %v2804_v8  ;;  %v4711_v5 = vld [vmem:[#allocation2 + $0x220] ss:$8 sps:$4 sm:$0xff]   ;;  %v4714_v13 = vld [vmem:[#allocation2 + $0x1b0] ss:$8 sps:$4 sm:$0xff]  }
0x1bcd   : > { %v6233_v30 = vadd.f32 %v2930_v11, %v2802_v57  ;;  %v2933_v51 = vadd.f32 %v5898_v3, %v2932_v44  ;;  %v4713_v11 = vld [vmem:[#allocation2 + $0x230] ss:$8 sps:$4 sm:$0xff]   ;;  %v4716_v44 = vld [vmem:[#allocation2 + $0x1c0] ss:$8 sps:$4 sm:$0xff]  }
0x1bce   : > { %v6242_v49 = vadd.f32 %v2941_v42, %v2805_v62  ;;  %v2970_v55 = vmax.f32 %v6238_v1, 0.0  ;;  %v4715_v42 = vld [vmem:[#allocation2 + $0x240] ss:$8 sps:$4 sm:$0xff]  }
0x1bcf   : > { %v6246_v19 = vadd.f32 %v2933_v51, %v2803_v26  ;;  %v2968_v34 = vmax.f32 %v6233_v30, 0.0 }
0x1bd0   : > { %v2971_v23 = vmax.f32 %v6242_v49, 0.0 }
0x1bd1   : > { %v2969_v40 = vmax.f32 %v6246_v19, 0.0  ;;  %v4602_v28 = vpop.f32.mrb[124].mxu0 }
0x1bd2   : > { %v2954_v16 = vadd.f32 %v5898_v3, %v4602_v28  ;;  %v2945_v12 = vpop.f32.mrb[125].mxu0  ;;  %v2977_v22 = vpack.c.bf16 %v2971_v23, %v2970_v55 }
0x1bd3   : > { %v2976_v6 = vpack.c.bf16 %v2969_v40, %v2968_v34  ;;  %v2946_v58 = vadd.f32 %v5898_v3, %v2945_v12  ;;  %v4603_v60 = vpop.f32.mrb[126].mxu0 }
0x1bd4   : > { %v2957_v45 = vadd.f32 %v5898_v3, %v4603_v60  ;;  %v2948_v21 = vpop.f32.mrb[127].mxu0  ;;  %v6267_v57 = vadd.f32 %v2954_v16, %v2808_v14 }
0x1bd5   : > { %v6263_v61 = vadd.f32 %v2946_v58, %v2806_v15  ;;  %v2949_v62 = vadd.f32 %v5898_v3, %v2948_v21  ;;  %4612 = vmatprep.mubr.msk.bf16.mxu1 %vm349_vm3, %v2976_v6 }
0x1bd6   : > { %v6271_v26 = vadd.f32 %v2957_v45, %v2809_v54  ;;  %4613 = vmatmul.mubr.msk.bf16.vlgmr.msra.gmra.mrb[120].mxu1 %vm349_vm3, %v2977_v22  ;;  %v2974_v7 = vmax.f32 %v6267_v57, 0.0 }
0x1bd7   : > { %v6276_v36 = vadd.f32 %v2949_v62, %v2807_v32  ;;  %v2972_v24 = vmax.f32 %v6263_v61, 0.0  ;;  %3220 = vmatpush1.bf16.msra.mxu1 %v4695_v25 }
0x1bd8   : > { %v2975_v8 = vmax.f32 %v6271_v26, 0.0  ;;  %3221 = vmatprep.subr.bf16.mxu1 %v4700_v10  ;;  %v4718_v26 = vld [vmem:[#allocation2 + $0x1d0] ss:$8 sps:$4 sm:$0xff]  }
0x1bd9   : > { %v2973_v3 = vmax.f32 %v6276_v36, 0.0  ;;  %v4719_v36 = vld [vmem:[#allocation2 + $0x260] ss:$8 sps:$4 sm:$0xff]  }
0x1bda   : > { %v2979_v48 = vpack.c.bf16 %v2975_v8, %v2974_v7 }
0x1bdb   : > { %v2978_v46 = vpack.c.bf16 %v2973_v3, %v2972_v24  ;;  %3222 = vmatpush1.bf16.msra.mxu1 %v4698_v38 }
0x1bdc   : > { %3223 = vmatprep.subr.bf16.mxu1 %v4703_v29 }
0x1bdd   : > { %4616 = vmatprep.mubr.msk.bf16.mxu1 %vm349_vm3, %v2978_v46 }
0x1bde   : > { %4617 = vmatmul.mubr.msk.bf16.gmra.mrb[124].mxu1 %vm349_vm3, %v2979_v48 }
0x1bdf   : > { %3224 = vmatpush1.bf16.msra.mxu1 %v4701_v41  ;;  %3251 = vmatprep.mubr.bf16.mxu1 %v4794_v50 }
0x1be0   : > { %3225 = vmatprep.subr.bf16.mxu1 %v4706_v33 }
0x1be3   : > { %3226 = vmatpush1.bf16.msra.mxu1 %v4704_v37 }
0x1be4   : > { %4636 = vmatprep.subr.bf16.mxu1 %v4707_v52 }
0x1ca9   : > { %v4614_v9 = vpop.f32.mrb[120].mxu1 }
0x1caa   : > { %v3026_v53 = vpop.f32.mrb[121].mxu1 }
0x1cab   : > { %v4615_v35 = vpop.f32.mrb[122].mxu1 }
0x1cac   : > { %v3058_v43 = vpack.c.bf16 %v4615_v35, %v4614_v9  ;;  %v3029_v17 = vpop.f32.mrb[123].mxu1 }
0x1cad   : > { %v3057_v59 = vpack.c.bf16 %v3029_v17, %v3026_v53 }
0x1caf   : > { %4620 = vmatprep.subr.bf16.mxu0 %v3057_v59 }
0x1cb0   : > { %4621 = vmatpush3.bf16.msra.mxu0 %v3057_v59 }
0x1cb1   : > { %v4618_v39 = vpop.f32.mrb[124].mxu1  ;;  %4622 = vmatprep.subr.bf16.mxu0 %v3058_v43 }
0x1cb2   : > { %v3042_v54 = vpop.f32.mrb[125].mxu1 }
0x1cb3   : > { %v4619_v15 = vpop.f32.mrb[126].mxu1 }
0x1cb4   : > { %v3060_v32 = vpack.c.bf16 %v4619_v15, %v4618_v39  ;;  %v3045_v14 = vpop.f32.mrb[127].mxu1  ;;  %4623 = vmatpush3.bf16.msra.mxu0 %v3058_v43 }
0x1cb5   : > { %v3059_v47 = vpack.c.bf16 %v3045_v14, %v3042_v54  ;;  %v3157_v14 = vlaneseq }
0x1cb7   : > { %4624 = vmatprep.subr.bf16.mxu0 %v3059_v47 }
0x1cb8   : > { %4625 = vmatpush3.bf16.msra.mxu0 %v3059_v47  ;;  %v3158_v47 = vshrl.u32 %v3157_v14, 7 }
0x1cb9   : > { %4626 = vmatprep.subr.bf16.mxu0 %v3060_v32 }
0x1cbc   : > { %4627 = vmatpush3.bf16.msra.mxu0 %v3060_v32  ;;  %v4722_v32 = vld [vmem:[#allocation2 + $0x1f0] ss:$8 sps:$4 sm:$0xff]  }
0x1cbd   : > { %4074 = vmatprep.subr.bf16.mxu0 %v4707_v52 }
0x1cbf   : > { %4629 = vmatmul.mubr.msk.bf16.vlgmr.msra.gmra.mrb[128].mxu0 %vm349_vm3, %v4747_v27  ;;  %v3159_v27 = vsub.s32 0, %v3158_v47 }
0x1cc0   : > { %4632 = vmatprep.mubr.msk.bf16.mxu0 %vm349_vm3, %v4748_v31  ;;  %4075 = vmatpush3.bf16.msra.mxu0 %v4708_v18  ;;  %v3780_v31 = vld [vmem:[%s6383_s3 + $0x5] ss:$8 sm:$0x3] }
0x1cc1   : > { %4076 = vmatprep.subr.bf16.mxu0 %v4709_v20  ;;  %v6339_v10 = vrot.slane %v3780_v31, %v3159_v27 }
0x1cc4   : > { %4077 = vmatpush3.bf16.msra.mxu0 %v4710_v0 }
0x1cc5   : > { %4078 = vmatprep.subr.bf16.mxu0 %v4711_v5 }
0x1cc7   : > { %4633 = vmatmul.mubr.msk.bf16.gmra.mrb[132].mxu0 %vm349_vm3, %v4749_v4  ;;  %v3163_v4 = vsub.s32 1, %v3158_v47 }
0x1cc8   : > { %4079 = vmatpush3.bf16.msra.mxu0 %v4712_v2 }
0x1cc9   : > { %4080 = vmatprep.subr.bf16.mxu0 %v4713_v11  ;;  %v6341_v38 = vrot.slane %v3780_v31, %v3163_v4 }
0x1ccc   : > { %4081 = vmatpush3.bf16.msra.mxu0 %v4714_v13 }
0x1ccd   : > { %4082 = vmatprep.subr.bf16.mxu0 %v4715_v42 }
0x1cd0   : > { %4083 = vmatpush3.bf16.msra.mxu0 %v4716_v44 }
0x1d92   : > { %v4630_v51 = vpop.f32.mrb[128].mxu0 }
0x1d93   : > { %v3104_v28 = vadd.f32 %v5987_v63, %v4630_v51  ;;  %v3095_v16 = vpop.f32.mrb[129].mxu0 }
0x1d94   : > { %v3096_v12 = vadd.f32 %v5987_v63, %v3095_v16  ;;  %v4631_v6 = vpop.f32.mrb[130].mxu0 }
0x1d95   : > { %v3128_v58 = vadd.f32 %v3104_v28, %v2970_v55  ;;  %v3107_v60 = vadd.f32 %v5987_v63, %v4631_v6  ;;  %v3098_v22 = vpop.f32.mrb[131].mxu0 }
0x1d96   : > { %v3126_v45 = vadd.f32 %v3096_v12, %v2968_v34  ;;  %v3099_v21 = vadd.f32 %v5987_v63, %v3098_v22 }
0x1d97   : > { %v3129_v62 = vadd.f32 %v3107_v60, %v2971_v23  ;;  %v3136_v48 = vmax.f32 %v3128_v58, 0.0 }
0x1d98   : > { %v3127_v46 = vadd.f32 %v3099_v21, %v2969_v40  ;;  %v3134_v56 = vmax.f32 %v3126_v45, 0.0 }
0x1d99   : > { %v3137_v25 = vmax.f32 %v3129_v62, 0.0 }
0x1d9a   : > { %v3135_v9 = vmax.f32 %v3127_v46, 0.0  ;;  %v4634_v1 = vpop.f32.mrb[132].mxu0 }
0x1d9b   : > { %v3143_v55 = vpack.c.bf16 %v3137_v25, %v3136_v48  ;;  %v3120_v53 = vadd.f32 %v5987_v63, %v4634_v1  ;;  %v3111_v35 = vpop.f32.mrb[133].mxu0 }
0x1d9c   : > { %v3142_v43 = vpack.c.bf16 %v3135_v9, %v3134_v56  ;;  %v3112_v30 = vadd.f32 %v5987_v63, %v3111_v35  ;;  %v4635_v34 = vpop.f32.mrb[134].mxu0 }
0x1d9d   : > { %v3132_v49 = vadd.f32 %v3120_v53, %v2974_v7  ;;  %v3123_v23 = vadd.f32 %v5987_v63, %v4635_v34  ;;  %v3114_v19 = vpop.f32.mrb[135].mxu0 }
0x1d9e   : > { %v3130_v40 = vadd.f32 %v3112_v30, %v2972_v24  ;;  %v3115_v17 = vadd.f32 %v5987_v63, %v3114_v19  ;;  %3789 = vmatmul.mubr.msk.bf16.vlgmr.msra.gmra.mrb[128].mxu1 %vm349_vm3, %v3142_v43  ;;  %v4717_v63 = vld [vmem:[#allocation2 + $0x250] ss:$8 sps:$4 sm:$0xff]  }
0x1d9f   : > { %v3133_v59 = vadd.f32 %v3123_v23, %v2975_v8  ;;  %3261 = vmatprep.mubr.bf16.mxu1 %v4794_v50  ;;  %4644 = vmatpush3.bf16.msra.mxu1 %v4708_v18  ;;  %v3140_v7 = vmax.f32 %v3132_v49, 0.0  ;;  %v4720_v8 = vld [vmem:[#allocation2 + $0x1e0] ss:$8 sps:$4 sm:$0xff]  }
0x1da0   : > { %v3131_v57 = vadd.f32 %v3115_v17, %v2973_v3  ;;  %4637 = vmatprep.subr.bf16.mxu1 %v4709_v20  ;;  %v3138_v54 = vmax.f32 %v3130_v40, 0.0  ;;  %4084 = vmatprep.subr.bf16.mxu0 %v4717_v63  ;;  %v4721_v3 = vld [vmem:[#allocation2 + $0x270] ss:$8 sps:$4 sm:$0xff]  }
0x1da1   : > { %v3141_v39 = vmax.f32 %v3133_v59, 0.0  ;;  %4085 = vmatpush3.bf16.msra.mxu0 %v4718_v26 }
0x1da2   : > { %v3139_v15 = vmax.f32 %v3131_v57, 0.0  ;;  %4086 = vmatprep.subr.bf16.mxu0 %v4719_v36 }
0x1da3   : > { %v3145_v61 = vpack.c.bf16 %v3141_v39, %v3140_v7  ;;  %4645 = vmatpush3.bf16.msra.mxu1 %v4710_v0 }
0x1da4   : > { %v3144_v24 = vpack.c.bf16 %v3139_v15, %v3138_v54  ;;  %4638 = vmatprep.subr.bf16.mxu1 %v4711_v5 }
0x1da5   : > { %4087 = vmatpush3.bf16.msra.mxu0 %v4720_v8 }
0x1da6   : > { %3790 = vmatmul.mubr.msk.bf16.gmra.mrb[132].mxu1 %vm349_vm3, %v3143_v55  ;;  %4088 = vmatprep.subr.bf16.mxu0 %v4721_v3 }
0x1da7   : > { %3271 = vmatprep.mubr.bf16.mxu1 %v4794_v50  ;;  %4646 = vmatpush3.bf16.msra.mxu1 %v4712_v2 }
0x1da8   : > { %4639 = vmatprep.subr.bf16.mxu1 %v4713_v11 }
0x1da9   : > { %4089 = vmatpush3.bf16.msra.mxu0 %v4722_v32 }
0x1dab   : > { %4647 = vmatpush3.bf16.msra.mxu1 %v4714_v13 }
0x1dac   : > { %4640 = vmatprep.subr.bf16.mxu1 %v4715_v42 }
0x1dae   : > { %3791 = vmatmul.mubr.msk.bf16.gmra.mrb[136].mxu1 %vm349_vm3, %v3144_v24 }
0x1daf   : > { %3281 = vmatprep.mubr.bf16.mxu1 %v4794_v50  ;;  %4648 = vmatpush3.bf16.msra.mxu1 %v4716_v44 }
0x1db0   : > { %4641 = vmatprep.subr.bf16.mxu1 %v4717_v63 }
0x1db3   : > { %4649 = vmatpush3.bf16.msra.mxu1 %v4718_v26 }
0x1db4   : > { %4642 = vmatprep.subr.bf16.mxu1 %v4719_v36 }
0x1db6   : > { %3792 = vmatmul.mubr.msk.bf16.gmra.mrb[140].mxu1 %vm349_vm3, %v3145_v61 }
0x1db7   : > { %4650 = vmatpush3.bf16.msra.mxu1 %v4720_v8 }
0x1db8   : > { %4643 = vmatprep.subr.bf16.mxu1 %v4721_v3 }
0x1dbb   : > { %4651 = vmatpush3.bf16.msra.mxu1 %v4722_v32 }
0x1e71   : > { %v3253_v29 = vpop.f32.mrb[128].mxu1 }
0x1e72   : > { %v3254_v41 = vadd.f32 %v3253_v29, %v6339_v10  ;;  %v3255_v33 = vpop.f32.mrb[129].mxu1 }
0x1e73   : > { %v3256_v37 = vadd.f32 %v3255_v33, %v6341_v38  ;;  %v3257_v50 = vpop.f32.mrb[130].mxu1 }
0x1e74   : > { %v3308_v52 = vmul.f32 0.01, %v3254_v41  ;;  %v3258_v18 = vadd.f32 %v3257_v50, %v6339_v10  ;;  %v3259_v20 = vpop.f32.mrb[131].mxu1  ;;  %vm3292_vm4 = vcmp.gt.f32.partialorder %v3254_v41, 0.0 }
0x1e75   : > { %v3309_v0 = vmul.f32 0.01, %v3256_v37  ;;  %v3260_v5 = vadd.f32 %v3259_v20, %v6341_v38  ;;  %vm3293_vm5 = vcmp.gt.f32.partialorder %v3256_v37, 0.0 }
0x1e76   : > { %vm3294_vm6 = vcmp.gt.f32.partialorder %v3258_v18, 0.0  ;;  %v3310_v2 = vmul.f32 0.01, %v3258_v18  ;;  %v3324_v13 = vsel %vm3292_vm4, %v3254_v41, %v3308_v52 }
0x1e77   : > { %vm3295_vm7 = vcmp.gt.f32.partialorder %v3260_v5, 0.0  ;;  %v3311_v11 = vmul.f32 0.01, %v3260_v5  ;;  %v3325_v28 = vsel %vm3293_vm5, %v3256_v37, %v3309_v0 }
0x1e78   : > { %v3326_v42 = vsel %vm3294_vm6, %v3258_v18, %v3310_v2 }
0x1e79   : > { %v3340_v44 = vpack.c.bf16 %v3326_v42, %v3324_v13  ;;  %v3263_v51 = vpop.f32.mrb[132].mxu1  ;;  %v3327_v16 = vsel %vm3295_vm7, %v3260_v5, %v3311_v11 }
0x1e7a   : > { %v3264_v12 = vadd.f32 %v3263_v51, %v6339_v10  ;;  %v3265_v6 = vpop.f32.mrb[133].mxu1  ;;  %v3341_v58 = vpack.c.bf16 %v3327_v16, %v3325_v28 }
0x1e7b   : > { %v3266_v60 = vadd.f32 %v3265_v6, %v6341_v38  ;;  %v3267_v22 = vpop.f32.mrb[134].mxu1 }
0x1e7c   : > { %v3312_v45 = vmul.f32 0.01, %v3264_v12  ;;  %v3268_v21 = vadd.f32 %v3267_v22, %v6339_v10  ;;  %v3269_v62 = vpop.f32.mrb[135].mxu1  ;;  %3509 = vmatprep.mubr.bf16.mxu0 %v3341_v58  ;;  %vm3296_vm8 = vcmp.gt.f32.partialorder %v3264_v12, 0.0 }
0x1e7d   : > { %v3313_v46 = vmul.f32 0.01, %v3266_v60  ;;  %v3270_v48 = vadd.f32 %v3269_v62, %v6341_v38  ;;  %3510 = vmatmul.mubr.bf16.vlgmr.msra.gmra.mrb[136].mxu0 %v3340_v44  ;;  %vm3297_vm9 = vcmp.gt.f32.partialorder %v3266_v60, 0.0 }
0x1e7e   : > { %vm3298_vm10 = vcmp.gt.f32.partialorder %v3268_v21, 0.0  ;;  %v3314_v25 = vmul.f32 0.01, %v3268_v21  ;;  %v3328_v9 = vsel %vm3296_vm8, %v3264_v12, %v3312_v45 }
0x1e7f   : > { %vm3299_vm11 = vcmp.gt.f32.partialorder %v3270_v48, 0.0  ;;  %v3315_v56 = vmul.f32 0.01, %v3270_v48  ;;  %v3329_v53 = vsel %vm3297_vm9, %v3266_v60, %v3313_v46 }
0x1e80   : > { %v3330_v1 = vsel %vm3298_vm10, %v3268_v21, %v3314_v25 }
0x1e81   : > { %v3273_v55 = vpop.f32.mrb[136].mxu1  ;;  %v3331_v35 = vsel %vm3299_vm11, %v3270_v48, %v3315_v56  ;;  %v3342_v43 = vpack.c.bf16 %v3330_v1, %v3328_v9 }
0x1e82   : > { %v3274_v30 = vadd.f32 %v3273_v55, %v6339_v10  ;;  %v3275_v34 = vpop.f32.mrb[137].mxu1  ;;  %v3343_v49 = vpack.c.bf16 %v3331_v35, %v3329_v53 }
0x1e83   : > { %v3276_v23 = vadd.f32 %v3275_v34, %v6341_v38  ;;  %v3277_v19 = vpop.f32.mrb[138].mxu1 }
0x1e84   : > { %v3316_v40 = vmul.f32 0.01, %v3274_v30  ;;  %v3278_v17 = vadd.f32 %v3277_v19, %v6339_v10  ;;  %v3279_v59 = vpop.f32.mrb[139].mxu1  ;;  %3517 = vmatprep.mubr.bf16.mxu0 %v3343_v49  ;;  %vm3300_vm12 = vcmp.gt.f32.partialorder %v3274_v30, 0.0 }
0x1e85   : > { %v3317_v57 = vmul.f32 0.01, %v3276_v23  ;;  %v3280_v7 = vadd.f32 %v3279_v59, %v6341_v38  ;;  %3518 = vmatmul.mubr.bf16.gmra.mrb[140].mxu0 %v3342_v43  ;;  %vm3301_vm13 = vcmp.gt.f32.partialorder %v3276_v23, 0.0 }
0x1e86   : > { %vm3302_vm14 = vcmp.gt.f32.partialorder %v3278_v17, 0.0  ;;  %v3318_v39 = vmul.f32 0.01, %v3278_v17  ;;  %v3332_v15 = vsel %vm3300_vm12, %v3274_v30, %v3316_v40 }
0x1e87   : > { %vm3303_vm15 = vcmp.gt.f32.partialorder %v3280_v7, 0.0  ;;  %v3319_v54 = vmul.f32 0.01, %v3280_v7  ;;  %v3333_v63 = vsel %vm3301_vm13, %v3276_v23, %v3317_v57 }
0x1e88   : > { %v3334_v61 = vsel %vm3302_vm14, %v3278_v17, %v3318_v39 }
0x1e89   : > { %v3283_v24 = vpop.f32.mrb[140].mxu1  ;;  %v3335_v26 = vsel %vm3303_vm15, %v3280_v7, %v3319_v54  ;;  %v3344_v36 = vpack.c.bf16 %v3334_v61, %v3332_v15 }
0x1e8a   : > { %v3284_v8 = vadd.f32 %v3283_v24, %v6339_v10  ;;  %v3285_v3 = vpop.f32.mrb[141].mxu1  ;;  %v3345_v32 = vpack.c.bf16 %v3335_v26, %v3333_v63 }
0x1e8b   : > { %v3286_v14 = vadd.f32 %v3285_v3, %v6341_v38  ;;  %v3287_v47 = vpop.f32.mrb[142].mxu1 }
0x1e8c   : > { %v3320_v27 = vmul.f32 0.01, %v3284_v8  ;;  %v3288_v31 = vadd.f32 %v3287_v47, %v6339_v10  ;;  %v3289_v4 = vpop.f32.mrb[143].mxu1  ;;  %3525 = vmatprep.mubr.bf16.mxu0 %v3345_v32  ;;  %vm3304_vm0 = vcmp.gt.f32.partialorder %v3284_v8, 0.0 }
0x1e8d   : > { %v3321_v29 = vmul.f32 0.01, %v3286_v14  ;;  %v3290_v41 = vadd.f32 %v3289_v4, %v6341_v38  ;;  %3526 = vmatmul.mubr.bf16.gmra.mrb[144].mxu0 %v3344_v36  ;;  %vm3305_vm1 = vcmp.gt.f32.partialorder %v3286_v14, 0.0  ;;  %v3380_v38 = vld [vmem:[%s6383_s3 + $0x6] ss:$0 sm:$0xff] }
0x1e8e   : > { %vm3306_vm2 = vcmp.gt.f32.partialorder %v3288_v31, 0.0  ;;  %v3322_v33 = vmul.f32 0.01, %v3288_v31  ;;  %v3336_v50 = vsel %vm3304_vm0, %v3284_v8, %v3320_v27 }
0x1e8f   : > { %vm3307_vm3 = vcmp.gt.f32.partialorder %v3290_v41, 0.0  ;;  %v3323_v37 = vmul.f32 0.01, %v3290_v41  ;;  %v3337_v20 = vsel %vm3305_vm1, %v3286_v14, %v3321_v29 }
0x1e90   : > { %v3338_v52 = vsel %vm3306_vm2, %v3288_v31, %v3322_v33 }
0x1e91   : > { %v3346_v18 = vpack.c.bf16 %v3338_v52, %v3336_v50  ;;  %v3339_v0 = vsel %vm3307_vm3, %v3290_v41, %v3323_v37 }
0x1e92   : > { %v3347_v5 = vpack.c.bf16 %v3339_v0, %v3337_v20 }
0x1e94   : > { %3533 = vmatprep.mubr.bf16.mxu1 %v3347_v5 }
0x1e95   : > { %3534 = vmatmul.mubr.bf16.vlgmr.msra.gmra.mrb[144].mxu1 %v3346_v18 }
0x1f50   : > { %v4090_v10 = vpop.f32.mrb[136].mxu0 }
0x1f51   : > { %v4091_v2 = vpop.f32.mrb[137].mxu0 }
0x1f52   : > { %v4092_v11 = vadd.f32 %v4091_v2, %v4090_v10  ;;  %v4093_v13 = vpop.f32.mrb[138].mxu0 }
0x1f53   : > { %v4094_v42 = vpop.f32.mrb[139].mxu0 }
0x1f54   : > { %v3512_v44 = vadd.f32 %v4092_v11, %v3380_v38  ;;  %v4095_v51 = vadd.f32 %v4094_v42, %v4093_v13 }
0x1f56   : > { %3542 = vst [vmem:[%s6367_s11] sm:$0xff] %v3512_v44  ;;  %v3515_v28 = vadd.f32 %v4095_v51, %v3380_v38 }
0x1f58   : > { %3543 = vst [vmem:[%s6367_s11 + $0x8] sm:$0xff] %v3515_v28  ;;  %v4096_v16 = vpop.f32.mrb[140].mxu0 }
0x1f59   : > { %v4097_v12 = vpop.f32.mrb[141].mxu0 }
0x1f5a   : > { %v4098_v6 = vadd.f32 %v4097_v12, %v4096_v16  ;;  %v4099_v58 = vpop.f32.mrb[142].mxu0 }
0x1f5b   : > { %v4100_v60 = vpop.f32.mrb[143].mxu0 }
0x1f5c   : > { %v3520_v22 = vadd.f32 %v4098_v6, %v3380_v38  ;;  %v4101_v45 = vadd.f32 %v4100_v60, %v4099_v58 }
0x1f5e   : > { %3544 = vst [vmem:[%s6367_s11 + $0x10] sm:$0xff] %v3520_v22  ;;  %v3523_v21 = vadd.f32 %v4101_v45, %v3380_v38 }
0x1f60   : > { %3545 = vst [vmem:[%s6367_s11 + $0x18] sm:$0xff] %v3523_v21  ;;  %v4102_v62 = vpop.f32.mrb[144].mxu0 }
0x1f61   : > { %v4103_v46 = vpop.f32.mrb[145].mxu0 }
0x1f62   : > { %v4104_v48 = vadd.f32 %v4103_v46, %v4102_v62  ;;  %v4105_v25 = vpop.f32.mrb[146].mxu0 }
0x1f63   : > { %v4106_v56 = vpop.f32.mrb[147].mxu0 }
0x1f64   : > { %v3528_v9 = vadd.f32 %v4104_v48, %v3380_v38  ;;  %v4107_v1 = vadd.f32 %v4106_v56, %v4105_v25 }
0x1f66   : > { %3546 = vst [vmem:[%s6367_s11 + $0x20] sm:$0xff] %v3528_v9  ;;  %v3531_v55 = vadd.f32 %v4107_v1, %v3380_v38 }
0x1f68   : > { %3547 = vst [vmem:[%s6367_s11 + $0x28] sm:$0xff] %v3531_v55  ;;  %v4108_v53 = vpop.f32.mrb[144].mxu1 }
0x1f69   : > { %v4109_v35 = vpop.f32.mrb[145].mxu1 }
0x1f6a   : > { %v4110_v43 = vadd.f32 %v4109_v35, %v4108_v53  ;;  %v4111_v30 = vpop.f32.mrb[146].mxu1 }
0x1f6b   : > { %v4112_v34 = vpop.f32.mrb[147].mxu1 }
0x1f6c   : > { %v3536_v49 = vadd.f32 %v4110_v43, %v3380_v38  ;;  %v4113_v23 = vadd.f32 %v4112_v34, %v4111_v30 }
0x1f6e   : > { %3548 = vst [vmem:[%s6367_s11 + $0x30] sm:$0xff] %v3536_v49  ;;  %v3539_v19 = vadd.f32 %v4113_v23, %v3380_v38 }
0x1f70   : > { %3549 = vst [vmem:[%s6367_s11 + $0x38] sm:$0xff] %v3539_v19 }
0x1f71 PF: > { %s15_s15 = sadd.s32 1, %s4788_s15  }
0x1f72   : > { %p12_p3 = scmp.ge.s32.totalorder %s15_s15, 6  }
0x1f74   :  { %14 = sbr.rel (!%p12_p3) target bundleno = 1 (0x1), region = 72 }
0x1f7b   :  { %3571 = vsyncpa [#allocation3], 1 }
0x1f7c   :  { %3573 = vsyncpa [#allocation3 + $0x1], 1 }

</bundles_post_ra>
